<compile_context>
chip_gen: v7x
topology: tpu7x:2x2x1
jax: 0.10.0
libtpu: 0.0.40
codegen_flags: <defaults>
</compile_context>

<pallas_src>
import functools

import jax
import jax.numpy as jnp
from jax.experimental import pallas as pl
from jax.experimental.pallas import tpu as pltpu

LANE = 128
SUBLANE = 8
MAX_TILE_M = 1024          # M-tile cap for the (large-M) tanh layer
BN_EPS = 1e-5
# bf16 inputs: native MXU dtype on all generations; accumulation stays f32 via
# preferred_element_type and the epilogue math is explicit f32.
MATMUL_INPUT_DTYPE = jnp.bfloat16


def _round_up(x, m):
    return ((x + m - 1) // m) * m


def _tile_m(m):
    """(padded M, tile M): pad to a sublane multiple, cap tile at MAX_TILE_M."""
    if m <= MAX_TILE_M:
        t = _round_up(m, SUBLANE)
        return t, t
    return _round_up(m, MAX_TILE_M), MAX_TILE_M


# ----------------------------- Pallas kernels ------------------------------

def _stacked_mm_bn_relu_kernel(a_ref, b_ref, o_ref, *, count, eps):
    """For each phase p: acc_p = A_p @ B_p (f32 on the MXU), with BatchNorm
    batch statistics accumulated over all phases in the same pass, then
    relu((acc - mean) * rsqrt(var + eps)) stored (bf16 on the final cast only).

    Runs as a single grid step: the whole (P, M, K) / (P, K, N) stack is
    resident in VMEM, so full-output statistics are available before any
    normalization.  Zero-padded rows / columns contribute exactly 0 to the
    sums; `count` is the number of *valid* rows (= N * H_out * W_out).
    """
    n_phase = a_ref.shape[0]
    accs = []
    s = None
    sq = None
    for p in range(n_phase):
        acc = jnp.dot(a_ref[p], b_ref[p], preferred_element_type=jnp.float32)
        accs.append(acc)
        ps = jnp.sum(acc, axis=0, keepdims=True)          # (1, Np), f32
        psq = jnp.sum(acc * acc, axis=0, keepdims=True)
        s = ps if s is None else s + ps
        sq = psq if sq is None else sq + psq
    inv_cnt = 1.0 / count
    mean = s * inv_cnt
    var = jnp.maximum(sq * inv_cnt - mean * mean, 0.0)    # biased (training)
    inv_std = jax.lax.rsqrt(var + eps)                    # gamma = 1, beta = 0
    shift = -mean * inv_std
    for p in range(n_phase):
        o_ref[p] = jnp.maximum(accs[p] * inv_std + shift, 0.0).astype(o_ref.dtype)


def _stacked_mm_tanh_kernel(a_ref, b_ref, o_ref):
    """o[phase] = tanh(A_phase @ B_phase) — tanh rides the idle EUP slot."""
    o_ref[0] = jnp.tanh(
        jnp.dot(a_ref[0], b_ref[0], preferred_element_type=jnp.float32)
    ).astype(o_ref.dtype)


# ----------------------------- Pallas wrappers ------------------------------

def pallas_conv_bn_relu(a_stack, b_stack, count):
    """a: (P, Mp, Kp) bf16, b: (P, Kp, Np) bf16 -> (P, Mp, Np) bf16.

    Single grid step; valid while the whole stack fits one VMEM block (true
    for every DCGAN-32 BN layer: worst case (4, 128, 128) f32 accumulators).
    # TODO(synk): for very large batches switch to a two-pass (stats, then
    # normalize) grid so n_m > 1 keeps working.
    """
    P, Mp, Kp = a_stack.shape
    Np = b_stack.shape[-1]
    kernel = functools.partial(_stacked_mm_bn_relu_kernel,
                               count=float(count), eps=BN_EPS)
    return pl.pallas_call(
        kernel,
        out_shape=jax.ShapeDtypeStruct((P, Mp, Np), jnp.bfloat16),
        grid_spec=pltpu.PrefetchScalarGridSpec(
            num_scalar_prefetch=0,
            grid=(1,),
            in_specs=[pl.BlockSpec((P, Mp, Kp), lambda i: (0, 0, 0)),
                      pl.BlockSpec((P, Kp, Np), lambda i: (0, 0, 0))],
            out_specs=pl.BlockSpec((P, Mp, Np), lambda i: (0, 0, 0))),
        compiler_params=pltpu.CompilerParams(
            dimension_semantics=("arbitrary",)),
    )(a_stack, b_stack)


def pallas_conv_tanh(a_stack, b_stack):
    """a: (P, Mp, Kp) bf16, b: (P, Kp, Np) bf16 -> (P, Mp, Np) f32.

    Grid = (phase, M-block), both "parallel": v7x megacore splits the phases
    across its two TensorCores; v5e/v6e just loop over small blocks.
    """
    P, Mp, Kp = a_stack.shape
    Np = b_stack.shape[-1]
    tm = min(Mp, MAX_TILE_M)
    n_m = Mp // tm
    return pl.pallas_call(
        _stacked_mm_tanh_kernel,
        out_shape=jax.ShapeDtypeStruct((P, Mp, Np), jnp.float32),
        grid_spec=pltpu.PrefetchScalarGridSpec(
            num_scalar_prefetch=0,
            grid=(P, n_m),
            in_specs=[pl.BlockSpec((1, tm, Kp), lambda p, i: (p, i, 0)),
                      pl.BlockSpec((1, Kp, Np), lambda p, i: (p, 0, 0))],
            out_specs=pl.BlockSpec((1, tm, Np), lambda p, i: (p, i, 0))),
        compiler_params=pltpu.CompilerParams(
            dimension_semantics=("parallel", "parallel")),
    )(a_stack, b_stack)


# ------------------------------ JAX glue -----------------------------------

def _phase_patches(x):
    """Sub-pixel im2col for ConvTranspose2d(k=4, s=2, p=1), NHWC.

    Output phase (py, px) only sees a 2x2 input window and 4 of the 16 kernel
    taps, so each phase is a K = 4*C matmul.
    x: (N, H, W, C) -> (4, N*H*W, 4*C); phase order (py, px) row-major,
    K order (dy, dx, c)."""
    n, h, w, c = x.shape
    xp = jnp.pad(x, ((0, 0), (1, 1), (1, 1), (0, 0)))
    phases = []
    for py in (0, 1):
        for px in (0, 1):
            taps = [xp[:, py + dy:py + dy + h, px + dx:px + dx + w, :]
                    for dy in (0, 1) for dx in (0, 1)]
            phases.append(
                jnp.concatenate(taps, axis=-1).reshape(n * h * w, 4 * c))
    return jnp.stack(phases, axis=0)


def _phase_weights(w):
    """ConvTranspose2d weight (C_in, C_out, 4, 4) -> (4, 4*C_in, C_out) of
    per-phase matrices matching _phase_patches: tap (dy, dx) of output phase
    (py, px) uses kernel element (3 - py - 2*dy, 3 - px - 2*dx)."""
    c_in, c_out = int(w.shape[0]), int(w.shape[1])
    mats = []
    for py in (0, 1):
        for px in (0, 1):
            taps = [w[:, :, 3 - py - 2 * dy, 3 - px - 2 * dx]
                    for dy in (0, 1) for dx in (0, 1)]
            mats.append(jnp.stack(taps, axis=0).reshape(4 * c_in, c_out))
    return jnp.stack(mats, axis=0)


def _phase_uninterleave(y, n, h, w, c):
    """(4, Mp, Np) phase-stacked conv output -> (n, 2h, 2w, c) NHWC."""
    y = y[:, :n * h * w, :c].reshape(2, 2, n, h, w, c)
    return jnp.transpose(y, (2, 3, 0, 4, 1, 5)).reshape(n, 2 * h, 2 * w, c)


def _head_patches(z2d):
    """ConvTranspose2d(nz, C, 4, 1, 0) on a 1x1 input: output pixel (oy, ox)
    uses exactly kernel tap (oy, ox), so the im2col matrix is z kron'd with a
    16x16 reversal permutation.  z2d: (N, nz) -> (N*16, 16*nz)."""
    n, nz = z2d.shape
    rev = jnp.flip(jnp.eye(16, dtype=z2d.dtype), axis=1)
    return jnp.einsum('st,nc->nstc', rev, z2d).reshape(n * 16, 16 * nz)


def _head_weight(w):
    """(nz, C_out, 4, 4) -> (16*nz, C_out), K ordered (dy, dx, ci) with the
    spatial flip of the dilated-conv formulation (matches _head_patches)."""
    nz, c_out = int(w.shape[0]), int(w.shape[1])
    wf = w[:, :, ::-1, ::-1]
    return wf.transpose(2, 3, 0, 1).reshape(16 * nz, c_out)


def _pad_cast_a(a_stack, k_to):
    """Pad (P, M, K) patches to (P, Mp, k_to) and cast to the matmul dtype."""
    P, m, k = a_stack.shape
    mp, _ = _tile_m(m)
    return jnp.pad(a_stack, ((0, 0), (0, mp - m), (0, k_to - k))
                   ).astype(MATMUL_INPUT_DTYPE)


def _pad_cast_b(b_stack):
    """Pad (P, K, C) weights to lane-dense (P, Kp, Np) and cast (done once)."""
    P, k, c = b_stack.shape
    kp, npad = _round_up(k, LANE), _round_up(c, LANE)
    return jnp.pad(b_stack, ((0, 0), (0, kp - k), (0, npad - c))
                   ).astype(MATMUL_INPUT_DTYPE)


def make_dcgan_generator32(weights):
    """weights = (w1, w2, w3, w4) in PyTorch ConvTranspose2d layout
    (C_in, C_out, kh, kw).  Returns forward(z) for z: (N, nz, 1, 1) NCHW."""
    w1, w2, w3, w4 = weights
    nz, c1 = int(w1.shape[0]), int(w1.shape[1])
    c2, c3, nc = int(w2.shape[1]), int(w3.shape[1]), int(w4.shape[1])

    # Weight matrices are flipped / transposed / padded / cast exactly once.
    prep = (_pad_cast_b(_head_weight(w1)[None]),      # (1, Kp, 128)
            _pad_cast_b(_phase_weights(w2)),          # (4, Kp, 128)
            _pad_cast_b(_phase_weights(w3)),
            _pad_cast_b(_phase_weights(w4)))

    @jax.jit
    def forward(z, prep):
        b1, b2, b3, b4 = prep
        n = z.shape[0]

        # Layer 1: ConvT(nz, c1, 4, 1, 0) + BN + ReLU  -> (n, 4, 4, c1) NHWC.
        a = _pad_cast_a(_head_patches(z.reshape(n, nz))[None], b1.shape[1])
        y = pallas_conv_bn_relu(a, b1, count=n * 16)
        x = y[0, :n * 16, :c1].reshape(n, 4, 4, c1)

        # Layers 2, 3: ConvT(k=4, s=2, p=1) + BN + ReLU (sub-pixel phases).
        for b, c_out in ((b2, c2), (b3, c3)):
            _, h, w, _ = x.shape
            a = _pad_cast_a(_phase_patches(x), b.shape[1])
            y = pallas_conv_bn_relu(a, b, count=4 * n * h * w)
            x = _phase_uninterleave(y, n, h, w, c_out)

        # Layer 4: ConvT(k=4, s=2, p=1) + tanh.
        _, h, w, _ = x.shape
        a = _pad_cast_a(_phase_patches(x), b4.shape[1])
        y = pallas_conv_tanh(a, b4)
        img = _phase_uninterleave(y, n, h, w, nc)      # (n, 32, 32, nc) NHWC
        return jnp.transpose(img, (0, 3, 1, 2))        # NCHW, like the module

    return lambda z: forward(z, prep)


# --------------------------- f32 JAX reference ------------------------------

def _reference_forward(z, weights):
    """Pure-JAX f32 reference: ConvTranspose2d as a dilated conv, training-mode
    BatchNorm (batch stats, biased var, eps=1e-5, identity affine), ReLU, tanh."""
    x = z
    cfg = ((weights[0], 1, 0), (weights[1], 2, 1),
           (weights[2], 2, 1), (weights[3], 2, 1))
    for idx, (w, stride, pad) in enumerate(cfg):
        k = w.shape[2]
        w_conv = jnp.transpose(w[:, :, ::-1, ::-1], (1, 0, 2, 3))   # OIHW
        x = jax.lax.conv_general_dilated(
            x, w_conv, window_strides=(1, 1),
            padding=[(k - 1 - pad, k - 1 - pad)] * 2,
            lhs_dilation=(stride, stride),
            dimension_numbers=('NCHW', 'OIHW', 'NCHW'))
        if idx < 3:
            mean = jnp.mean(x, axis=(0, 2, 3), keepdims=True)
            var = jnp.var(x, axis=(0, 2, 3), keepdims=True)
            x = jnp.maximum((x - mean) * jax.lax.rsqrt(var + BN_EPS), 0.0)
        else:
            x = jnp.tanh(x)
    return x


if __name__ == "__main__":
    # opt.latent_dim = 16, opt.num_filters = 8, dataset != mnist/fashion -> nc = 3
    batch, nz, ngf, nc = 2, 16, 8, 3
    key = jax.random.PRNGKey(0)
    kz, k1, k2, k3, k4 = jax.random.split(key, 5)

    z = jax.random.normal(kz, (batch, nz, 1, 1), jnp.float32)
    # ConvTranspose2d weight shapes: (in_channels, out_channels, kh, kw)
    w1 = 0.05 * jax.random.normal(k1, (nz, ngf * 8, 4, 4), jnp.float32)
    w2 = 0.05 * jax.random.normal(k2, (ngf * 8, ngf * 4, 4, 4), jnp.float32)
    w3 = 0.05 * jax.random.normal(k3, (ngf * 4, ngf, 4, 4), jnp.float32)
    w4 = 0.05 * jax.random.normal(k4, (ngf, nc, 4, 4), jnp.float32)
    weights = (w1, w2, w3, w4)

    forward = make_dcgan_generator32(weights)
    out = jax.block_until_ready(forward(z))

    assert out.shape == (batch, nc, 32, 32), out.shape
    assert bool(jnp.all(jnp.isfinite(out)))
    assert bool(jnp.all(jnp.abs(out) <= 1.0 + 1e-6))          # tanh range

    ref = _reference_forward(z, weights)                       # f32 reference
    max_err = float(jnp.max(jnp.abs(out - ref)))
    # bf16 matmul inputs / bf16 inter-layer activations -> loose tolerance.
    assert max_err < 1e-1, f"max |pallas - reference| = {max_err}"
    print("KERNEL_OK")
</pallas_src>

<mosaic_0001>
module attributes {stable_mosaic.version = 11 : i64} {
  func.func @_stacked_mm_bn_relu_kernel(%arg0: i32, %arg1: memref<1x32x256xbf16, #tpu.memory_space<vmem>>, %arg2: memref<1x256x128xbf16, #tpu.memory_space<vmem>>, %arg3: memref<1x32x128xbf16, #tpu.memory_space<vmem>>) attributes {dimension_semantics = [#tpu.dimension_semantics<arbitrary>], iteration_bounds = array<i64: 1>, scalar_prefetch = 0 : i64, scratch_operands = 0 : i64, tpu.core_type = #tpu.core_type<tc>, window_params = [{pipeline_mode = #tpu.pipeline_mode<synchronous>, transform_indices = @transform_0, window_bounds = array<i64: 1, 32, 256>}, {pipeline_mode = #tpu.pipeline_mode<synchronous>, transform_indices = @transform_1, window_bounds = array<i64: 1, 256, 128>}, {pipeline_mode = #tpu.pipeline_mode<synchronous>, transform_indices = @transform_2, window_bounds = array<i64: 1, 32, 128>}]} {
    %c0 = arith.constant 0 : index
    %c0_0 = arith.constant 0 : index
    %c0_1 = arith.constant 0 : index
    %0 = vector.load %arg1[%c0, %c0_0, %c0_1] : memref<1x32x256xbf16, #tpu.memory_space<vmem>>, vector<1x32x256xbf16>
    %1 = vector.shape_cast %0 : vector<1x32x256xbf16> to vector<32x256xbf16>
    %c0_2 = arith.constant 0 : index
    %c0_3 = arith.constant 0 : index
    %c0_4 = arith.constant 0 : index
    %2 = vector.load %arg2[%c0_2, %c0_3, %c0_4] : memref<1x256x128xbf16, #tpu.memory_space<vmem>>, vector<1x256x128xbf16>
    %3 = vector.shape_cast %2 : vector<1x256x128xbf16> to vector<256x128xbf16>
    %cst = arith.constant dense<0.000000e+00> : vector<32x128xf32>
    %4 = tpu.matmul %1, %3, %cst {dimension_numbers = #tpu.dot_dimension_numbers<[1], [0], [0], [1], [0, 0, 1, 1], [], []>} : vector<32x256xbf16>, vector<256x128xbf16>, vector<32x128xf32> -> vector<32x128xf32>
    %cst_5 = arith.constant dense<0.000000e+00> : vector<128xf32>
    %5 = vector.multi_reduction <add>, %4, %cst_5 [0] : vector<32x128xf32> to vector<128xf32>
    %6 = vector.shape_cast %5 : vector<128xf32> to vector<1x128xf32>
    %7 = arith.mulf %4, %4 : vector<32x128xf32>
    %cst_6 = arith.constant dense<0.000000e+00> : vector<128xf32>
    %8 = vector.multi_reduction <add>, %7, %cst_6 [0] : vector<32x128xf32> to vector<128xf32>
    %9 = vector.shape_cast %8 : vector<128xf32> to vector<1x128xf32>
    %cst_7 = arith.constant 3.125000e-02 : f32
    %10 = vector.broadcast %cst_7 : f32 to vector<1x128xf32>
    %11 = arith.mulf %6, %10 : vector<1x128xf32>
    %cst_8 = arith.constant 3.125000e-02 : f32
    %12 = vector.broadcast %cst_8 : f32 to vector<1x128xf32>
    %13 = arith.mulf %9, %12 : vector<1x128xf32>
    %14 = arith.mulf %11, %11 : vector<1x128xf32>
    %15 = arith.subf %13, %14 : vector<1x128xf32>
    %cst_9 = arith.constant 0.000000e+00 : f32
    %16 = vector.broadcast %cst_9 : f32 to vector<1x128xf32>
    %17 = arith.maximumf %15, %16 : vector<1x128xf32>
    %cst_10 = arith.constant 9.99999974E-6 : f32
    %18 = vector.broadcast %cst_10 : f32 to vector<1x128xf32>
    %19 = arith.addf %17, %18 : vector<1x128xf32>
    %20 = math.rsqrt %19 : vector<1x128xf32>
    %cst_11 = arith.constant 0.000000e+00 : f32
    %21 = vector.broadcast %cst_11 : f32 to vector<1x128xf32>
    %22 = arith.subf %21, %11 : vector<1x128xf32>
    %23 = arith.mulf %22, %20 : vector<1x128xf32>
    %24 = vector.broadcast %20 : vector<1x128xf32> to vector<32x128xf32>
    %25 = arith.mulf %4, %24 : vector<32x128xf32>
    %26 = vector.broadcast %23 : vector<1x128xf32> to vector<32x128xf32>
    %27 = arith.addf %25, %26 : vector<32x128xf32>
    %cst_12 = arith.constant 0.000000e+00 : f32
    %28 = vector.broadcast %cst_12 : f32 to vector<32x128xf32>
    %29 = arith.maximumf %27, %28 : vector<32x128xf32>
    %30 = arith.truncf %29 : vector<32x128xf32> to vector<32x128xbf16>
    %c0_13 = arith.constant 0 : index
    %c0_14 = arith.constant 0 : index
    %c0_15 = arith.constant 0 : index
    %31 = vector.load %arg3[%c0_13, %c0_14, %c0_15] : memref<1x32x128xbf16, #tpu.memory_space<vmem>>, vector<1x32x128xbf16>
    %32 = vector.shape_cast %31 : vector<1x32x128xbf16> to vector<32x128xbf16>
    %33 = vector.shape_cast %30 : vector<32x128xbf16> to vector<1x32x128xbf16>
    tpu.vector_store %arg3[%c0_13, %c0_14, %c0_15], %33 {strides = array<i32>} : memref<1x32x128xbf16, #tpu.memory_space<vmem>>, vector<1x32x128xbf16>,
    return
  }
  func.func @transform_0(%arg0: i32) -> (i32, i32, i32) {
    %c0_i32 = arith.constant 0 : i32
    %c0_i32_0 = arith.constant 0 : i32
    %c0_i32_1 = arith.constant 0 : i32
    %c0_i32_2 = arith.constant 0 : i32
    return %c0_i32, %c0_i32_0, %c0_i32_1 : i32, i32, i32
  }
  func.func @transform_1(%arg0: i32) -> (i32, i32, i32) {
    %c0_i32 = arith.constant 0 : i32
    %c0_i32_0 = arith.constant 0 : i32
    %c0_i32_1 = arith.constant 0 : i32
    %c0_i32_2 = arith.constant 0 : i32
    return %c0_i32, %c0_i32_0, %c0_i32_1 : i32, i32, i32
  }
  func.func @transform_2(%arg0: i32) -> (i32, i32, i32) {
    %c0_i32 = arith.constant 0 : i32
    %c0_i32_0 = arith.constant 0 : i32
    %c0_i32_1 = arith.constant 0 : i32
    %c0_i32_2 = arith.constant 0 : i32
    return %c0_i32, %c0_i32_0, %c0_i32_1 : i32, i32, i32
  }
}

module attributes {stable_mosaic.version = 11 : i64} {
  func.func @_stacked_mm_bn_relu_kernel(%arg0: i32, %arg1: memref<4x32x256xbf16, #tpu.memory_space<vmem>>, %arg2: memref<4x256x128xbf16, #tpu.memory_space<vmem>>, %arg3: memref<4x32x128xbf16, #tpu.memory_space<vmem>>) attributes {dimension_semantics = [#tpu.dimension_semantics<arbitrary>], iteration_bounds = array<i64: 1>, scalar_prefetch = 0 : i64, scratch_operands = 0 : i64, tpu.core_type = #tpu.core_type<tc>, window_params = [{pipeline_mode = #tpu.pipeline_mode<synchronous>, transform_indices = @transform_0, window_bounds = array<i64: 4, 32, 256>}, {pipeline_mode = #tpu.pipeline_mode<synchronous>, transform_indices = @transform_1, window_bounds = array<i64: 4, 256, 128>}, {pipeline_mode = #tpu.pipeline_mode<synchronous>, transform_indices = @transform_2, window_bounds = array<i64: 4, 32, 128>}]} {
    %c0 = arith.constant 0 : index
    %c0_0 = arith.constant 0 : index
    %c0_1 = arith.constant 0 : index
    %0 = vector.load %arg1[%c0, %c0_0, %c0_1] : memref<4x32x256xbf16, #tpu.memory_space<vmem>>, vector<1x32x256xbf16>
    %1 = vector.shape_cast %0 : vector<1x32x256xbf16> to vector<32x256xbf16>
    %c0_2 = arith.constant 0 : index
    %c0_3 = arith.constant 0 : index
    %c0_4 = arith.constant 0 : index
    %2 = vector.load %arg2[%c0_2, %c0_3, %c0_4] : memref<4x256x128xbf16, #tpu.memory_space<vmem>>, vector<1x256x128xbf16>
    %3 = vector.shape_cast %2 : vector<1x256x128xbf16> to vector<256x128xbf16>
    %cst = arith.constant dense<0.000000e+00> : vector<32x128xf32>
    %4 = tpu.matmul %1, %3, %cst {dimension_numbers = #tpu.dot_dimension_numbers<[1], [0], [0], [1], [0, 0, 1, 1], [], []>} : vector<32x256xbf16>, vector<256x128xbf16>, vector<32x128xf32> -> vector<32x128xf32>
    %cst_5 = arith.constant dense<0.000000e+00> : vector<128xf32>
    %5 = vector.multi_reduction <add>, %4, %cst_5 [0] : vector<32x128xf32> to vector<128xf32>
    %6 = vector.shape_cast %5 : vector<128xf32> to vector<1x128xf32>
    %7 = arith.mulf %4, %4 : vector<32x128xf32>
    %cst_6 = arith.constant dense<0.000000e+00> : vector<128xf32>
    %8 = vector.multi_reduction <add>, %7, %cst_6 [0] : vector<32x128xf32> to vector<128xf32>
    %9 = vector.shape_cast %8 : vector<128xf32> to vector<1x128xf32>
    %c1 = arith.constant 1 : index
    %c0_7 = arith.constant 0 : index
    %c0_8 = arith.constant 0 : index
    %10 = vector.load %arg1[%c1, %c0_7, %c0_8] : memref<4x32x256xbf16, #tpu.memory_space<vmem>>, vector<1x32x256xbf16>
    %11 = vector.shape_cast %10 : vector<1x32x256xbf16> to vector<32x256xbf16>
    %c1_9 = arith.constant 1 : index
    %c0_10 = arith.constant 0 : index
    %c0_11 = arith.constant 0 : index
    %12 = vector.load %arg2[%c1_9, %c0_10, %c0_11] : memref<4x256x128xbf16, #tpu.memory_space<vmem>>, vector<1x256x128xbf16>
    %13 = vector.shape_cast %12 : vector<1x256x128xbf16> to vector<256x128xbf16>
    %cst_12 = arith.constant dense<0.000000e+00> : vector<32x128xf32>
    %14 = tpu.matmul %11, %13, %cst_12 {dimension_numbers = #tpu.dot_dimension_numbers<[1], [0], [0], [1], [0, 0, 1, 1], [], []>} : vector<32x256xbf16>, vector<256x128xbf16>, vector<32x128xf32> -> vector<32x128xf32>
    %cst_13 = arith.constant dense<0.000000e+00> : vector<128xf32>
    %15 = vector.multi_reduction <add>, %14, %cst_13 [0] : vector<32x128xf32> to vector<128xf32>
    %16 = vector.shape_cast %15 : vector<128xf32> to vector<1x128xf32>
    %17 = arith.mulf %14, %14 : vector<32x128xf32>
    %cst_14 = arith.constant dense<0.000000e+00> : vector<128xf32>
    %18 = vector.multi_reduction <add>, %17, %cst_14 [0] : vector<32x128xf32> to vector<128xf32>
    %19 = vector.shape_cast %18 : vector<128xf32> to vector<1x128xf32>
    %20 = arith.addf %6, %16 : vector<1x128xf32>
    %21 = arith.addf %9, %19 : vector<1x128xf32>
    %c2 = arith.constant 2 : index
    %c0_15 = arith.constant 0 : index
    %c0_16 = arith.constant 0 : index
    %22 = vector.load %arg1[%c2, %c0_15, %c0_16] : memref<4x32x256xbf16, #tpu.memory_space<vmem>>, vector<1x32x256xbf16>
    %23 = vector.shape_cast %22 : vector<1x32x256xbf16> to vector<32x256xbf16>
    %c2_17 = arith.constant 2 : index
    %c0_18 = arith.constant 0 : index
    %c0_19 = arith.constant 0 : index
    %24 = vector.load %arg2[%c2_17, %c0_18, %c0_19] : memref<4x256x128xbf16, #tpu.memory_space<vmem>>, vector<1x256x128xbf16>
    %25 = vector.shape_cast %24 : vector<1x256x128xbf16> to vector<256x128xbf16>
    %cst_20 = arith.constant dense<0.000000e+00> : vector<32x128xf32>
    %26 = tpu.matmul %23, %25, %cst_20 {dimension_numbers = #tpu.dot_dimension_numbers<[1], [0], [0], [1], [0, 0, 1, 1], [], []>} : vector<32x256xbf16>, vector<256x128xbf16>, vector<32x128xf32> -> vector<32x128xf32>
    %cst_21 = arith.constant dense<0.000000e+00> : vector<128xf32>
    %27 = vector.multi_reduction <add>, %26, %cst_21 [0] : vector<32x128xf32> to vector<128xf32>
    %28 = vector.shape_cast %27 : vector<128xf32> to vector<1x128xf32>
    %29 = arith.mulf %26, %26 : vector<32x128xf32>
    %cst_22 = arith.constant dense<0.000000e+00> : vector<128xf32>
    %30 = vector.multi_reduction <add>, %29, %cst_22 [0] : vector<32x128xf32> to vector<128xf32>
    %31 = vector.shape_cast %30 : vector<128xf32> to vector<1x128xf32>
    %32 = arith.addf %20, %28 : vector<1x128xf32>
    %33 = arith.addf %21, %31 : vector<1x128xf32>
    %c3 = arith.constant 3 : index
    %c0_23 = arith.constant 0 : index
    %c0_24 = arith.constant 0 : index
    %34 = vector.load %arg1[%c3, %c0_23, %c0_24] : memref<4x32x256xbf16, #tpu.memory_space<vmem>>, vector<1x32x256xbf16>
    %35 = vector.shape_cast %34 : vector<1x32x256xbf16> to vector<32x256xbf16>
    %c3_25 = arith.constant 3 : index
    %c0_26 = arith.constant 0 : index
    %c0_27 = arith.constant 0 : index
    %36 = vector.load %arg2[%c3_25, %c0_26, %c0_27] : memref<4x256x128xbf16, #tpu.memory_space<vmem>>, vector<1x256x128xbf16>
    %37 = vector.shape_cast %36 : vector<1x256x128xbf16> to vector<256x128xbf16>
    %cst_28 = arith.constant dense<0.000000e+00> : vector<32x128xf32>
    %38 = tpu.matmul %35, %37, %cst_28 {dimension_numbers = #tpu.dot_dimension_numbers<[1], [0], [0], [1], [0, 0, 1, 1], [], []>} : vector<32x256xbf16>, vector<256x128xbf16>, vector<32x128xf32> -> vector<32x128xf32>
    %cst_29 = arith.constant dense<0.000000e+00> : vector<128xf32>
    %39 = vector.multi_reduction <add>, %38, %cst_29 [0] : vector<32x128xf32> to vector<128xf32>
    %40 = vector.shape_cast %39 : vector<128xf32> to vector<1x128xf32>
    %41 = arith.mulf %38, %38 : vector<32x128xf32>
    %cst_30 = arith.constant dense<0.000000e+00> : vector<128xf32>
    %42 = vector.multi_reduction <add>, %41, %cst_30 [0] : vector<32x128xf32> to vector<128xf32>
    %43 = vector.shape_cast %42 : vector<128xf32> to vector<1x128xf32>
    %44 = arith.addf %32, %40 : vector<1x128xf32>
    %45 = arith.addf %33, %43 : vector<1x128xf32>
    %cst_31 = arith.constant 7.812500e-03 : f32
    %46 = vector.broadcast %cst_31 : f32 to vector<1x128xf32>
    %47 = arith.mulf %44, %46 : vector<1x128xf32>
    %cst_32 = arith.constant 7.812500e-03 : f32
    %48 = vector.broadcast %cst_32 : f32 to vector<1x128xf32>
    %49 = arith.mulf %45, %48 : vector<1x128xf32>
    %50 = arith.mulf %47, %47 : vector<1x128xf32>
    %51 = arith.subf %49, %50 : vector<1x128xf32>
    %cst_33 = arith.constant 0.000000e+00 : f32
    %52 = vector.broadcast %cst_33 : f32 to vector<1x128xf32>
    %53 = arith.maximumf %51, %52 : vector<1x128xf32>
    %cst_34 = arith.constant 9.99999974E-6 : f32
    %54 = vector.broadcast %cst_34 : f32 to vector<1x128xf32>
    %55 = arith.addf %53, %54 : vector<1x128xf32>
    %56 = math.rsqrt %55 : vector<1x128xf32>
    %cst_35 = arith.constant 0.000000e+00 : f32
    %57 = vector.broadcast %cst_35 : f32 to vector<1x128xf32>
    %58 = arith.subf %57, %47 : vector<1x128xf32>
    %59 = arith.mulf %58, %56 : vector<1x128xf32>
    %60 = vector.broadcast %56 : vector<1x128xf32> to vector<32x128xf32>
    %61 = arith.mulf %4, %60 : vector<32x128xf32>
    %62 = vector.broadcast %59 : vector<1x128xf32> to vector<32x128xf32>
    %63 = arith.addf %61, %62 : vector<32x128xf32>
    %cst_36 = arith.constant 0.000000e+00 : f32
    %64 = vector.broadcast %cst_36 : f32 to vector<32x128xf32>
    %65 = arith.maximumf %63, %64 : vector<32x128xf32>
    %66 = arith.truncf %65 : vector<32x128xf32> to vector<32x128xbf16>
    %c0_37 = arith.constant 0 : index
    %c0_38 = arith.constant 0 : index
    %c0_39 = arith.constant 0 : index
    %67 = vector.load %arg3[%c0_37, %c0_38, %c0_39] : memref<4x32x128xbf16, #tpu.memory_space<vmem>>, vector<1x32x128xbf16>
    %68 = vector.shape_cast %67 : vector<1x32x128xbf16> to vector<32x128xbf16>
    %69 = vector.shape_cast %66 : vector<32x128xbf16> to vector<1x32x128xbf16>
    tpu.vector_store %arg3[%c0_37, %c0_38, %c0_39], %69 {strides = array<i32>} : memref<4x32x128xbf16, #tpu.memory_space<vmem>>, vector<1x32x128xbf16>,
    %70 = vector.broadcast %56 : vector<1x128xf32> to vector<32x128xf32>
    %71 = arith.mulf %14, %70 : vector<32x128xf32>
    %72 = vector.broadcast %59 : vector<1x128xf32> to vector<32x128xf32>
    %73 = arith.addf %71, %72 : vector<32x128xf32>
    %cst_40 = arith.constant 0.000000e+00 : f32
    %74 = vector.broadcast %cst_40 : f32 to vector<32x128xf32>
    %75 = arith.maximumf %73, %74 : vector<32x128xf32>
    %76 = arith.truncf %75 : vector<32x128xf32> to vector<32x128xbf16>
    %c1_41 = arith.constant 1 : index
    %c0_42 = arith.constant 0 : index
    %c0_43 = arith.constant 0 : index
    %77 = vector.load %arg3[%c1_41, %c0_42, %c0_43] : memref<4x32x128xbf16, #tpu.memory_space<vmem>>, vector<1x32x128xbf16>
    %78 = vector.shape_cast %77 : vector<1x32x128xbf16> to vector<32x128xbf16>
    %79 = vector.shape_cast %76 : vector<32x128xbf16> to vector<1x32x128xbf16>
    tpu.vector_store %arg3[%c1_41, %c0_42, %c0_43], %79 {strides = array<i32>} : memref<4x32x128xbf16, #tpu.memory_space<vmem>>, vector<1x32x128xbf16>,
    %80 = vector.broadcast %56 : vector<1x128xf32> to vector<32x128xf32>
    %81 = arith.mulf %26, %80 : vector<32x128xf32>
    %82 = vector.broadcast %59 : vector<1x128xf32> to vector<32x128xf32>
    %83 = arith.addf %81, %82 : vector<32x128xf32>
    %cst_44 = arith.constant 0.000000e+00 : f32
    %84 = vector.broadcast %cst_44 : f32 to vector<32x128xf32>
    %85 = arith.maximumf %83, %84 : vector<32x128xf32>
    %86 = arith.truncf %85 : vector<32x128xf32> to vector<32x128xbf16>
    %c2_45 = arith.constant 2 : index
    %c0_46 = arith.constant 0 : index
    %c0_47 = arith.constant 0 : index
    %87 = vector.load %arg3[%c2_45, %c0_46, %c0_47] : memref<4x32x128xbf16, #tpu.memory_space<vmem>>, vector<1x32x128xbf16>
    %88 = vector.shape_cast %87 : vector<1x32x128xbf16> to vector<32x128xbf16>
    %89 = vector.shape_cast %86 : vector<32x128xbf16> to vector<1x32x128xbf16>
    tpu.vector_store %arg3[%c2_45, %c0_46, %c0_47], %89 {strides = array<i32>} : memref<4x32x128xbf16, #tpu.memory_space<vmem>>, vector<1x32x128xbf16>,
    %90 = vector.broadcast %56 : vector<1x128xf32> to vector<32x128xf32>
    %91 = arith.mulf %38, %90 : vector<32x128xf32>
    %92 = vector.broadcast %59 : vector<1x128xf32> to vector<32x128xf32>
    %93 = arith.addf %91, %92 : vector<32x128xf32>
    %cst_48 = arith.constant 0.000000e+00 : f32
    %94 = vector.broadcast %cst_48 : f32 to vector<32x128xf32>
    %95 = arith.maximumf %93, %94 : vector<32x128xf32>
    %96 = arith.truncf %95 : vector<32x128xf32> to vector<32x128xbf16>
    %c3_49 = arith.constant 3 : index
    %c0_50 = arith.constant 0 : index
    %c0_51 = arith.constant 0 : index
    %97 = vector.load %arg3[%c3_49, %c0_50, %c0_51] : memref<4x32x128xbf16, #tpu.memory_space<vmem>>, vector<1x32x128xbf16>
    %98 = vector.shape_cast %97 : vector<1x32x128xbf16> to vector<32x128xbf16>
    %99 = vector.shape_cast %96 : vector<32x128xbf16> to vector<1x32x128xbf16>
    tpu.vector_store %arg3[%c3_49, %c0_50, %c0_51], %99 {strides = array<i32>} : memref<4x32x128xbf16, #tpu.memory_space<vmem>>, vector<1x32x128xbf16>,
    return
  }
  func.func @transform_0(%arg0: i32) -> (i32, i32, i32) {
    %c0_i32 = arith.constant 0 : i32
    %c0_i32_0 = arith.constant 0 : i32
    %c0_i32_1 = arith.constant 0 : i32
    %c0_i32_2 = arith.constant 0 : i32
    return %c0_i32, %c0_i32_0, %c0_i32_1 : i32, i32, i32
  }
  func.func @transform_1(%arg0: i32) -> (i32, i32, i32) {
    %c0_i32 = arith.constant 0 : i32
    %c0_i32_0 = arith.constant 0 : i32
    %c0_i32_1 = arith.constant 0 : i32
    %c0_i32_2 = arith.constant 0 : i32
    return %c0_i32, %c0_i32_0, %c0_i32_1 : i32, i32, i32
  }
  func.func @transform_2(%arg0: i32) -> (i32, i32, i32) {
    %c0_i32 = arith.constant 0 : i32
    %c0_i32_0 = arith.constant 0 : i32
    %c0_i32_1 = arith.constant 0 : i32
    %c0_i32_2 = arith.constant 0 : i32
    return %c0_i32, %c0_i32_0, %c0_i32_1 : i32, i32, i32
  }
}

module attributes {stable_mosaic.version = 11 : i64} {
  func.func @_stacked_mm_bn_relu_kernel(%arg0: i32, %arg1: memref<4x128x128xbf16, #tpu.memory_space<vmem>>, %arg2: memref<4x128x128xbf16, #tpu.memory_space<vmem>>, %arg3: memref<4x128x128xbf16, #tpu.memory_space<vmem>>) attributes {dimension_semantics = [#tpu.dimension_semantics<arbitrary>], iteration_bounds = array<i64: 1>, scalar_prefetch = 0 : i64, scratch_operands = 0 : i64, tpu.core_type = #tpu.core_type<tc>, window_params = [{pipeline_mode = #tpu.pipeline_mode<synchronous>, transform_indices = @transform_0, window_bounds = array<i64: 4, 128, 128>}, {pipeline_mode = #tpu.pipeline_mode<synchronous>, transform_indices = @transform_1, window_bounds = array<i64: 4, 128, 128>}, {pipeline_mode = #tpu.pipeline_mode<synchronous>, transform_indices = @transform_2, window_bounds = array<i64: 4, 128, 128>}]} {
    %c0 = arith.constant 0 : index
    %c0_0 = arith.constant 0 : index
    %c0_1 = arith.constant 0 : index
    %0 = vector.load %arg1[%c0, %c0_0, %c0_1] : memref<4x128x128xbf16, #tpu.memory_space<vmem>>, vector<1x128x128xbf16>
    %1 = vector.shape_cast %0 : vector<1x128x128xbf16> to vector<128x128xbf16>
    %c0_2 = arith.constant 0 : index
    %c0_3 = arith.constant 0 : index
    %c0_4 = arith.constant 0 : index
    %2 = vector.load %arg2[%c0_2, %c0_3, %c0_4] : memref<4x128x128xbf16, #tpu.memory_space<vmem>>, vector<1x128x128xbf16>
    %3 = vector.shape_cast %2 : vector<1x128x128xbf16> to vector<128x128xbf16>
    %cst = arith.constant dense<0.000000e+00> : vector<128x128xf32>
    %4 = tpu.matmul %1, %3, %cst {dimension_numbers = #tpu.dot_dimension_numbers<[1], [0], [0], [1], [0, 0, 1, 1], [], []>} : vector<128x128xbf16>, vector<128x128xbf16>, vector<128x128xf32> -> vector<128x128xf32>
    %cst_5 = arith.constant dense<0.000000e+00> : vector<128xf32>
    %5 = vector.multi_reduction <add>, %4, %cst_5 [0] : vector<128x128xf32> to vector<128xf32>
    %6 = vector.shape_cast %5 : vector<128xf32> to vector<1x128xf32>
    %7 = arith.mulf %4, %4 : vector<128x128xf32>
    %cst_6 = arith.constant dense<0.000000e+00> : vector<128xf32>
    %8 = vector.multi_reduction <add>, %7, %cst_6 [0] : vector<128x128xf32> to vector<128xf32>
    %9 = vector.shape_cast %8 : vector<128xf32> to vector<1x128xf32>
    %c1 = arith.constant 1 : index
    %c0_7 = arith.constant 0 : index
    %c0_8 = arith.constant 0 : index
    %10 = vector.load %arg1[%c1, %c0_7, %c0_8] : memref<4x128x128xbf16, #tpu.memory_space<vmem>>, vector<1x128x128xbf16>
    %11 = vector.shape_cast %10 : vector<1x128x128xbf16> to vector<128x128xbf16>
    %c1_9 = arith.constant 1 : index
    %c0_10 = arith.constant 0 : index
    %c0_11 = arith.constant 0 : index
    %12 = vector.load %arg2[%c1_9, %c0_10, %c0_11] : memref<4x128x128xbf16, #tpu.memory_space<vmem>>, vector<1x128x128xbf16>
    %13 = vector.shape_cast %12 : vector<1x128x128xbf16> to vector<128x128xbf16>
    %cst_12 = arith.constant dense<0.000000e+00> : vector<128x128xf32>
    %14 = tpu.matmul %11, %13, %cst_12 {dimension_numbers = #tpu.dot_dimension_numbers<[1], [0], [0], [1], [0, 0, 1, 1], [], []>} : vector<128x128xbf16>, vector<128x128xbf16>, vector<128x128xf32> -> vector<128x128xf32>
    %cst_13 = arith.constant dense<0.000000e+00> : vector<128xf32>
    %15 = vector.multi_reduction <add>, %14, %cst_13 [0] : vector<128x128xf32> to vector<128xf32>
    %16 = vector.shape_cast %15 : vector<128xf32> to vector<1x128xf32>
    %17 = arith.mulf %14, %14 : vector<128x128xf32>
    %cst_14 = arith.constant dense<0.000000e+00> : vector<128xf32>
    %18 = vector.multi_reduction <add>, %17, %cst_14 [0] : vector<128x128xf32> to vector<128xf32>
    %19 = vector.shape_cast %18 : vector<128xf32> to vector<1x128xf32>
    %20 = arith.addf %6, %16 : vector<1x128xf32>
    %21 = arith.addf %9, %19 : vector<1x128xf32>
    %c2 = arith.constant 2 : index
    %c0_15 = arith.constant 0 : index
    %c0_16 = arith.constant 0 : index
    %22 = vector.load %arg1[%c2, %c0_15, %c0_16] : memref<4x128x128xbf16, #tpu.memory_space<vmem>>, vector<1x128x128xbf16>
    %23 = vector.shape_cast %22 : vector<1x128x128xbf16> to vector<128x128xbf16>
    %c2_17 = arith.constant 2 : index
    %c0_18 = arith.constant 0 : index
    %c0_19 = arith.constant 0 : index
    %24 = vector.load %arg2[%c2_17, %c0_18, %c0_19] : memref<4x128x128xbf16, #tpu.memory_space<vmem>>, vector<1x128x128xbf16>
    %25 = vector.shape_cast %24 : vector<1x128x128xbf16> to vector<128x128xbf16>
    %cst_20 = arith.constant dense<0.000000e+00> : vector<128x128xf32>
    %26 = tpu.matmul %23, %25, %cst_20 {dimension_numbers = #tpu.dot_dimension_numbers<[1], [0], [0], [1], [0, 0, 1, 1], [], []>} : vector<128x128xbf16>, vector<128x128xbf16>, vector<128x128xf32> -> vector<128x128xf32>
    %cst_21 = arith.constant dense<0.000000e+00> : vector<128xf32>
    %27 = vector.multi_reduction <add>, %26, %cst_21 [0] : vector<128x128xf32> to vector<128xf32>
    %28 = vector.shape_cast %27 : vector<128xf32> to vector<1x128xf32>
    %29 = arith.mulf %26, %26 : vector<128x128xf32>
    %cst_22 = arith.constant dense<0.000000e+00> : vector<128xf32>
    %30 = vector.multi_reduction <add>, %29, %cst_22 [0] : vector<128x128xf32> to vector<128xf32>
    %31 = vector.shape_cast %30 : vector<128xf32> to vector<1x128xf32>
    %32 = arith.addf %20, %28 : vector<1x128xf32>
    %33 = arith.addf %21, %31 : vector<1x128xf32>
    %c3 = arith.constant 3 : index
    %c0_23 = arith.constant 0 : index
    %c0_24 = arith.constant 0 : index
    %34 = vector.load %arg1[%c3, %c0_23, %c0_24] : memref<4x128x128xbf16, #tpu.memory_space<vmem>>, vector<1x128x128xbf16>
    %35 = vector.shape_cast %34 : vector<1x128x128xbf16> to vector<128x128xbf16>
    %c3_25 = arith.constant 3 : index
    %c0_26 = arith.constant 0 : index
    %c0_27 = arith.constant 0 : index
    %36 = vector.load %arg2[%c3_25, %c0_26, %c0_27] : memref<4x128x128xbf16, #tpu.memory_space<vmem>>, vector<1x128x128xbf16>
    %37 = vector.shape_cast %36 : vector<1x128x128xbf16> to vector<128x128xbf16>
    %cst_28 = arith.constant dense<0.000000e+00> : vector<128x128xf32>
    %38 = tpu.matmul %35, %37, %cst_28 {dimension_numbers = #tpu.dot_dimension_numbers<[1], [0], [0], [1], [0, 0, 1, 1], [], []>} : vector<128x128xbf16>, vector<128x128xbf16>, vector<128x128xf32> -> vector<128x128xf32>
    %cst_29 = arith.constant dense<0.000000e+00> : vector<128xf32>
    %39 = vector.multi_reduction <add>, %38, %cst_29 [0] : vector<128x128xf32> to vector<128xf32>
    %40 = vector.shape_cast %39 : vector<128xf32> to vector<1x128xf32>
    %41 = arith.mulf %38, %38 : vector<128x128xf32>
    %cst_30 = arith.constant dense<0.000000e+00> : vector<128xf32>
    %42 = vector.multi_reduction <add>, %41, %cst_30 [0] : vector<128x128xf32> to vector<128xf32>
    %43 = vector.shape_cast %42 : vector<128xf32> to vector<1x128xf32>
    %44 = arith.addf %32, %40 : vector<1x128xf32>
    %45 = arith.addf %33, %43 : vector<1x128xf32>
    %cst_31 = arith.constant 0.001953125 : f32
    %46 = vector.broadcast %cst_31 : f32 to vector<1x128xf32>
    %47 = arith.mulf %44, %46 : vector<1x128xf32>
    %cst_32 = arith.constant 0.001953125 : f32
    %48 = vector.broadcast %cst_32 : f32 to vector<1x128xf32>
    %49 = arith.mulf %45, %48 : vector<1x128xf32>
    %50 = arith.mulf %47, %47 : vector<1x128xf32>
    %51 = arith.subf %49, %50 : vector<1x128xf32>
    %cst_33 = arith.constant 0.000000e+00 : f32
    %52 = vector.broadcast %cst_33 : f32 to vector<1x128xf32>
    %53 = arith.maximumf %51, %52 : vector<1x128xf32>
    %cst_34 = arith.constant 9.99999974E-6 : f32
    %54 = vector.broadcast %cst_34 : f32 to vector<1x128xf32>
    %55 = arith.addf %53, %54 : vector<1x128xf32>
    %56 = math.rsqrt %55 : vector<1x128xf32>
    %cst_35 = arith.constant 0.000000e+00 : f32
    %57 = vector.broadcast %cst_35 : f32 to vector<1x128xf32>
    %58 = arith.subf %57, %47 : vector<1x128xf32>
    %59 = arith.mulf %58, %56 : vector<1x128xf32>
    %60 = vector.broadcast %56 : vector<1x128xf32> to vector<128x128xf32>
    %61 = arith.mulf %4, %60 : vector<128x128xf32>
    %62 = vector.broadcast %59 : vector<1x128xf32> to vector<128x128xf32>
    %63 = arith.addf %61, %62 : vector<128x128xf32>
    %cst_36 = arith.constant 0.000000e+00 : f32
    %64 = vector.broadcast %cst_36 : f32 to vector<128x128xf32>
    %65 = arith.maximumf %63, %64 : vector<128x128xf32>
    %66 = arith.truncf %65 : vector<128x128xf32> to vector<128x128xbf16>
    %c0_37 = arith.constant 0 : index
    %c0_38 = arith.constant 0 : index
    %c0_39 = arith.constant 0 : index
    %67 = vector.load %arg3[%c0_37, %c0_38, %c0_39] : memref<4x128x128xbf16, #tpu.memory_space<vmem>>, vector<1x128x128xbf16>
    %68 = vector.shape_cast %67 : vector<1x128x128xbf16> to vector<128x128xbf16>
    %69 = vector.shape_cast %66 : vector<128x128xbf16> to vector<1x128x128xbf16>
    tpu.vector_store %arg3[%c0_37, %c0_38, %c0_39], %69 {strides = array<i32>} : memref<4x128x128xbf16, #tpu.memory_space<vmem>>, vector<1x128x128xbf16>,
    %70 = vector.broadcast %56 : vector<1x128xf32> to vector<128x128xf32>
    %71 = arith.mulf %14, %70 : vector<128x128xf32>
    %72 = vector.broadcast %59 : vector<1x128xf32> to vector<128x128xf32>
    %73 = arith.addf %71, %72 : vector<128x128xf32>
    %cst_40 = arith.constant 0.000000e+00 : f32
    %74 = vector.broadcast %cst_40 : f32 to vector<128x128xf32>
    %75 = arith.maximumf %73, %74 : vector<128x128xf32>
    %76 = arith.truncf %75 : vector<128x128xf32> to vector<128x128xbf16>
    %c1_41 = arith.constant 1 : index
    %c0_42 = arith.constant 0 : index
    %c0_43 = arith.constant 0 : index
    %77 = vector.load %arg3[%c1_41, %c0_42, %c0_43] : memref<4x128x128xbf16, #tpu.memory_space<vmem>>, vector<1x128x128xbf16>
    %78 = vector.shape_cast %77 : vector<1x128x128xbf16> to vector<128x128xbf16>
    %79 = vector.shape_cast %76 : vector<128x128xbf16> to vector<1x128x128xbf16>
    tpu.vector_store %arg3[%c1_41, %c0_42, %c0_43], %79 {strides = array<i32>} : memref<4x128x128xbf16, #tpu.memory_space<vmem>>, vector<1x128x128xbf16>,
    %80 = vector.broadcast %56 : vector<1x128xf32> to vector<128x128xf32>
    %81 = arith.mulf %26, %80 : vector<128x128xf32>
    %82 = vector.broadcast %59 : vector<1x128xf32> to vector<128x128xf32>
    %83 = arith.addf %81, %82 : vector<128x128xf32>
    %cst_44 = arith.constant 0.000000e+00 : f32
    %84 = vector.broadcast %cst_44 : f32 to vector<128x128xf32>
    %85 = arith.maximumf %83, %84 : vector<128x128xf32>
    %86 = arith.truncf %85 : vector<128x128xf32> to vector<128x128xbf16>
    %c2_45 = arith.constant 2 : index
    %c0_46 = arith.constant 0 : index
    %c0_47 = arith.constant 0 : index
    %87 = vector.load %arg3[%c2_45, %c0_46, %c0_47] : memref<4x128x128xbf16, #tpu.memory_space<vmem>>, vector<1x128x128xbf16>
    %88 = vector.shape_cast %87 : vector<1x128x128xbf16> to vector<128x128xbf16>
    %89 = vector.shape_cast %86 : vector<128x128xbf16> to vector<1x128x128xbf16>
    tpu.vector_store %arg3[%c2_45, %c0_46, %c0_47], %89 {strides = array<i32>} : memref<4x128x128xbf16, #tpu.memory_space<vmem>>, vector<1x128x128xbf16>,
    %90 = vector.broadcast %56 : vector<1x128xf32> to vector<128x128xf32>
    %91 = arith.mulf %38, %90 : vector<128x128xf32>
    %92 = vector.broadcast %59 : vector<1x128xf32> to vector<128x128xf32>
    %93 = arith.addf %91, %92 : vector<128x128xf32>
    %cst_48 = arith.constant 0.000000e+00 : f32
    %94 = vector.broadcast %cst_48 : f32 to vector<128x128xf32>
    %95 = arith.maximumf %93, %94 : vector<128x128xf32>
    %96 = arith.truncf %95 : vector<128x128xf32> to vector<128x128xbf16>
    %c3_49 = arith.constant 3 : index
    %c0_50 = arith.constant 0 : index
    %c0_51 = arith.constant 0 : index
    %97 = vector.load %arg3[%c3_49, %c0_50, %c0_51] : memref<4x128x128xbf16, #tpu.memory_space<vmem>>, vector<1x128x128xbf16>
    %98 = vector.shape_cast %97 : vector<1x128x128xbf16> to vector<128x128xbf16>
    %99 = vector.shape_cast %96 : vector<128x128xbf16> to vector<1x128x128xbf16>
    tpu.vector_store %arg3[%c3_49, %c0_50, %c0_51], %99 {strides = array<i32>} : memref<4x128x128xbf16, #tpu.memory_space<vmem>>, vector<1x128x128xbf16>,
    return
  }
  func.func @transform_0(%arg0: i32) -> (i32, i32, i32) {
    %c0_i32 = arith.constant 0 : i32
    %c0_i32_0 = arith.constant 0 : i32
    %c0_i32_1 = arith.constant 0 : i32
    %c0_i32_2 = arith.constant 0 : i32
    return %c0_i32, %c0_i32_0, %c0_i32_1 : i32, i32, i32
  }
  func.func @transform_1(%arg0: i32) -> (i32, i32, i32) {
    %c0_i32 = arith.constant 0 : i32
    %c0_i32_0 = arith.constant 0 : i32
    %c0_i32_1 = arith.constant 0 : i32
    %c0_i32_2 = arith.constant 0 : i32
    return %c0_i32, %c0_i32_0, %c0_i32_1 : i32, i32, i32
  }
  func.func @transform_2(%arg0: i32) -> (i32, i32, i32) {
    %c0_i32 = arith.constant 0 : i32
    %c0_i32_0 = arith.constant 0 : i32
    %c0_i32_1 = arith.constant 0 : i32
    %c0_i32_2 = arith.constant 0 : i32
    return %c0_i32, %c0_i32_0, %c0_i32_1 : i32, i32, i32
  }
}

module attributes {stable_mosaic.version = 11 : i64} {
  func.func @_stacked_mm_tanh_kernel(%arg0: i32, %arg1: i32, %arg2: memref<1x512x128xbf16, #tpu.memory_space<vmem>>, %arg3: memref<1x128x128xbf16, #tpu.memory_space<vmem>>, %arg4: memref<1x512x128xf32, #tpu.memory_space<vmem>>) attributes {dimension_semantics = [#tpu.dimension_semantics<parallel>, #tpu.dimension_semantics<parallel>], iteration_bounds = array<i64: 4, 1>, scalar_prefetch = 0 : i64, scratch_operands = 0 : i64, tpu.core_type = #tpu.core_type<tc>, window_params = [{transform_indices = @transform_0, window_bounds = array<i64: 1, 512, 128>}, {transform_indices = @transform_1, window_bounds = array<i64: 1, 128, 128>}, {transform_indices = @transform_2, window_bounds = array<i64: 1, 512, 128>}]} {
    %c0 = arith.constant 0 : index
    %c0_0 = arith.constant 0 : index
    %c0_1 = arith.constant 0 : index
    %0 = vector.load %arg2[%c0, %c0_0, %c0_1] : memref<1x512x128xbf16, #tpu.memory_space<vmem>>, vector<1x512x128xbf16>
    %1 = vector.shape_cast %0 : vector<1x512x128xbf16> to vector<512x128xbf16>
    %c0_2 = arith.constant 0 : index
    %c0_3 = arith.constant 0 : index
    %c0_4 = arith.constant 0 : index
    %2 = vector.load %arg3[%c0_2, %c0_3, %c0_4] : memref<1x128x128xbf16, #tpu.memory_space<vmem>>, vector<1x128x128xbf16>
    %3 = vector.shape_cast %2 : vector<1x128x128xbf16> to vector<128x128xbf16>
    %cst = arith.constant dense<0.000000e+00> : vector<512x128xf32>
    %4 = tpu.matmul %1, %3, %cst {dimension_numbers = #tpu.dot_dimension_numbers<[1], [0], [0], [1], [0, 0, 1, 1], [], []>} : vector<512x128xbf16>, vector<128x128xbf16>, vector<512x128xf32> -> vector<512x128xf32>
    %5 = math.tanh %4 : vector<512x128xf32>
    %c0_5 = arith.constant 0 : index
    %c0_6 = arith.constant 0 : index
    %c0_7 = arith.constant 0 : index
    %6 = vector.load %arg4[%c0_5, %c0_6, %c0_7] : memref<1x512x128xf32, #tpu.memory_space<vmem>>, vector<1x512x128xf32>
    %7 = vector.shape_cast %6 : vector<1x512x128xf32> to vector<512x128xf32>
    %8 = vector.shape_cast %5 : vector<512x128xf32> to vector<1x512x128xf32>
    tpu.vector_store %arg4[%c0_5, %c0_6, %c0_7], %8 {strides = array<i32>} : memref<1x512x128xf32, #tpu.memory_space<vmem>>, vector<1x512x128xf32>,
    return
  }
  func.func @transform_0(%arg0: i32, %arg1: i32) -> (i32, i32, i32) {
    %c0_i32 = arith.constant 0 : i32
    %c0_i32_0 = arith.constant 0 : i32
    return %arg0, %arg1, %c0_i32 : i32, i32, i32
  }
  func.func @transform_1(%arg0: i32, %arg1: i32) -> (i32, i32, i32) {
    %c0_i32 = arith.constant 0 : i32
    %c0_i32_0 = arith.constant 0 : i32
    %c0_i32_1 = arith.constant 0 : i32
    return %arg0, %c0_i32, %c0_i32_0 : i32, i32, i32
  }
  func.func @transform_2(%arg0: i32, %arg1: i32) -> (i32, i32, i32) {
    %c0_i32 = arith.constant 0 : i32
    %c0_i32_0 = arith.constant 0 : i32
    return %arg0, %arg1, %c0_i32 : i32, i32, i32
  }
}

</mosaic_0001>

<bundles_post_ra>
// kernel: forward.4
= control target key start
LH: loop header
LB: loop body
LE: loop exit
PB: predicated region body
PF: predicated region fallthrough
CT: control target
= control target key end

     0   :  { %7 = vsyncpa [#allocation3], 0  ;;  %s429_s9 = smov [#allocation2]   ;;  %s477_s0 = inlined_call_operand.vmem [shape: bf16[1,32,256], index: 0, kind: input, shape index: {}]   ;;  %s478_s1 = inlined_call_operand.hbm [shape: bf16[1,256,128], index: 1, kind: input, shape index: {}]   ;;  %s479_s2 = inlined_call_operand.vmem [shape: bf16[1,32,128], index: 2, kind: output, shape index: {}]  }
   0x1   :  { %s15_s10 = sshll.u32 %s429_s9, 4  ;;  %s405_s13 = scalar_lea.hbm %s478_s1, 2048  ;;  %s16_s10 = int_to_ptr.vmem [resolvable:$true] %s15_s10 }
   0x2   :  { %p406_p0 = scmp.ne.s32.totalorder %s478_s1, %s405_s13  ;;  %p409_p1 = scmp.lt.u32.totalorder %s405_s13, %s478_s1 }
   0x4   :  { %p411_p2 = pnand %p409_p1, %p406_p0 }
   0x6   :  { %414 = shalt.err (!%p411_p2)
}
   0x7   :  { %s415_s18 = scalar_lea.vmem %s16_s10, 2048  ;;  %p420_p4 = scmp.lt.s32.totalorder %s16_s10, %s16_s10 }
   0x8   :  { %p416_p3 = scmp.ne.s32.totalorder %s16_s10, %s415_s18  ;;  %p421_p5 = scmp.lt.s32.totalorder %s415_s18, %s415_s18 }
   0xa   :  { %p422_p6 = por %p421_p5, %p420_p4 }
   0xc   :  { %p423_p7 = pnand %p422_p6, %p416_p3 }
   0xe   :  { %426 = shalt.err (!%p423_p7)
}
   0xf   :  { %s430_s19 = smov 64   ;;  %s431_s20 = smov 4  }
  0x10   :  { %21 = dma.hbm_to_vmem [thread:$0]  %s478_s1, 2048, %s16_s10, [#allocation3], %s430_s19, %s430_s19, %s431_s20  }
  0x11   :  { %427 = dma.done.wait [#allocation3], 2048  }
  0x12   :  { %428 = vsyncadd [#allocation3], 4294965248  ;;  %v381_v0 = vld [vmem:[#allocation2 + $0x40] sm:$0xff]   ;;  %v383_v2 = vld [vmem:[#allocation2 + $0x48] sm:$0xff]  }
  0x13   :  { %v382_v1 = vld [vmem:[#allocation2] sm:$0xff]   ;;  %334 = vmatprep.subr.bf16.mxu0 %v381_v0  ;;  %362 = vmatprep.subr.bf16.mxu1 %v381_v0  ;;  %v384_v3 = vld [vmem:[#allocation2 + $0x8] sm:$0xff]   ;;  %v385_v4 = vld [vmem:[#allocation2 + $0x50] sm:$0xff]  }
  0x14   :  { %335 = vmatpush3.bf16.msra.mxu0 %v382_v1  ;;  %370 = vmatpush3.bf16.msra.mxu1 %v382_v1  ;;  %v386_v5 = vld [vmem:[#allocation2 + $0x10] sm:$0xff]   ;;  %v387_v6 = vld [vmem:[#allocation2 + $0x58] sm:$0xff]   ;;  %v389_v8 = vld [vmem:[#allocation2 + $0x60] sm:$0xff]  }
  0x15   :  { %336 = vmatprep.subr.bf16.mxu0 %v383_v2  ;;  %363 = vmatprep.subr.bf16.mxu1 %v383_v2  ;;  %v388_v7 = vld [vmem:[#allocation2 + $0x18] sm:$0xff]   ;;  %v390_v9 = vld [vmem:[#allocation2 + $0x20] sm:$0xff]   ;;  %v391_v10 = vld [vmem:[#allocation2 + $0x68] sm:$0xff]  }
  0x16   :  { %v399_v11 = vld [vmem:[%s477_s0 + $0x4] ss:$8 sps:$4 sm:$0xff]   ;;  %v402_v12 = vld [vmem:[%s477_s0 + $0x14] ss:$8 sps:$4 sm:$0xff]   ;;  %v397_v18 = vld [vmem:[%s477_s0] ss:$8 sps:$4 sm:$0xff]  }
  0x17   :  { %v392_v13 = vld [vmem:[#allocation2 + $0x28] sm:$0xff]   ;;  %v393_v14 = vld [vmem:[#allocation2 + $0x70] sm:$0xff]   ;;  %210 = vmatprep.mubr.bf16.mxu0 %v399_v11  ;;  %218 = vmatprep.mubr.bf16.mxu1 %v402_v12  ;;  %v395_v16 = vld [vmem:[#allocation2 + $0x78] sm:$0xff]  }
  0x18   :  { %337 = vmatpush3.bf16.msra.mxu0 %v384_v3  ;;  %371 = vmatpush3.bf16.msra.mxu1 %v384_v3  ;;  %v394_v15 = vld [vmem:[#allocation2 + $0x30] sm:$0xff]   ;;  %v396_v17 = vld [vmem:[#allocation2 + $0x38] sm:$0xff]  }
  0x19   :  { %338 = vmatprep.subr.bf16.mxu0 %v385_v4  ;;  %364 = vmatprep.subr.bf16.mxu1 %v385_v4  ;;  %v400_v19 = vld [vmem:[%s477_s0 + $0x10] ss:$8 sps:$4 sm:$0xff]  }
  0x1c   :  { %339 = vmatpush3.bf16.msra.mxu0 %v386_v5  ;;  %372 = vmatpush3.bf16.msra.mxu1 %v386_v5 }
  0x1d   :  { %340 = vmatprep.subr.bf16.mxu0 %v387_v6  ;;  %365 = vmatprep.subr.bf16.mxu1 %v387_v6 }
  0x20   :  { %341 = vmatpush3.bf16.msra.mxu0 %v388_v7  ;;  %373 = vmatpush3.bf16.msra.mxu1 %v388_v7 }
  0x21   :  { %342 = vmatprep.subr.bf16.mxu0 %v389_v8  ;;  %366 = vmatprep.subr.bf16.mxu1 %v389_v8 }
  0x24   :  { %343 = vmatpush3.bf16.msra.mxu0 %v390_v9  ;;  %374 = vmatpush3.bf16.msra.mxu1 %v390_v9 }
  0x25   :  { %344 = vmatprep.subr.bf16.mxu0 %v391_v10  ;;  %367 = vmatprep.subr.bf16.mxu1 %v391_v10 }
  0x28   :  { %345 = vmatpush3.bf16.msra.mxu0 %v392_v13  ;;  %375 = vmatpush3.bf16.msra.mxu1 %v392_v13 }
  0x29   :  { %346 = vmatprep.subr.bf16.mxu0 %v393_v14  ;;  %368 = vmatprep.subr.bf16.mxu1 %v393_v14 }
  0x2c   :  { %347 = vmatpush3.bf16.msra.mxu0 %v394_v15  ;;  %376 = vmatpush3.bf16.msra.mxu1 %v394_v15 }
  0x2d   :  { %348 = vmatprep.subr.bf16.mxu0 %v395_v16  ;;  %369 = vmatprep.subr.bf16.mxu1 %v395_v16 }
  0x30   :  { %349 = vmatpush3.bf16.msra.mxu0 %v396_v17  ;;  %377 = vmatpush3.bf16.msra.mxu1 %v396_v17 }
  0x33   :  { %211 = vmatmul.mubr.bf16.vlgmr.msra.gmra.mrb[0].mxu0 %v397_v18  ;;  %219 = vmatmul.mubr.bf16.vlgmr.msra.gmra.mrb[0].mxu1 %v400_v19 }
 0x106   :  { %v350_v20 = vpop.f32.mrb[0].mxu0  ;;  %v356_v21 = vpop.f32.mrb[0].mxu1 }
 0x107   :  { %v351_v22 = vpop.f32.mrb[1].mxu0  ;;  %v357_v23 = vpop.f32.mrb[1].mxu1 }
 0x108   :  { %v352_v24 = vadd.f32 %v351_v22, %v350_v20  ;;  %v353_v25 = vpop.f32.mrb[2].mxu0  ;;  %v358_v26 = vadd.f32 %v357_v23, %v356_v21  ;;  %v359_v27 = vpop.f32.mrb[2].mxu1 }
 0x109   :  { %v354_v28 = vpop.f32.mrb[3].mxu0  ;;  %v360_v29 = vpop.f32.mrb[3].mxu1 }
 0x10a   :  { %v355_v30 = vadd.f32 %v354_v28, %v353_v25  ;;  %v361_v31 = vadd.f32 %v360_v29, %v359_v27  ;;  %v236_v32 = vmul.f32 %v352_v24, %v352_v24  ;;  %v238_v33 = vmul.f32 %v358_v26, %v358_v26 }
 0x10c   :  { %v227_v34 = vadd.f32 %v355_v30, %v352_v24  ;;  %v237_v35 = vmul.f32 %v355_v30, %v355_v30  ;;  %v239_v39 = vmul.f32 %v361_v31, %v361_v31 }
 0x10e   :  { %v240_v36 = vadd.f32 %v237_v35, %v236_v32  ;;  %v228_v37 = vadd.f32 %v358_v26, %v227_v34 }
 0x110   :  { %v229_v38 = vadd.f32 %v361_v31, %v228_v37  ;;  %v241_v40 = vadd.f32 %v240_v36, %v238_v33 }
 0x112   :  { %v230_v41 = vrot.slane %v229_v38, 4  ;;  %v242_v42 = vadd.f32 %v241_v40, %v239_v39 }
 0x114   :  { %v231_v43 = vadd.f32 %v230_v41, %v229_v38  ;;  %v243_v44 = vrot.slane %v242_v42, 4 }
 0x116   :  { %v232_v45 = vrot.slane %v231_v43, 2  ;;  %v244_v46 = vadd.f32 %v243_v44, %v242_v42 }
 0x118   :  { %v233_v47 = vadd.f32 %v232_v45, %v231_v43  ;;  %v245_v48 = vrot.slane %v244_v46, 2 }
 0x11a   :  { %v234_v49 = vrot.slane %v233_v47, 1  ;;  %v246_v50 = vadd.f32 %v245_v48, %v244_v46 }
 0x11c   :  { %v235_v51 = vadd.f32 %v234_v49, %v233_v47  ;;  %v247_v52 = vrot.slane %v246_v50, 1 }
 0x11e   :  { %v248_v53 = vadd.f32 %v247_v52, %v246_v50  ;;  %v249_v54 = vmul.f32 0.03125, %v235_v51 }
 0x120   :  { %v250_v55 = vmul.f32 0.03125, %v248_v53  ;;  %v251_v56 = vmul.f32 %v249_v54, %v249_v54  ;;  %v256_v60 = vsub.f32 0.0, %v249_v54 }
 0x122   :  { %v252_v57 = vsub.f32 %v250_v55, %v251_v56 }
 0x124   :  { %v253_v58 = vmax.f32 %v252_v57, 0.0 }
 0x126   :  { %v254_v59 = vadd.f32 1e-05, %v253_v58 }
 0x128   :  { %403 = vrsqrt.f32 %v254_v59 }
 0x132   :  { %v404_v61 = vpop.eup %403 }
 0x133   :  { %v257_v62 = vmul.f32 %v404_v61, %v256_v60  ;;  %v258_v63 = vmul.f32 %v404_v61, %v352_v24  ;;  %v259_v0 = vmul.f32 %v404_v61, %v355_v30  ;;  %v260_v1 = vmul.f32 %v404_v61, %v358_v26 }
 0x134   :  { %v261_v2 = vmul.f32 %v404_v61, %v361_v31 }
 0x135   :  { %v262_v3 = vadd.f32 %v258_v63, %v257_v62  ;;  %v263_v4 = vadd.f32 %v259_v0, %v257_v62  ;;  %v264_v5 = vadd.f32 %v260_v1, %v257_v62 }
 0x136   :  { %v265_v6 = vadd.f32 %v261_v2, %v257_v62 }
 0x137   :  { %v266_v7 = vmax.f32 %v262_v3, 0.0  ;;  %v267_v8 = vmax.f32 %v263_v4, 0.0  ;;  %v268_v9 = vmax.f32 %v264_v5, 0.0 }
 0x138   :  { %v269_v10 = vmax.f32 %v265_v6, 0.0 }
 0x139   :  { %v326_v11 = vpack.c.bf16 %v267_v8, %v266_v7 }
 0x13a   :  { %v331_v12 = vpack.c.bf16 %v269_v10, %v268_v9 }
 0x13b   :  { %327 = vst [vmem:[%s479_s2] sm:$0xff] %v326_v11  }
 0x13c   :  { %333 = vst [vmem:[%s479_s2 + $0x8] sm:$0xff] %v331_v12  }
 0x13d   :  { %294 = vsyncpa [#allocation3], 1 }

// kernel: forward.5
= control target key start
LH: loop header
LB: loop body
LE: loop exit
PB: predicated region body
PF: predicated region fallthrough
CT: control target
= control target key end

     0   :  { %7 = vsyncpa [#allocation3], 0  ;;  %s1487_s9 = smov [#allocation2]   ;;  %s1691_s0 = inlined_call_operand.vmem [shape: bf16[4,32,256], index: 0, kind: input, shape index: {}]   ;;  %s1692_s1 = inlined_call_operand.hbm [shape: bf16[4,256,128], index: 1, kind: input, shape index: {}]   ;;  %s1693_s2 = inlined_call_operand.vmem [shape: bf16[4,32,128], index: 2, kind: output, shape index: {}]  }
   0x1   :  { %s15_s10 = sshll.u32 %s1487_s9, 4  ;;  %s1463_s13 = scalar_lea.hbm %s1692_s1, 8192  ;;  %s16_s10 = int_to_ptr.vmem [resolvable:$true] %s15_s10 }
   0x2   :  { %p1464_p0 = scmp.ne.s32.totalorder %s1692_s1, %s1463_s13  ;;  %p1467_p1 = scmp.lt.u32.totalorder %s1463_s13, %s1692_s1 }
   0x4   :  { %p1469_p2 = pnand %p1467_p1, %p1464_p0 }
   0x6   :  { %1472 = shalt.err (!%p1469_p2)
}
   0x7   :  { %s1473_s18 = scalar_lea.vmem %s16_s10, 8192  ;;  %p1478_p4 = scmp.lt.s32.totalorder %s16_s10, %s16_s10 }
   0x8   :  { %p1474_p3 = scmp.ne.s32.totalorder %s16_s10, %s1473_s18  ;;  %p1479_p5 = scmp.lt.s32.totalorder %s1473_s18, %s1473_s18 }
   0xa   :  { %p1480_p6 = por %p1479_p5, %p1478_p4 }
   0xc   :  { %p1481_p7 = pnand %p1480_p6, %p1474_p3 }
   0xe   :  { %1484 = shalt.err (!%p1481_p7)
}
   0xf   :  { %s1488_s19 = smov 64   ;;  %s1489_s20 = smov 4  }
  0x10   :  { %21 = dma.hbm_to_vmem [thread:$0]  %s1692_s1, 8192, %s16_s10, [#allocation3], %s1488_s19, %s1488_s19, %s1489_s20  }
  0x11   :  { %1485 = dma.done.wait [#allocation3], 8192  }
  0x12   :  { %1486 = vsyncadd [#allocation3], 4294959104  ;;  %v1373_v0 = vld [vmem:[#allocation2 + $0x40] sm:$0xff]   ;;  %v1377_v4 = vld [vmem:[#allocation2 + $0x48] sm:$0xff]  }
  0x13   :  { %v1374_v1 = vld [vmem:[#allocation2 + $0xc0] sm:$0xff]   ;;  %1258 = vmatprep.subr.bf16.mxu0 %v1373_v0  ;;  %v1378_v5 = vld [vmem:[#allocation2 + $0xc8] sm:$0xff]   ;;  %v1381_v8 = vld [vmem:[#allocation2 + $0x50] sm:$0xff]  }
  0x14   :  { %v1375_v2 = vld [vmem:[#allocation2] sm:$0xff]   ;;  %1286 = vmatprep.subr.bf16.mxu1 %v1374_v1  ;;  %v1379_v6 = vld [vmem:[#allocation2 + $0x8] sm:$0xff]   ;;  %v1382_v9 = vld [vmem:[#allocation2 + $0xd0] sm:$0xff]  }
  0x15   :  { %v1376_v3 = vld [vmem:[#allocation2 + $0x80] sm:$0xff]   ;;  %1259 = vmatpush3.bf16.msra.mxu0 %v1375_v2  ;;  %v1380_v7 = vld [vmem:[#allocation2 + $0x88] sm:$0xff]   ;;  %v1383_v10 = vld [vmem:[#allocation2 + $0x10] sm:$0xff]  }
  0x16   :  { %1287 = vmatpush3.bf16.msra.mxu1 %v1376_v3  ;;  %1260 = vmatprep.subr.bf16.mxu0 %v1377_v4  ;;  %v1384_v11 = vld [vmem:[#allocation2 + $0x90] sm:$0xff]   ;;  %v1385_v12 = vld [vmem:[#allocation2 + $0x58] sm:$0xff]   ;;  %v1389_v16 = vld [vmem:[#allocation2 + $0x60] sm:$0xff]  }
  0x17   :  { %1288 = vmatprep.subr.bf16.mxu1 %v1378_v5  ;;  %v1386_v13 = vld [vmem:[#allocation2 + $0xd8] sm:$0xff]   ;;  %v1390_v17 = vld [vmem:[#allocation2 + $0xe0] sm:$0xff]   ;;  %v1393_v20 = vld [vmem:[#allocation2 + $0x68] sm:$0xff]  }
  0x18   :  { %v1387_v14 = vld [vmem:[#allocation2 + $0x18] sm:$0xff]   ;;  %v1391_v18 = vld [vmem:[#allocation2 + $0x20] sm:$0xff]   ;;  %v1394_v21 = vld [vmem:[#allocation2 + $0xe8] sm:$0xff]  }
  0x19   :  { %1261 = vmatpush3.bf16.msra.mxu0 %v1379_v6  ;;  %v1388_v15 = vld [vmem:[#allocation2 + $0x98] sm:$0xff]   ;;  %v1392_v19 = vld [vmem:[#allocation2 + $0xa0] sm:$0xff]   ;;  %v1395_v22 = vld [vmem:[#allocation2 + $0x28] sm:$0xff]  }
  0x1a   :  { %1289 = vmatpush3.bf16.msra.mxu1 %v1380_v7  ;;  %1262 = vmatprep.subr.bf16.mxu0 %v1381_v8  ;;  %v1396_v23 = vld [vmem:[#allocation2 + $0xa8] sm:$0xff]   ;;  %v1397_v24 = vld [vmem:[#allocation2 + $0x70] sm:$0xff]   ;;  %v1401_v28 = vld [vmem:[#allocation2 + $0x78] sm:$0xff]  }
  0x1b   :  { %1290 = vmatprep.subr.bf16.mxu1 %v1382_v9  ;;  %v1398_v25 = vld [vmem:[#allocation2 + $0xf0] sm:$0xff]   ;;  %v1402_v29 = vld [vmem:[#allocation2 + $0xf8] sm:$0xff]   ;;  %v1405_v32 = vld [vmem:[%s1691_s0] ss:$8 sps:$4 sm:$0xff]  }
  0x1c   :  { %v1399_v26 = vld [vmem:[#allocation2 + $0x30] sm:$0xff]   ;;  %v1403_v30 = vld [vmem:[#allocation2 + $0x38] sm:$0xff]   ;;  %v1407_v33 = vld [vmem:[%s1691_s0 + $0x4] ss:$8 sps:$4 sm:$0xff]  }
  0x1d   :  { %1263 = vmatpush3.bf16.msra.mxu0 %v1383_v10  ;;  %v1400_v27 = vld [vmem:[#allocation2 + $0xb0] sm:$0xff]   ;;  %v1404_v31 = vld [vmem:[#allocation2 + $0xb8] sm:$0xff]   ;;  %v1408_v34 = vld [vmem:[%s1691_s0 + $0x20] ss:$8 sps:$4 sm:$0xff]   ;;  %210 = vmatprep.mubr.bf16.mxu0 %v1407_v33 }
  0x1e   :  { %1291 = vmatpush3.bf16.msra.mxu1 %v1384_v11  ;;  %1264 = vmatprep.subr.bf16.mxu0 %v1385_v12  ;;  %v1410_v35 = vld [vmem:[%s1691_s0 + $0x24] ss:$8 sps:$4 sm:$0xff]   ;;  %v1419_v44 = vld [vmem:[%s1691_s0 + $0x14] ss:$8 sps:$4 sm:$0xff]   ;;  %v1423_v46 = vld [vmem:[%s1691_s0 + $0x10] ss:$8 sps:$4 sm:$0xff]  }
  0x1f   :  { %1292 = vmatprep.subr.bf16.mxu1 %v1386_v13  ;;  %v1411_v36 = vld [vmem:[#allocation2 + $0x140] sm:$0xff]   ;;  %435 = vmatprep.mubr.bf16.mxu1 %v1410_v35  ;;  %v1415_v40 = vld [vmem:[#allocation2 + $0x148] sm:$0xff]   ;;  %v1421_v45 = vld [vmem:[%s1691_s0 + $0x34] ss:$8 sps:$4 sm:$0xff]  }
  0x20   :  { %v1412_v37 = vld [vmem:[#allocation2 + $0x1c0] sm:$0xff]   ;;  %v1416_v41 = vld [vmem:[#allocation2 + $0x1c8] sm:$0xff]   ;;  %v1424_v47 = vld [vmem:[%s1691_s0 + $0x30] ss:$8 sps:$4 sm:$0xff]  }
  0x21   :  { %1265 = vmatpush3.bf16.msra.mxu0 %v1387_v14  ;;  %v1413_v38 = vld [vmem:[#allocation2 + $0x100] sm:$0xff]   ;;  %v1417_v42 = vld [vmem:[#allocation2 + $0x108] sm:$0xff]   ;;  %v1425_v48 = vld [vmem:[#allocation2 + $0x150] sm:$0xff]  }
  0x22   :  { %1293 = vmatpush3.bf16.msra.mxu1 %v1388_v15  ;;  %1266 = vmatprep.subr.bf16.mxu0 %v1389_v16  ;;  %v1414_v39 = vld [vmem:[#allocation2 + $0x180] sm:$0xff]   ;;  %v1418_v43 = vld [vmem:[#allocation2 + $0x188] sm:$0xff]   ;;  %v1426_v49 = vld [vmem:[#allocation2 + $0x1d0] sm:$0xff]  }
  0x23   :  { %1294 = vmatprep.subr.bf16.mxu1 %v1390_v17  ;;  %v1427_v50 = vld [vmem:[#allocation2 + $0x110] sm:$0xff]   ;;  %v1429_v52 = vld [vmem:[#allocation2 + $0x158] sm:$0xff]   ;;  %v1433_v56 = vld [vmem:[#allocation2 + $0x160] sm:$0xff]  }
  0x24   :  { %v1428_v51 = vld [vmem:[#allocation2 + $0x190] sm:$0xff]   ;;  %v1430_v53 = vld [vmem:[#allocation2 + $0x1d8] sm:$0xff]   ;;  %v1434_v57 = vld [vmem:[#allocation2 + $0x1e0] sm:$0xff]  }
  0x25   :  { %1267 = vmatpush3.bf16.msra.mxu0 %v1391_v18  ;;  %v1431_v54 = vld [vmem:[#allocation2 + $0x118] sm:$0xff]   ;;  %v1435_v58 = vld [vmem:[#allocation2 + $0x120] sm:$0xff]   ;;  %v1437_v60 = vld [vmem:[#allocation2 + $0x168] sm:$0xff]  }
  0x26   :  { %1295 = vmatpush3.bf16.msra.mxu1 %v1392_v19  ;;  %1268 = vmatprep.subr.bf16.mxu0 %v1393_v20  ;;  %v1432_v55 = vld [vmem:[#allocation2 + $0x198] sm:$0xff]   ;;  %v1436_v59 = vld [vmem:[#allocation2 + $0x1a0] sm:$0xff]   ;;  %v1438_v61 = vld [vmem:[#allocation2 + $0x1e8] sm:$0xff]  }
  0x27   :  { %1296 = vmatprep.subr.bf16.mxu1 %v1394_v21  ;;  %v1439_v62 = vld [vmem:[#allocation2 + $0x128] sm:$0xff]   ;;  %v1441_v0 = vld [vmem:[#allocation2 + $0x170] sm:$0xff]   ;;  %v1445_v4 = vld [vmem:[#allocation2 + $0x178] sm:$0xff]  }
  0x28   :  { %v1440_v63 = vld [vmem:[#allocation2 + $0x1a8] sm:$0xff]   ;;  %v1442_v1 = vld [vmem:[#allocation2 + $0x1f0] sm:$0xff]   ;;  %v1446_v5 = vld [vmem:[#allocation2 + $0x1f8] sm:$0xff]  }
  0x29   :  { %1269 = vmatpush3.bf16.msra.mxu0 %v1395_v22  ;;  %v1443_v2 = vld [vmem:[#allocation2 + $0x130] sm:$0xff]   ;;  %v1447_v6 = vld [vmem:[#allocation2 + $0x138] sm:$0xff]   ;;  %v1449_v8 = vld [vmem:[%s1691_s0 + $0x40] ss:$8 sps:$4 sm:$0xff]  }
  0x2a   :  { %1297 = vmatpush3.bf16.msra.mxu1 %v1396_v23  ;;  %1270 = vmatprep.subr.bf16.mxu0 %v1397_v24  ;;  %v1444_v3 = vld [vmem:[#allocation2 + $0x1b0] sm:$0xff]   ;;  %v1448_v7 = vld [vmem:[#allocation2 + $0x1b8] sm:$0xff]   ;;  %v1451_v9 = vld [vmem:[%s1691_s0 + $0x44] ss:$8 sps:$4 sm:$0xff]  }
  0x2b   :  { %1298 = vmatprep.subr.bf16.mxu1 %v1398_v25  ;;  %v1452_v10 = vld [vmem:[%s1691_s0 + $0x60] ss:$8 sps:$4 sm:$0xff]   ;;  %v1454_v11 = vld [vmem:[%s1691_s0 + $0x64] ss:$8 sps:$4 sm:$0xff]   ;;  %v1455_v12 = vld [vmem:[%s1691_s0 + $0x54] ss:$8 sps:$4 sm:$0xff]  }
  0x2c   :  { %v1457_v13 = vld [vmem:[%s1691_s0 + $0x74] ss:$8 sps:$4 sm:$0xff]   ;;  %v1459_v14 = vld [vmem:[%s1691_s0 + $0x50] ss:$8 sps:$4 sm:$0xff]  }
  0x2d   :  { %1271 = vmatpush3.bf16.msra.mxu0 %v1399_v26  ;;  %v1460_v15 = vld [vmem:[%s1691_s0 + $0x70] ss:$8 sps:$4 sm:$0xff]  }
  0x2e   :  { %1299 = vmatpush3.bf16.msra.mxu1 %v1400_v27  ;;  %1272 = vmatprep.subr.bf16.mxu0 %v1401_v28 }
  0x2f   :  { %1300 = vmatprep.subr.bf16.mxu1 %v1402_v29 }
  0x31   :  { %1273 = vmatpush3.bf16.msra.mxu0 %v1403_v30 }
  0x32   :  { %1301 = vmatpush3.bf16.msra.mxu1 %v1404_v31  ;;  %1314 = vmatprep.subr.bf16.mxu0 %v1411_v36 }
  0x33   :  { %1342 = vmatprep.subr.bf16.mxu1 %v1412_v37 }
  0x34   :  { %211 = vmatmul.mubr.bf16.vlgmr.msra.gmra.mrb[0].mxu0 %v1405_v32 }
  0x35   :  { %436 = vmatmul.mubr.bf16.vlgmr.msra.gmra.mrb[0].mxu1 %v1408_v34  ;;  %1315 = vmatpush3.bf16.msra.mxu0 %v1413_v38 }
  0x36   :  { %1343 = vmatpush3.bf16.msra.mxu1 %v1414_v39  ;;  %1316 = vmatprep.subr.bf16.mxu0 %v1415_v40 }
  0x37   :  { %1344 = vmatprep.subr.bf16.mxu1 %v1416_v41  ;;  %218 = vmatprep.mubr.bf16.mxu0 %v1419_v44 }
  0x38   :  { %443 = vmatprep.mubr.bf16.mxu1 %v1421_v45 }
  0x39   :  { %1317 = vmatpush3.bf16.msra.mxu0 %v1417_v42 }
  0x3a   :  { %1345 = vmatpush3.bf16.msra.mxu1 %v1418_v43  ;;  %1318 = vmatprep.subr.bf16.mxu0 %v1425_v48 }
  0x3b   :  { %1346 = vmatprep.subr.bf16.mxu1 %v1426_v49 }
  0x3c   :  { %219 = vmatmul.mubr.bf16.gmra.mrb[4].mxu0 %v1423_v46 }
  0x3d   :  { %444 = vmatmul.mubr.bf16.gmra.mrb[4].mxu1 %v1424_v47  ;;  %1319 = vmatpush3.bf16.msra.mxu0 %v1427_v50 }
  0x3e   :  { %1347 = vmatpush3.bf16.msra.mxu1 %v1428_v51  ;;  %1320 = vmatprep.subr.bf16.mxu0 %v1429_v52 }
  0x3f   :  { %1348 = vmatprep.subr.bf16.mxu1 %v1430_v53  ;;  %662 = vmatprep.mubr.bf16.mxu0 %v1451_v9 }
  0x40   :  { %889 = vmatprep.mubr.bf16.mxu1 %v1454_v11 }
  0x41   :  { %1321 = vmatpush3.bf16.msra.mxu0 %v1431_v54 }
  0x42   :  { %1349 = vmatpush3.bf16.msra.mxu1 %v1432_v55  ;;  %1322 = vmatprep.subr.bf16.mxu0 %v1433_v56 }
  0x43   :  { %1350 = vmatprep.subr.bf16.mxu1 %v1434_v57 }
  0x45   :  { %1323 = vmatpush3.bf16.msra.mxu0 %v1435_v58 }
  0x46   :  { %1351 = vmatpush3.bf16.msra.mxu1 %v1436_v59  ;;  %1324 = vmatprep.subr.bf16.mxu0 %v1437_v60 }
  0x47   :  { %1352 = vmatprep.subr.bf16.mxu1 %v1438_v61 }
  0x49   :  { %1325 = vmatpush3.bf16.msra.mxu0 %v1439_v62 }
  0x4a   :  { %1353 = vmatpush3.bf16.msra.mxu1 %v1440_v63  ;;  %1326 = vmatprep.subr.bf16.mxu0 %v1441_v0 }
  0x4b   :  { %1354 = vmatprep.subr.bf16.mxu1 %v1442_v1 }
  0x4d   :  { %1327 = vmatpush3.bf16.msra.mxu0 %v1443_v2 }
  0x4e   :  { %1355 = vmatpush3.bf16.msra.mxu1 %v1444_v3  ;;  %1328 = vmatprep.subr.bf16.mxu0 %v1445_v4 }
  0x4f   :  { %1356 = vmatprep.subr.bf16.mxu1 %v1446_v5 }
  0x51   :  { %1329 = vmatpush3.bf16.msra.mxu0 %v1447_v6 }
  0x52   :  { %1357 = vmatpush3.bf16.msra.mxu1 %v1448_v7 }
  0x54   :  { %663 = vmatmul.mubr.bf16.vlgmr.msra.gmra.mrb[8].mxu0 %v1449_v8 }
  0x55   :  { %890 = vmatmul.mubr.bf16.vlgmr.msra.gmra.mrb[8].mxu1 %v1452_v10  ;;  %670 = vmatprep.mubr.bf16.mxu0 %v1455_v12 }
  0x56   :  { %897 = vmatprep.mubr.bf16.mxu1 %v1457_v13 }
  0x5c   :  { %671 = vmatmul.mubr.bf16.gmra.mrb[12].mxu0 %v1459_v14 }
  0x5d   :  { %898 = vmatmul.mubr.bf16.gmra.mrb[12].mxu1 %v1460_v15 }
 0x107   :  { %v1274_v16 = vpop.f32.mrb[0].mxu0 }
 0x108   :  { %v1302_v17 = vpop.f32.mrb[0].mxu1  ;;  %v1275_v18 = vpop.f32.mrb[1].mxu0 }
 0x109   :  { %v1565_v19 = vadd.f32 %v1275_v18, %v1274_v16  ;;  %v1303_v20 = vpop.f32.mrb[1].mxu1  ;;  %v1277_v21 = vpop.f32.mrb[2].mxu0 }
 0x10a   :  { %v1567_v22 = vadd.f32 %v1303_v20, %v1302_v17  ;;  %v1305_v23 = vpop.f32.mrb[2].mxu1  ;;  %v1278_v24 = vpop.f32.mrb[3].mxu0 }
 0x10b   :  { %v1569_v25 = vadd.f32 %v1278_v24, %v1277_v21  ;;  %v1306_v26 = vpop.f32.mrb[3].mxu1  ;;  %v236_v29 = vmul.f32 %v1565_v19, %v1565_v19 }
 0x10c   :  { %v461_v27 = vmul.f32 %v1567_v22, %v1567_v22  ;;  %v1573_v28 = vadd.f32 %v1306_v26, %v1305_v23 }
 0x10d   :  { %v227_v30 = vadd.f32 %v1569_v25, %v1565_v19  ;;  %v237_v31 = vmul.f32 %v1569_v25, %v1569_v25 }
 0x10e   :  { %v452_v32 = vadd.f32 %v1573_v28, %v1567_v22  ;;  %v462_v33 = vmul.f32 %v1573_v28, %v1573_v28 }
 0x10f   :  { %v240_v34 = vadd.f32 %v237_v31, %v236_v29  ;;  %v1280_v36 = vpop.f32.mrb[4].mxu0 }
 0x110   :  { %v465_v35 = vadd.f32 %v462_v33, %v461_v27  ;;  %v1308_v37 = vpop.f32.mrb[4].mxu1  ;;  %v1281_v38 = vpop.f32.mrb[5].mxu0 }
 0x111   :  { %v1585_v39 = vadd.f32 %v1281_v38, %v1280_v36  ;;  %v1309_v40 = vpop.f32.mrb[5].mxu1  ;;  %v1283_v41 = vpop.f32.mrb[6].mxu0 }
 0x112   :  { %v1587_v42 = vadd.f32 %v1309_v40, %v1308_v37  ;;  %v1311_v43 = vpop.f32.mrb[6].mxu1  ;;  %v1284_v44 = vpop.f32.mrb[7].mxu0 }
 0x113   :  { %v228_v45 = vadd.f32 %v1585_v39, %v227_v30  ;;  %v238_v46 = vmul.f32 %v1585_v39, %v1585_v39  ;;  %v1592_v47 = vadd.f32 %v1284_v44, %v1283_v41  ;;  %v1312_v48 = vpop.f32.mrb[7].mxu1 }
 0x114   :  { %v453_v49 = vadd.f32 %v1587_v42, %v452_v32  ;;  %v463_v50 = vmul.f32 %v1587_v42, %v1587_v42  ;;  %v1597_v51 = vadd.f32 %v1312_v48, %v1311_v43 }
 0x115   :  { %v241_v52 = vadd.f32 %v240_v34, %v238_v46  ;;  %v229_v53 = vadd.f32 %v1592_v47, %v228_v45  ;;  %v239_v54 = vmul.f32 %v1592_v47, %v1592_v47 }
 0x116   :  { %v466_v55 = vadd.f32 %v465_v35, %v463_v50  ;;  %v454_v56 = vadd.f32 %v1597_v51, %v453_v49  ;;  %v464_v57 = vmul.f32 %v1597_v51, %v1597_v51 }
 0x117   :  { %v230_v58 = vrot.slane %v229_v53, 4  ;;  %v242_v59 = vadd.f32 %v241_v52, %v239_v54 }
 0x118   :  { %v455_v60 = vrot.slane %v454_v56, 4  ;;  %v467_v61 = vadd.f32 %v466_v55, %v464_v57 }
 0x119   :  { %v231_v62 = vadd.f32 %v230_v58, %v229_v53  ;;  %v243_v63 = vrot.slane %v242_v59, 4 }
 0x11a   :  { %v456_v0 = vadd.f32 %v455_v60, %v454_v56  ;;  %v468_v1 = vrot.slane %v467_v61, 4 }
 0x11b   :  { %v232_v2 = vrot.slane %v231_v62, 2  ;;  %v244_v3 = vadd.f32 %v243_v63, %v242_v59 }
 0x11c   :  { %v457_v4 = vrot.slane %v456_v0, 2  ;;  %v469_v5 = vadd.f32 %v468_v1, %v467_v61 }
 0x11d   :  { %v233_v6 = vadd.f32 %v232_v2, %v231_v62  ;;  %v245_v7 = vrot.slane %v244_v3, 2 }
 0x11e   :  { %v458_v8 = vadd.f32 %v457_v4, %v456_v0  ;;  %v470_v9 = vrot.slane %v469_v5, 2 }
 0x11f   :  { %v234_v10 = vrot.slane %v233_v6, 1  ;;  %v246_v11 = vadd.f32 %v245_v7, %v244_v3 }
 0x120   :  { %v459_v12 = vrot.slane %v458_v8, 1  ;;  %v471_v13 = vadd.f32 %v470_v9, %v469_v5 }
 0x121   :  { %v235_v14 = vadd.f32 %v234_v10, %v233_v6  ;;  %v247_v15 = vrot.slane %v246_v11, 1 }
 0x122   :  { %v460_v16 = vadd.f32 %v459_v12, %v458_v8  ;;  %v472_v17 = vrot.slane %v471_v13, 1 }
 0x123   :  { %v248_v18 = vadd.f32 %v247_v15, %v246_v11 }
 0x124   :  { %v473_v20 = vadd.f32 %v472_v17, %v471_v13  ;;  %v1605_v21 = vadd.f32 %v460_v16, %v235_v14 }
 0x126   :  { %v1607_v23 = vadd.f32 %v473_v20, %v248_v18 }
 0x127   :  { %v1330_v24 = vpop.f32.mrb[8].mxu0 }
 0x128   :  { %v1358_v26 = vpop.f32.mrb[8].mxu1  ;;  %v1331_v27 = vpop.f32.mrb[9].mxu0 }
 0x129   :  { %v1609_v29 = vadd.f32 %v1331_v27, %v1330_v24  ;;  %v1359_v30 = vpop.f32.mrb[9].mxu1  ;;  %v1333_v31 = vpop.f32.mrb[10].mxu0 }
 0x12a   :  { %v1611_v32 = vadd.f32 %v1359_v30, %v1358_v26  ;;  %v1361_v33 = vpop.f32.mrb[10].mxu1  ;;  %v1334_v34 = vpop.f32.mrb[11].mxu0 }
 0x12b   :  { %v1613_v35 = vadd.f32 %v1334_v34, %v1333_v31  ;;  %v1362_v36 = vpop.f32.mrb[11].mxu1  ;;  %v688_v40 = vmul.f32 %v1609_v29, %v1609_v29 }
 0x12c   :  { %v915_v37 = vmul.f32 %v1611_v32, %v1611_v32  ;;  %v1617_v38 = vadd.f32 %v1362_v36, %v1361_v33 }
 0x12d   :  { %v679_v41 = vadd.f32 %v1613_v35, %v1609_v29  ;;  %v689_v43 = vmul.f32 %v1613_v35, %v1613_v35 }
 0x12e   :  { %v906_v44 = vadd.f32 %v1617_v38, %v1611_v32  ;;  %v916_v45 = vmul.f32 %v1617_v38, %v1617_v38 }
 0x12f   :  { %v692_v46 = vadd.f32 %v689_v43, %v688_v40  ;;  %v1336_v48 = vpop.f32.mrb[12].mxu0 }
 0x130   :  { %v919_v49 = vadd.f32 %v916_v45, %v915_v37  ;;  %v1364_v50 = vpop.f32.mrb[12].mxu1  ;;  %v1337_v52 = vpop.f32.mrb[13].mxu0 }
 0x131   :  { %v1629_v53 = vadd.f32 %v1337_v52, %v1336_v48  ;;  %v1365_v54 = vpop.f32.mrb[13].mxu1  ;;  %v1339_v55 = vpop.f32.mrb[14].mxu0 }
 0x132   :  { %v1631_v56 = vadd.f32 %v1365_v54, %v1364_v50  ;;  %v1367_v57 = vpop.f32.mrb[14].mxu1  ;;  %v1340_v58 = vpop.f32.mrb[15].mxu0 }
 0x133   :  { %v680_v59 = vadd.f32 %v1629_v53, %v679_v41  ;;  %v690_v60 = vmul.f32 %v1629_v53, %v1629_v53  ;;  %v1636_v61 = vadd.f32 %v1340_v58, %v1339_v55  ;;  %v1368_v62 = vpop.f32.mrb[15].mxu1 }
 0x134   :  { %v907_v63 = vadd.f32 %v1631_v56, %v906_v44  ;;  %v917_v0 = vmul.f32 %v1631_v56, %v1631_v56  ;;  %v1641_v1 = vadd.f32 %v1368_v62, %v1367_v57 }
 0x135   :  { %v693_v2 = vadd.f32 %v692_v46, %v690_v60  ;;  %v681_v3 = vadd.f32 %v1636_v61, %v680_v59  ;;  %v691_v4 = vmul.f32 %v1636_v61, %v1636_v61 }
 0x136   :  { %v920_v5 = vadd.f32 %v919_v49, %v917_v0  ;;  %v908_v6 = vadd.f32 %v1641_v1, %v907_v63  ;;  %v918_v7 = vmul.f32 %v1641_v1, %v1641_v1 }
 0x137   :  { %v682_v8 = vrot.slane %v681_v3, 4  ;;  %v694_v9 = vadd.f32 %v693_v2, %v691_v4 }
 0x138   :  { %v909_v10 = vrot.slane %v908_v6, 4  ;;  %v921_v11 = vadd.f32 %v920_v5, %v918_v7 }
 0x139   :  { %v683_v12 = vadd.f32 %v682_v8, %v681_v3  ;;  %v695_v13 = vrot.slane %v694_v9, 4 }
 0x13a   :  { %v910_v14 = vadd.f32 %v909_v10, %v908_v6  ;;  %v922_v15 = vrot.slane %v921_v11, 4 }
 0x13b   :  { %v684_v16 = vrot.slane %v683_v12, 2  ;;  %v696_v17 = vadd.f32 %v695_v13, %v694_v9 }
 0x13c   :  { %v911_v18 = vrot.slane %v910_v14, 2  ;;  %v923_v20 = vadd.f32 %v922_v15, %v921_v11 }
 0x13d   :  { %v685_v24 = vadd.f32 %v684_v16, %v683_v12  ;;  %v697_v26 = vrot.slane %v696_v17, 2 }
 0x13e   :  { %v912_v27 = vadd.f32 %v911_v18, %v910_v14  ;;  %v924_v30 = vrot.slane %v923_v20, 2 }
 0x13f   :  { %v686_v31 = vrot.slane %v685_v24, 1  ;;  %v698_v33 = vadd.f32 %v697_v26, %v696_v17 }
 0x140   :  { %v913_v34 = vrot.slane %v912_v27, 1  ;;  %v925_v36 = vadd.f32 %v924_v30, %v923_v20 }
 0x141   :  { %v687_v37 = vadd.f32 %v686_v31, %v685_v24  ;;  %v699_v40 = vrot.slane %v698_v33, 1 }
 0x142   :  { %v926_v41 = vrot.slane %v925_v36, 1  ;;  %v914_v45 = vadd.f32 %v913_v34, %v912_v27 }
 0x143   :  { %v700_v43 = vadd.f32 %v699_v40, %v698_v33  ;;  %v701_v44 = vadd.f32 %v687_v37, %v1605_v21 }
 0x144   :  { %v927_v48 = vadd.f32 %v926_v41, %v925_v36 }
 0x145   :  { %v702_v46 = vadd.f32 %v700_v43, %v1607_v23  ;;  %v928_v49 = vadd.f32 %v914_v45, %v701_v44 }
 0x147   :  { %v929_v50 = vadd.f32 %v927_v48, %v702_v46  ;;  %v930_v52 = vmul.f32 0.0078125, %v928_v49 }
 0x149   :  { %v931_v54 = vmul.f32 0.0078125, %v929_v50  ;;  %v932_v55 = vmul.f32 %v930_v52, %v930_v52  ;;  %v937_v60 = vsub.f32 0.0, %v930_v52 }
 0x14b   :  { %v933_v57 = vsub.f32 %v931_v54, %v932_v55 }
 0x14d   :  { %v934_v58 = vmax.f32 %v933_v57, 0.0 }
 0x14f   :  { %v935_v59 = vadd.f32 1e-05, %v934_v58 }
 0x151   :  { %1461 = vrsqrt.f32 %v935_v59 }
 0x15b   :  { %v1462_v62 = vpop.eup %1461 }
 0x15c   :  { %v938_v63 = vmul.f32 %v1462_v62, %v937_v60  ;;  %v939_v0 = vmul.f32 %v1462_v62, %v1565_v19  ;;  %v940_v21 = vmul.f32 %v1462_v62, %v1569_v25  ;;  %v941_v2 = vmul.f32 %v1462_v62, %v1585_v39 }
 0x15d   :  { %v942_v23 = vmul.f32 %v1462_v62, %v1592_v47  ;;  %v971_v3 = vmul.f32 %v1462_v62, %v1567_v22  ;;  %v972_v4 = vmul.f32 %v1462_v62, %v1573_v28  ;;  %v973_v5 = vmul.f32 %v1462_v62, %v1587_v42 }
 0x15e   :  { %v943_v6 = vadd.f32 %v939_v0, %v938_v63  ;;  %v944_v7 = vadd.f32 %v940_v21, %v938_v63  ;;  %v945_v8 = vadd.f32 %v941_v2, %v938_v63  ;;  %v974_v9 = vmul.f32 %v1462_v62, %v1597_v51 }
 0x15f   :  { %v946_v10 = vadd.f32 %v942_v23, %v938_v63  ;;  %v975_v11 = vadd.f32 %v971_v3, %v938_v63  ;;  %v976_v19 = vadd.f32 %v972_v4, %v938_v63  ;;  %v977_v12 = vadd.f32 %v973_v5, %v938_v63 }
 0x160   :  { %v947_v25 = vmax.f32 %v943_v6, 0.0  ;;  %v948_v13 = vmax.f32 %v944_v7, 0.0  ;;  %v949_v39 = vmax.f32 %v945_v8, 0.0  ;;  %v978_v14 = vadd.f32 %v974_v9, %v938_v63 }
 0x161   :  { %v950_v47 = vmax.f32 %v946_v10, 0.0  ;;  %v979_v15 = vmax.f32 %v975_v11, 0.0  ;;  %v980_v22 = vmax.f32 %v976_v19, 0.0  ;;  %v981_v16 = vmax.f32 %v977_v12, 0.0 }
 0x162   :  { %v1214_v28 = vpack.c.bf16 %v948_v13, %v947_v25  ;;  %v982_v17 = vmax.f32 %v978_v14, 0.0  ;;  %v1004_v42 = vmul.f32 %v1462_v62, %v1609_v29  ;;  %v1005_v18 = vmul.f32 %v1462_v62, %v1613_v35 }
 0x163   :  { %v1219_v20 = vpack.c.bf16 %v950_v47, %v949_v39  ;;  %v1224_v51 = vpack.c.bf16 %v980_v22, %v979_v15  ;;  %v1006_v24 = vmul.f32 %v1462_v62, %v1629_v53  ;;  %v1007_v26 = vmul.f32 %v1462_v62, %v1636_v61 }
 0x164   :  { %1215 = vst [vmem:[%s1693_s2] sm:$0xff] %v1214_v28   ;;  %v1229_v27 = vpack.c.bf16 %v982_v17, %v981_v16  ;;  %v1008_v30 = vadd.f32 %v1004_v42, %v938_v63  ;;  %v1009_v31 = vadd.f32 %v1005_v18, %v938_v63  ;;  %v1037_v33 = vmul.f32 %v1462_v62, %v1611_v32 }
 0x165   :  { %1251 = vst [vmem:[%s1693_s2 + $0x8] sm:$0xff] %v1219_v20   ;;  %1252 = vst [vmem:[%s1693_s2 + $0x10] sm:$0xff] %v1224_v51   ;;  %v1010_v29 = vadd.f32 %v1006_v24, %v938_v63  ;;  %v1011_v35 = vadd.f32 %v1007_v26, %v938_v63  ;;  %v1038_v53 = vmul.f32 %v1462_v62, %v1617_v38 }
 0x166   :  { %v1039_v61 = vmul.f32 %v1462_v62, %v1631_v56  ;;  %1253 = vst [vmem:[%s1693_s2 + $0x18] sm:$0xff] %v1229_v27   ;;  %v1012_v34 = vmax.f32 %v1008_v30, 0.0  ;;  %v1013_v32 = vmax.f32 %v1009_v31, 0.0  ;;  %v1040_v36 = vmul.f32 %v1462_v62, %v1641_v1 }
 0x167   :  { %v1041_v37 = vadd.f32 %v1037_v33, %v938_v63  ;;  %v1014_v40 = vmax.f32 %v1010_v29, 0.0  ;;  %v1015_v41 = vmax.f32 %v1011_v35, 0.0  ;;  %v1042_v43 = vadd.f32 %v1038_v53, %v938_v63 }
 0x168   :  { %v1043_v44 = vadd.f32 %v1039_v61, %v938_v63  ;;  %v1234_v45 = vpack.c.bf16 %v1013_v32, %v1012_v34  ;;  %v1044_v46 = vadd.f32 %v1040_v36, %v938_v63 }
 0x169   :  { %v1045_v48 = vmax.f32 %v1041_v37, 0.0  ;;  %v1239_v49 = vpack.c.bf16 %v1015_v41, %v1014_v40  ;;  %v1046_v38 = vmax.f32 %v1042_v43, 0.0 }
 0x16a   :  { %v1047_v50 = vmax.f32 %v1043_v44, 0.0  ;;  %1254 = vst [vmem:[%s1693_s2 + $0x20] sm:$0xff] %v1234_v45   ;;  %v1048_v56 = vmax.f32 %v1044_v46, 0.0 }
 0x16b   :  { %1255 = vst [vmem:[%s1693_s2 + $0x28] sm:$0xff] %v1239_v49   ;;  %v1244_v1 = vpack.c.bf16 %v1046_v38, %v1045_v48 }
 0x16c   :  { %v1249_v52 = vpack.c.bf16 %v1048_v56, %v1047_v50 }
 0x16d   :  { %1256 = vst [vmem:[%s1693_s2 + $0x30] sm:$0xff] %v1244_v1  }
 0x16e   :  { %1257 = vst [vmem:[%s1693_s2 + $0x38] sm:$0xff] %v1249_v52  }
 0x16f   :  { %1074 = vsyncpa [#allocation3], 1 }

// kernel: forward.6
= control target key start
LH: loop header
LB: loop body
LE: loop exit
PB: predicated region body
PF: predicated region fallthrough
CT: control target
= control target key end

     0   :  { %s3295_s1 = inlined_call_operand.vmem [shape: bf16[4,128,128], index: 1, kind: input, shape index: {}]   ;;  %s3296_s0 = inlined_call_operand.vmem [shape: bf16[4,128,128], index: 0, kind: input, shape index: {}]   ;;  %s3297_s2 = inlined_call_operand.vmem [shape: bf16[4,128,128], index: 2, kind: output, shape index: {}]  }
   0x1   :  { %v2403_v0 = vld [vmem:[%s3295_s1] sm:$0xff]   ;;  %v2405_v2 = vld [vmem:[%s3295_s1 + $0x8] sm:$0xff]   ;;  %v2407_v4 = vld [vmem:[%s3295_s1 + $0x10] sm:$0xff]  }
   0x2   :  { %v2404_v1 = vld [vmem:[%s3295_s1 + $0x40] sm:$0xff]   ;;  %2275 = vmatprep.subr.bf16.mxu0 %v2403_v0  ;;  %v2406_v3 = vld [vmem:[%s3295_s1 + $0x48] sm:$0xff]   ;;  %v2408_v5 = vld [vmem:[%s3295_s1 + $0x50] sm:$0xff]  }
   0x3   :  { %2307 = vmatprep.subr.bf16.mxu1 %v2404_v1  ;;  %2276 = vmatpush3.bf16.msra.mxu0 %v2403_v0  ;;  %v2409_v6 = vld [vmem:[%s3295_s1 + $0x18] sm:$0xff]   ;;  %v2411_v8 = vld [vmem:[%s3295_s1 + $0x20] sm:$0xff]   ;;  %v2413_v10 = vld [vmem:[%s3295_s1 + $0x28] sm:$0xff]  }
   0x4   :  { %2308 = vmatpush3.bf16.msra.mxu1 %v2404_v1  ;;  %2277 = vmatprep.subr.bf16.mxu0 %v2405_v2  ;;  %v2410_v7 = vld [vmem:[%s3295_s1 + $0x58] sm:$0xff]   ;;  %v2412_v9 = vld [vmem:[%s3295_s1 + $0x60] sm:$0xff]   ;;  %v2414_v11 = vld [vmem:[%s3295_s1 + $0x68] sm:$0xff]  }
   0x5   :  { %2309 = vmatprep.subr.bf16.mxu1 %v2406_v3  ;;  %v2419_v12 = vld [vmem:[%s3296_s0] sm:$0xff]   ;;  %v2415_v14 = vld [vmem:[%s3295_s1 + $0x30] sm:$0xff]   ;;  %v2417_v16 = vld [vmem:[%s3295_s1 + $0x38] sm:$0xff]  }
   0x6   :  { %v2420_v13 = vld [vmem:[%s3296_s0 + $0x40] sm:$0xff]   ;;  %2291 = vmatprep.mubr.bf16.mxu0 %v2419_v12  ;;  %v2416_v15 = vld [vmem:[%s3295_s1 + $0x70] sm:$0xff]   ;;  %v2418_v17 = vld [vmem:[%s3295_s1 + $0x78] sm:$0xff]  }
   0x7   :  { %2278 = vmatpush3.bf16.msra.mxu0 %v2405_v2  ;;  %2323 = vmatprep.mubr.bf16.mxu1 %v2420_v13  ;;  %v2421_v18 = vld [vmem:[%s3296_s0 + $0x8] sm:$0xff]   ;;  %v2423_v19 = vld [vmem:[%s3295_s1 + $0x80] sm:$0xff]   ;;  %v2427_v24 = vld [vmem:[%s3296_s0 + $0x10] sm:$0xff]  }
   0x8   :  { %2310 = vmatpush3.bf16.msra.mxu1 %v2406_v3  ;;  %2279 = vmatprep.subr.bf16.mxu0 %v2407_v4  ;;  %v2424_v20 = vld [vmem:[%s3295_s1 + $0xc0] sm:$0xff]   ;;  %v2422_v21 = vld [vmem:[%s3296_s0 + $0x48] sm:$0xff]   ;;  %v2428_v25 = vld [vmem:[%s3296_s0 + $0x50] sm:$0xff]  }
   0x9   :  { %2311 = vmatprep.subr.bf16.mxu1 %v2408_v5  ;;  %v2425_v22 = vld [vmem:[%s3295_s1 + $0x88] sm:$0xff]   ;;  %v2429_v26 = vld [vmem:[%s3296_s0 + $0x18] sm:$0xff]   ;;  %v2431_v27 = vld [vmem:[%s3295_s1 + $0x90] sm:$0xff]  }
   0xa   :  { %v2426_v23 = vld [vmem:[%s3295_s1 + $0xc8] sm:$0xff]   ;;  %v2432_v28 = vld [vmem:[%s3295_s1 + $0xd0] sm:$0xff]   ;;  %v2430_v29 = vld [vmem:[%s3296_s0 + $0x58] sm:$0xff]  }
   0xb   :  { %2280 = vmatpush3.bf16.msra.mxu0 %v2407_v4  ;;  %v2433_v30 = vld [vmem:[%s3295_s1 + $0x98] sm:$0xff]   ;;  %v2435_v32 = vld [vmem:[%s3296_s0 + $0x20] sm:$0xff]   ;;  %v2437_v34 = vld [vmem:[%s3296_s0 + $0x28] sm:$0xff]  }
   0xc   :  { %2312 = vmatpush3.bf16.msra.mxu1 %v2408_v5  ;;  %2281 = vmatprep.subr.bf16.mxu0 %v2409_v6  ;;  %v2434_v31 = vld [vmem:[%s3295_s1 + $0xd8] sm:$0xff]   ;;  %v2436_v33 = vld [vmem:[%s3296_s0 + $0x60] sm:$0xff]   ;;  %v2438_v37 = vld [vmem:[%s3296_s0 + $0x68] sm:$0xff]  }
   0xd   :  { %2313 = vmatprep.subr.bf16.mxu1 %v2410_v7  ;;  %v2439_v35 = vld [vmem:[%s3295_s1 + $0xa0] sm:$0xff]   ;;  %v2441_v38 = vld [vmem:[%s3295_s1 + $0xa8] sm:$0xff]   ;;  %v2443_v40 = vld [vmem:[%s3296_s0 + $0x30] sm:$0xff]  }
   0xe   :  { %v2440_v36 = vld [vmem:[%s3295_s1 + $0xe0] sm:$0xff]   ;;  %v2442_v39 = vld [vmem:[%s3295_s1 + $0xe8] sm:$0xff]   ;;  %v2444_v41 = vld [vmem:[%s3296_s0 + $0x70] sm:$0xff]  }
   0xf   :  { %2282 = vmatpush3.bf16.msra.mxu0 %v2409_v6  ;;  %v2445_v42 = vld [vmem:[%s3296_s0 + $0x38] sm:$0xff]   ;;  %v2447_v43 = vld [vmem:[%s3295_s1 + $0xb0] sm:$0xff]   ;;  %v2451_v48 = vld [vmem:[%s3296_s0 + $0x80] sm:$0xff]  }
  0x10   :  { %2314 = vmatpush3.bf16.msra.mxu1 %v2410_v7  ;;  %2283 = vmatprep.subr.bf16.mxu0 %v2411_v8  ;;  %v2448_v44 = vld [vmem:[%s3295_s1 + $0xf0] sm:$0xff]   ;;  %v2446_v45 = vld [vmem:[%s3296_s0 + $0x78] sm:$0xff]   ;;  %v2452_v49 = vld [vmem:[%s3296_s0 + $0xc0] sm:$0xff]  }
  0x11   :  { %2315 = vmatprep.subr.bf16.mxu1 %v2412_v9  ;;  %v2449_v46 = vld [vmem:[%s3295_s1 + $0xb8] sm:$0xff]   ;;  %v2453_v50 = vld [vmem:[%s3296_s0 + $0x88] sm:$0xff]   ;;  %v2455_v52 = vld [vmem:[%s3296_s0 + $0x90] sm:$0xff]  }
  0x12   :  { %v2450_v47 = vld [vmem:[%s3295_s1 + $0xf8] sm:$0xff]   ;;  %v2454_v51 = vld [vmem:[%s3296_s0 + $0xc8] sm:$0xff]   ;;  %v2456_v53 = vld [vmem:[%s3296_s0 + $0xd0] sm:$0xff]  }
  0x13   :  { %2284 = vmatpush3.bf16.msra.mxu0 %v2411_v8  ;;  %v2457_v54 = vld [vmem:[%s3296_s0 + $0x98] sm:$0xff]   ;;  %v2459_v56 = vld [vmem:[%s3296_s0 + $0xa0] sm:$0xff]   ;;  %v2461_v58 = vld [vmem:[%s3296_s0 + $0xa8] sm:$0xff]  }
  0x14   :  { %2316 = vmatpush3.bf16.msra.mxu1 %v2412_v9  ;;  %2285 = vmatprep.subr.bf16.mxu0 %v2413_v10  ;;  %v2458_v55 = vld [vmem:[%s3296_s0 + $0xd8] sm:$0xff]   ;;  %v2460_v57 = vld [vmem:[%s3296_s0 + $0xe0] sm:$0xff]   ;;  %v2462_v59 = vld [vmem:[%s3296_s0 + $0xe8] sm:$0xff]  }
  0x15   :  { %2317 = vmatprep.subr.bf16.mxu1 %v2414_v11  ;;  %v2463_v60 = vld [vmem:[%s3296_s0 + $0xb0] sm:$0xff]   ;;  %v2465_v62 = vld [vmem:[%s3296_s0 + $0xb8] sm:$0xff]  }
  0x16   :  { %v2464_v61 = vld [vmem:[%s3296_s0 + $0xf0] sm:$0xff]   ;;  %v2466_v63 = vld [vmem:[%s3296_s0 + $0xf8] sm:$0xff]  }
  0x17   :  { %2286 = vmatpush3.bf16.msra.mxu0 %v2413_v10 }
  0x18   :  { %2318 = vmatpush3.bf16.msra.mxu1 %v2414_v11  ;;  %2287 = vmatprep.subr.bf16.mxu0 %v2415_v14 }
  0x19   :  { %2319 = vmatprep.subr.bf16.mxu1 %v2416_v15 }
  0x1b   :  { %2288 = vmatpush3.bf16.msra.mxu0 %v2415_v14 }
  0x1c   :  { %2320 = vmatpush3.bf16.msra.mxu1 %v2416_v15  ;;  %2289 = vmatprep.subr.bf16.mxu0 %v2417_v16 }
  0x1d   :  { %2321 = vmatprep.subr.bf16.mxu1 %v2418_v17 }
  0x1f   :  { %2290 = vmatpush3.bf16.msra.mxu0 %v2417_v16 }
  0x20   :  { %2322 = vmatpush3.bf16.msra.mxu1 %v2418_v17  ;;  %2339 = vmatprep.subr.bf16.mxu0 %v2423_v19 }
  0x21   :  { %2371 = vmatprep.subr.bf16.mxu1 %v2424_v20 }
  0x22   :  { %2292 = vmatmul.mubr.bf16.vlgmr.msra.gmra.mrb[0].mxu0 %v2421_v18 }
  0x23   :  { %2324 = vmatmul.mubr.bf16.vlgmr.msra.gmra.mrb[0].mxu1 %v2422_v21  ;;  %2340 = vmatpush3.bf16.msra.mxu0 %v2423_v19 }
  0x24   :  { %2372 = vmatpush3.bf16.msra.mxu1 %v2424_v20  ;;  %2341 = vmatprep.subr.bf16.mxu0 %v2425_v22 }
  0x25   :  { %2373 = vmatprep.subr.bf16.mxu1 %v2426_v23  ;;  %2295 = vmatprep.mubr.bf16.mxu0 %v2427_v24 }
  0x26   :  { %2327 = vmatprep.mubr.bf16.mxu1 %v2428_v25 }
  0x27   :  { %2342 = vmatpush3.bf16.msra.mxu0 %v2425_v22 }
  0x28   :  { %2374 = vmatpush3.bf16.msra.mxu1 %v2426_v23  ;;  %2343 = vmatprep.subr.bf16.mxu0 %v2431_v27 }
  0x29   :  { %2375 = vmatprep.subr.bf16.mxu1 %v2432_v28 }
  0x2a   :  { %2296 = vmatmul.mubr.bf16.gmra.mrb[4].mxu0 %v2429_v26 }
  0x2b   :  { %2328 = vmatmul.mubr.bf16.gmra.mrb[4].mxu1 %v2430_v29  ;;  %2344 = vmatpush3.bf16.msra.mxu0 %v2431_v27 }
  0x2c   :  { %2376 = vmatpush3.bf16.msra.mxu1 %v2432_v28  ;;  %2345 = vmatprep.subr.bf16.mxu0 %v2433_v30 }
  0x2d   :  { %2377 = vmatprep.subr.bf16.mxu1 %v2434_v31  ;;  %2299 = vmatprep.mubr.bf16.mxu0 %v2435_v32 }
  0x2e   :  { %2331 = vmatprep.mubr.bf16.mxu1 %v2436_v33 }
  0x2f   :  { %2346 = vmatpush3.bf16.msra.mxu0 %v2433_v30 }
  0x30   :  { %2378 = vmatpush3.bf16.msra.mxu1 %v2434_v31  ;;  %2347 = vmatprep.subr.bf16.mxu0 %v2439_v35 }
  0x31   :  { %2379 = vmatprep.subr.bf16.mxu1 %v2440_v36 }
  0x32   :  { %2300 = vmatmul.mubr.bf16.gmra.mrb[8].mxu0 %v2437_v34 }
  0x33   :  { %2332 = vmatmul.mubr.bf16.gmra.mrb[8].mxu1 %v2438_v37  ;;  %2348 = vmatpush3.bf16.msra.mxu0 %v2439_v35 }
  0x34   :  { %2380 = vmatpush3.bf16.msra.mxu1 %v2440_v36  ;;  %2349 = vmatprep.subr.bf16.mxu0 %v2441_v38 }
  0x35   :  { %2381 = vmatprep.subr.bf16.mxu1 %v2442_v39  ;;  %2303 = vmatprep.mubr.bf16.mxu0 %v2443_v40 }
  0x36   :  { %2335 = vmatprep.mubr.bf16.mxu1 %v2444_v41 }
  0x37   :  { %2350 = vmatpush3.bf16.msra.mxu0 %v2441_v38 }
  0x38   :  { %2382 = vmatpush3.bf16.msra.mxu1 %v2442_v39  ;;  %2351 = vmatprep.subr.bf16.mxu0 %v2447_v43 }
  0x39   :  { %2383 = vmatprep.subr.bf16.mxu1 %v2448_v44 }
  0x3a   :  { %2304 = vmatmul.mubr.bf16.gmra.mrb[12].mxu0 %v2445_v42 }
  0x3b   :  { %2336 = vmatmul.mubr.bf16.gmra.mrb[12].mxu1 %v2446_v45  ;;  %2352 = vmatpush3.bf16.msra.mxu0 %v2447_v43 }
  0x3c   :  { %2384 = vmatpush3.bf16.msra.mxu1 %v2448_v44  ;;  %2353 = vmatprep.subr.bf16.mxu0 %v2449_v46 }
  0x3d   :  { %2385 = vmatprep.subr.bf16.mxu1 %v2450_v47  ;;  %2355 = vmatprep.mubr.bf16.mxu0 %v2451_v48 }
  0x3e   :  { %2387 = vmatprep.mubr.bf16.mxu1 %v2452_v49 }
  0x3f   :  { %2354 = vmatpush3.bf16.msra.mxu0 %v2449_v46 }
  0x40   :  { %2386 = vmatpush3.bf16.msra.mxu1 %v2450_v47 }
  0x42   :  { %2356 = vmatmul.mubr.bf16.vlgmr.msra.gmra.mrb[16].mxu0 %v2453_v50 }
  0x43   :  { %2388 = vmatmul.mubr.bf16.vlgmr.msra.gmra.mrb[16].mxu1 %v2454_v51  ;;  %2359 = vmatprep.mubr.bf16.mxu0 %v2455_v52 }
  0x44   :  { %2391 = vmatprep.mubr.bf16.mxu1 %v2456_v53 }
  0x4a   :  { %2360 = vmatmul.mubr.bf16.gmra.mrb[20].mxu0 %v2457_v54 }
  0x4b   :  { %2392 = vmatmul.mubr.bf16.gmra.mrb[20].mxu1 %v2458_v55  ;;  %2363 = vmatprep.mubr.bf16.mxu0 %v2459_v56 }
  0x4c   :  { %2395 = vmatprep.mubr.bf16.mxu1 %v2460_v57 }
  0x52   :  { %2364 = vmatmul.mubr.bf16.gmra.mrb[24].mxu0 %v2461_v58 }
  0x53   :  { %2396 = vmatmul.mubr.bf16.gmra.mrb[24].mxu1 %v2462_v59  ;;  %2367 = vmatprep.mubr.bf16.mxu0 %v2463_v60 }
  0x54   :  { %2399 = vmatprep.mubr.bf16.mxu1 %v2464_v61 }
  0x5a   :  { %2368 = vmatmul.mubr.bf16.gmra.mrb[28].mxu0 %v2465_v62 }
  0x5b   :  { %2400 = vmatmul.mubr.bf16.gmra.mrb[28].mxu1 %v2466_v63 }
  0xf5   :  { %v2676_v0 = vpop.f32.mrb[0].mxu0 }
  0xf6   :  { %v2678_v1 = vpop.f32.mrb[0].mxu1  ;;  %v2680_v2 = vpop.f32.mrb[1].mxu0  ;;  %v260_v14 = vmul.f32 %v2676_v0, %v2676_v0 }
  0xf7   :  { %v2682_v3 = vpop.f32.mrb[1].mxu1  ;;  %v2684_v4 = vpop.f32.mrb[2].mxu0  ;;  %v258_v8 = vmul.f32 %v2680_v2, %v2680_v2  ;;  %v545_v17 = vmul.f32 %v2678_v1, %v2678_v1 }
  0xf8   :  { %v543_v5 = vmul.f32 %v2682_v3, %v2682_v3  ;;  %v2688_v6 = vpop.f32.mrb[2].mxu1  ;;  %v2690_v7 = vpop.f32.mrb[3].mxu0  ;;  %v261_v20 = vmul.f32 %v2684_v4, %v2684_v4 }
  0xf9   :  { %v237_v9 = vadd.f32 %v2690_v7, %v2680_v2  ;;  %v259_v10 = vmul.f32 %v2690_v7, %v2690_v7  ;;  %v2698_v11 = vpop.f32.mrb[3].mxu1  ;;  %v546_v24 = vmul.f32 %v2688_v6, %v2688_v6 }
  0xfa   :  { %v522_v12 = vadd.f32 %v2698_v11, %v2682_v3  ;;  %v544_v13 = vmul.f32 %v2698_v11, %v2698_v11 }
  0xfb   :  { %v238_v15 = vadd.f32 %v2676_v0, %v237_v9  ;;  %v274_v16 = vadd.f32 %v259_v10, %v258_v8 }
  0xfc   :  { %v523_v18 = vadd.f32 %v2678_v1, %v522_v12  ;;  %v559_v19 = vadd.f32 %v544_v13, %v543_v5 }
  0xfd   :  { %v275_v21 = vadd.f32 %v274_v16, %v260_v14  ;;  %v2712_v22 = vpop.f32.mrb[4].mxu0  ;;  %v239_v23 = vadd.f32 %v2684_v4, %v238_v15 }
  0xfe   :  { %v560_v25 = vadd.f32 %v559_v19, %v545_v17  ;;  %v2717_v26 = vpop.f32.mrb[4].mxu1  ;;  %v2719_v27 = vpop.f32.mrb[5].mxu0  ;;  %v524_v28 = vadd.f32 %v2688_v6, %v523_v18  ;;  %v264_v46 = vmul.f32 %v2712_v22, %v2712_v22 }
  0xff   :  { %v240_v29 = vadd.f32 %v239_v23, %v2719_v27  ;;  %v262_v30 = vmul.f32 %v2719_v27, %v2719_v27  ;;  %v276_v31 = vadd.f32 %v275_v21, %v261_v20  ;;  %v2725_v32 = vpop.f32.mrb[5].mxu1  ;;  %v2727_v33 = vpop.f32.mrb[6].mxu0  ;;  %v549_v49 = vmul.f32 %v2717_v26, %v2717_v26 }
 0x100   :  { %v525_v34 = vadd.f32 %v524_v28, %v2725_v32  ;;  %v547_v35 = vmul.f32 %v2725_v32, %v2725_v32  ;;  %v561_v36 = vadd.f32 %v560_v25, %v546_v24  ;;  %v2732_v37 = vpop.f32.mrb[6].mxu1  ;;  %v2734_v38 = vpop.f32.mrb[7].mxu0  ;;  %v265_v52 = vmul.f32 %v2727_v33, %v2727_v33 }
 0x101   :  { %v277_v39 = vadd.f32 %v276_v31, %v262_v30  ;;  %v241_v40 = vadd.f32 %v240_v29, %v2734_v38  ;;  %v263_v41 = vmul.f32 %v2734_v38, %v2734_v38  ;;  %v2739_v42 = vpop.f32.mrb[7].mxu1  ;;  %v550_v56 = vmul.f32 %v2732_v37, %v2732_v37 }
 0x102   :  { %v562_v43 = vadd.f32 %v561_v36, %v547_v35  ;;  %v526_v44 = vadd.f32 %v525_v34, %v2739_v42  ;;  %v548_v45 = vmul.f32 %v2739_v42, %v2739_v42 }
 0x103   :  { %v242_v47 = vadd.f32 %v2712_v22, %v241_v40  ;;  %v278_v48 = vadd.f32 %v277_v39, %v263_v41 }
 0x104   :  { %v527_v50 = vadd.f32 %v2717_v26, %v526_v44  ;;  %v563_v51 = vadd.f32 %v562_v43, %v548_v45 }
 0x105   :  { %v279_v53 = vadd.f32 %v278_v48, %v264_v46  ;;  %v2752_v54 = vpop.f32.mrb[8].mxu0  ;;  %v243_v55 = vadd.f32 %v2727_v33, %v242_v47 }
 0x106   :  { %v564_v57 = vadd.f32 %v563_v51, %v549_v49  ;;  %v2757_v58 = vpop.f32.mrb[8].mxu1  ;;  %v2759_v59 = vpop.f32.mrb[9].mxu0  ;;  %v528_v60 = vadd.f32 %v2732_v37, %v527_v50  ;;  %v268_v23 = vmul.f32 %v2752_v54, %v2752_v54 }
 0x107   :  { %v244_v61 = vadd.f32 %v243_v55, %v2759_v59  ;;  %v266_v62 = vmul.f32 %v2759_v59, %v2759_v59  ;;  %v280_v63 = vadd.f32 %v279_v53, %v265_v52  ;;  %v2765_v5 = vpop.f32.mrb[9].mxu1  ;;  %v2767_v8 = vpop.f32.mrb[10].mxu0  ;;  %v553_v28 = vmul.f32 %v2757_v58, %v2757_v58 }
 0x108   :  { %v529_v9 = vadd.f32 %v528_v60, %v2765_v5  ;;  %v551_v10 = vmul.f32 %v2765_v5, %v2765_v5  ;;  %v565_v12 = vadd.f32 %v564_v57, %v550_v56  ;;  %v2772_v13 = vpop.f32.mrb[10].mxu1  ;;  %v2774_v14 = vpop.f32.mrb[11].mxu0  ;;  %v269_v31 = vmul.f32 %v2767_v8, %v2767_v8 }
 0x109   :  { %v281_v15 = vadd.f32 %v280_v63, %v266_v62  ;;  %v245_v16 = vadd.f32 %v244_v61, %v2774_v14  ;;  %v267_v17 = vmul.f32 %v2774_v14, %v2774_v14  ;;  %v2779_v18 = vpop.f32.mrb[11].mxu1  ;;  %v554_v39 = vmul.f32 %v2772_v13, %v2772_v13 }
 0x10a   :  { %v566_v19 = vadd.f32 %v565_v12, %v551_v10  ;;  %v530_v20 = vadd.f32 %v529_v9, %v2779_v18  ;;  %v552_v21 = vmul.f32 %v2779_v18, %v2779_v18 }
 0x10b   :  { %v246_v24 = vadd.f32 %v2752_v54, %v245_v16  ;;  %v282_v25 = vadd.f32 %v281_v15, %v267_v17 }
 0x10c   :  { %v531_v29 = vadd.f32 %v2757_v58, %v530_v20  ;;  %v567_v30 = vadd.f32 %v566_v19, %v552_v21 }
 0x10d   :  { %v283_v34 = vadd.f32 %v282_v25, %v268_v23  ;;  %v2792_v35 = vpop.f32.mrb[12].mxu0  ;;  %v247_v36 = vadd.f32 %v2767_v8, %v246_v24 }
 0x10e   :  { %v568_v40 = vadd.f32 %v567_v30, %v553_v28  ;;  %v2797_v41 = vpop.f32.mrb[12].mxu1  ;;  %v2799_v43 = vpop.f32.mrb[13].mxu0  ;;  %v532_v44 = vadd.f32 %v2772_v13, %v531_v29  ;;  %v272_v10 = vmul.f32 %v2792_v35, %v2792_v35 }
 0x10f   :  { %3327 = vst [vmem:[#allocation2_spill] sm:$0xff] %v2797_v41  ;;  %v248_v45 = vadd.f32 %v247_v36, %v2799_v43  ;;  %v270_v46 = vmul.f32 %v2799_v43, %v2799_v43  ;;  %v284_v47 = vadd.f32 %v283_v34, %v269_v31  ;;  %v2805_v48 = vpop.f32.mrb[13].mxu1  ;;  %v2807_v49 = vpop.f32.mrb[14].mxu0  ;;  %v557_v16 = vmul.f32 %v2797_v41, %v2797_v41 }
 0x110   :  { %v533_v50 = vadd.f32 %v532_v44, %v2805_v48  ;;  %v555_v51 = vmul.f32 %v2805_v48, %v2805_v48  ;;  %v569_v52 = vadd.f32 %v568_v40, %v554_v39  ;;  %v2812_v53 = vpop.f32.mrb[14].mxu1  ;;  %v2814_v55 = vpop.f32.mrb[15].mxu0  ;;  %v273_v20 = vmul.f32 %v2807_v49, %v2807_v49 }
 0x111   :  { %3328 = vst [vmem:[#allocation3_spill] sm:$0xff] %v2812_v53  ;;  %v285_v56 = vadd.f32 %v284_v47, %v270_v46  ;;  %v249_v57 = vadd.f32 %v248_v45, %v2814_v55  ;;  %v271_v60 = vmul.f32 %v2814_v55, %v2814_v55  ;;  %v2819_v61 = vpop.f32.mrb[15].mxu1  ;;  %v558_v25 = vmul.f32 %v2812_v53, %v2812_v53 }
 0x112   :  { %v570_v62 = vadd.f32 %v569_v52, %v555_v51  ;;  %v534_v63 = vadd.f32 %v533_v50, %v2819_v61  ;;  %v556_v9 = vmul.f32 %v2819_v61, %v2819_v61 }
 0x113   :  { %v250_v12 = vadd.f32 %v2792_v35, %v249_v57  ;;  %v286_v15 = vadd.f32 %v285_v56, %v271_v60 }
 0x114   :  { %v535_v17 = vadd.f32 %v2797_v41, %v534_v63  ;;  %v571_v19 = vadd.f32 %v570_v62, %v556_v9 }
 0x115   :  { %v251_v21 = vadd.f32 %v2807_v49, %v250_v12  ;;  %v287_v23 = vadd.f32 %v286_v15, %v272_v10  ;;  %v2833_v24 = vpop.f32.mrb[16].mxu0 }
 0x116   :  { %3329 = vst [vmem:[#allocation4_spill] sm:$0xff] %v2833_v24  ;;  %v536_v28 = vadd.f32 %v2812_v53, %v535_v17  ;;  %v572_v29 = vadd.f32 %v571_v19, %v557_v16  ;;  %v2838_v30 = vpop.f32.mrb[16].mxu1  ;;  %v2840_v31 = vpop.f32.mrb[17].mxu0  ;;  %v832_v39 = vmul.f32 %v2833_v24, %v2833_v24 }
 0x117   :  { %3330 = vst [vmem:[#allocation5_spill] sm:$0xff] %v2838_v30  ;;  %3331 = vst [vmem:[#allocation6_spill] sm:$0xff] %v2840_v31  ;;  %v252_v34 = vrot.slane %v251_v21, 4  ;;  %v288_v36 = vadd.f32 %v287_v23, %v273_v20  ;;  %v2844_v40 = vpop.f32.mrb[17].mxu1  ;;  %v2846_v44 = vpop.f32.mrb[18].mxu0  ;;  %v1119_v47 = vmul.f32 %v2838_v30, %v2838_v30  ;;  %v830_v50 = vmul.f32 %v2840_v31, %v2840_v31 }
 0x118   :  { %3332 = vst [vmem:[#allocation7_spill] sm:$0xff] %v2844_v40  ;;  %3333 = vst [vmem:[#allocation8_spill] sm:$0xff] %v2846_v44  ;;  %v537_v45 = vrot.slane %v536_v28, 4  ;;  %v573_v46 = vadd.f32 %v572_v29, %v558_v25  ;;  %v2852_v51 = vpop.f32.mrb[18].mxu1  ;;  %v2854_v52 = vpop.f32.mrb[19].mxu0  ;;  %v1117_v60 = vmul.f32 %v2844_v40, %v2844_v40 }
 0x119   :  { %3334 = vst [vmem:[#allocation9_spill] sm:$0xff] %v2852_v51  ;;  %3335 = vst [vmem:[#allocation10_spill] sm:$0xff] %v2854_v52  ;;  %v253_v56 = vadd.f32 %v252_v34, %v251_v21  ;;  %v289_v57 = vrot.slane %v288_v36, 4  ;;  %v809_v62 = vadd.f32 %v2854_v52, %v2840_v31  ;;  %v2860_v63 = vpop.f32.mrb[19].mxu1  ;;  %v831_v12 = vmul.f32 %v2854_v52, %v2854_v52 }
 0x11a   :  { %3336 = vst [vmem:[#allocation11_spill] sm:$0xff] %v2860_v63  ;;  %v538_v9 = vadd.f32 %v537_v45, %v536_v28  ;;  %v574_v10 = vrot.slane %v573_v46, 4  ;;  %v1096_v15 = vadd.f32 %v2860_v63, %v2844_v40  ;;  %v1118_v20 = vmul.f32 %v2860_v63, %v2860_v63 }
 0x11b   :  { %v254_v16 = vrot.slane %v253_v56, 2  ;;  %v290_v17 = vadd.f32 %v289_v57, %v288_v36  ;;  %v810_v19 = vadd.f32 %v2833_v24, %v809_v62  ;;  %v846_v25 = vadd.f32 %v831_v12, %v830_v50 }
 0x11c   :  { %v539_v21 = vrot.slane %v538_v9, 2  ;;  %v575_v23 = vadd.f32 %v574_v10, %v573_v46  ;;  %v1097_v29 = vadd.f32 %v2838_v30, %v1096_v15  ;;  %v1133_v45 = vadd.f32 %v1118_v20, %v1117_v60 }
 0x11d   :  { %v255_v28 = vadd.f32 %v254_v16, %v253_v56  ;;  %v291_v34 = vrot.slane %v290_v17, 2  ;;  %v2870_v31 = vpop.f32.mrb[20].mxu0  ;;  %v811_v52 = vadd.f32 %v2846_v44, %v810_v19  ;;  %v833_v36 = vmul.f32 %v2846_v44, %v2846_v44 }
 0x11e   :  { %v540_v40 = vadd.f32 %v539_v21, %v538_v9  ;;  %v576_v53 = vrot.slane %v575_v23, 2  ;;  %v847_v57 = vadd.f32 %v846_v25, %v832_v39  ;;  %v2875_v62 = vpop.f32.mrb[20].mxu1  ;;  %v2877_v63 = vpop.f32.mrb[21].mxu0  ;;  %v1120_v56 = vmul.f32 %v2852_v51, %v2852_v51 }
 0x11f   :  { %3337 = vst [vmem:[#allocation12_spill] sm:$0xff] %v2875_v62  ;;  %3338 = vst [vmem:[#allocation13_spill] sm:$0xff] %v2877_v63  ;;  %v256_v46 = vrot.slane %v255_v28, 1  ;;  %v292_v50 = vadd.f32 %v291_v34, %v290_v17  ;;  %v1134_v60 = vadd.f32 %v1133_v45, %v1119_v47  ;;  %v2881_v10 = vpop.f32.mrb[21].mxu1  ;;  %v2883_v12 = vpop.f32.mrb[22].mxu0  ;;  %v812_v16 = vadd.f32 %v811_v52, %v2877_v63 }
 0x120   :  { %3339 = vst [vmem:[#allocation14_spill] sm:$0xff] %v2881_v10  ;;  %3340 = vst [vmem:[#allocation15_spill] sm:$0xff] %v2883_v12  ;;  %v541_v9 = vrot.slane %v540_v40, 1  ;;  %v577_v15 = vadd.f32 %v576_v53, %v575_v23  ;;  %v834_v39 = vmul.f32 %v2877_v63, %v2877_v63  ;;  %v2888_v19 = vpop.f32.mrb[22].mxu1  ;;  %v2890_v20 = vpop.f32.mrb[23].mxu0  ;;  %v848_v25 = vadd.f32 %v847_v57, %v833_v36 }
 0x121   :  { %3341 = vst [vmem:[#allocation16_spill] sm:$0xff] %v2888_v19  ;;  %v257_v17 = vadd.f32 %v256_v46, %v255_v28  ;;  %v293_v21 = vrot.slane %v292_v50, 1  ;;  %v1098_v47 = vadd.f32 %v2852_v51, %v1097_v29  ;;  %v2893_v34 = vpop.f32.mrb[23].mxu1  ;;  %v1121_v53 = vmul.f32 %v2881_v10, %v2881_v10 }
 0x122   :  { %3342 = vst [vmem:[#allocation17_spill] sm:$0xff] %v2893_v34  ;;  %v542_v45 = vadd.f32 %v541_v9, %v540_v40  ;;  %v578_v30 = vrot.slane %v577_v15, 1  ;;  %v1135_v52 = vadd.f32 %v1134_v60, %v1120_v56  ;;  %v849_v44 = vadd.f32 %v848_v25, %v834_v39 }
 0x123   :  { %v294_v23 = vadd.f32 %v293_v21, %v292_v50  ;;  %v1099_v63 = vadd.f32 %v1098_v47, %v2881_v10  ;;  %v813_v36 = vadd.f32 %v812_v16, %v2890_v20  ;;  %v835_v29 = vmul.f32 %v2890_v20, %v2890_v20 }
 0x124   :  { %v579_v24 = vadd.f32 %v578_v30, %v577_v15  ;;  %v2898_v41 = vadd.f32 %v542_v45, %v257_v17  ;;  %v1136_v28 = vadd.f32 %v1135_v52, %v1121_v53  ;;  %v1122_v57 = vmul.f32 %v2893_v34, %v2893_v34 }
 0x125   :  { %v1100_v40 = vadd.f32 %v1099_v63, %v2893_v34  ;;  %v2906_v46 = vpop.f32.mrb[24].mxu0  ;;  %v836_v30 = vmul.f32 %v2870_v31, %v2870_v31  ;;  %v1123_v56 = vmul.f32 %v2875_v62, %v2875_v62  ;;  %v814_v15 = vadd.f32 %v2870_v31, %v813_v36 }
 0x126   :  { %3343 = vst [vmem:[#allocation18_spill] sm:$0xff] %v2906_v46  ;;  %v2908_v50 = vadd.f32 %v579_v24, %v294_v23  ;;  %v2914_v60 = vpop.f32.mrb[24].mxu1  ;;  %v2916_v9 = vpop.f32.mrb[25].mxu0  ;;  %v850_v63 = vadd.f32 %v849_v44, %v835_v29  ;;  %v1137_v39 = vadd.f32 %v1136_v28, %v1122_v57  ;;  %v837_v21 = vmul.f32 %v2883_v12, %v2883_v12 }
 0x127   :  { %3344 = vst [vmem:[#allocation19_spill] sm:$0xff] %v2914_v60  ;;  %3345 = vst [vmem:[#allocation20_spill] sm:$0xff] %v2916_v9  ;;  %v1101_v16 = vadd.f32 %v2875_v62, %v1100_v40  ;;  %v2920_v17 = vpop.f32.mrb[25].mxu1  ;;  %v2922_v24 = vpop.f32.mrb[26].mxu0  ;;  %v1124_v25 = vmul.f32 %v2888_v19, %v2888_v19  ;;  %v838_v47 = vmul.f32 %v2916_v9, %v2916_v9 }
 0x128   :  { %3346 = vst [vmem:[#allocation21_spill] sm:$0xff] %v2920_v17  ;;  %3347 = vst [vmem:[#allocation22_spill] sm:$0xff] %v2922_v24  ;;  %v1125_v45 = vmul.f32 %v2920_v17, %v2920_v17  ;;  %v2932_v44 = vpop.f32.mrb[26].mxu1  ;;  %v2934_v53 = vpop.f32.mrb[27].mxu0  ;;  %v851_v52 = vadd.f32 %v850_v63, %v836_v30  ;;  %v1138_v23 = vadd.f32 %v1137_v39, %v1123_v56 }
 0x129   :  { %3348 = vst [vmem:[#allocation23_spill] sm:$0xff] %v2932_v44  ;;  %3349 = vst [vmem:[#allocation24_spill] sm:$0xff] %v2934_v53  ;;  %v815_v28 = vadd.f32 %v2883_v12, %v814_v15  ;;  %v1102_v36 = vadd.f32 %v2888_v19, %v1101_v16  ;;  %v2938_v29 = vpop.f32.mrb[27].mxu1  ;;  %v839_v40 = vmul.f32 %v2934_v53, %v2934_v53 }
 0x12a   :  { %3350 = vst [vmem:[#allocation25_spill] sm:$0xff] %v2938_v29  ;;  %v1126_v57 = vmul.f32 %v2938_v29, %v2938_v29  ;;  %v852_v34 = vadd.f32 %v851_v52, %v837_v21  ;;  %v1139_v51 = vadd.f32 %v1138_v23, %v1124_v25  ;;  %v840_v39 = vmul.f32 %v2906_v46, %v2906_v46 }
 0x12b   :  { %v816_v62 = vadd.f32 %v815_v28, %v2916_v9  ;;  %v1103_v10 = vadd.f32 %v1102_v36, %v2920_v17  ;;  %v1127_v19 = vmul.f32 %v2914_v60, %v2914_v60  ;;  %v1128_v52 = vmul.f32 %v2932_v44, %v2932_v44 }
 0x12c   :  { %v853_v30 = vadd.f32 %v852_v34, %v838_v47  ;;  %v1140_v56 = vadd.f32 %v1139_v51, %v1125_v45  ;;  %v841_v45 = vmul.f32 %v2922_v24, %v2922_v24 }
 0x12d   :  { %v817_v15 = vadd.f32 %v816_v62, %v2934_v53  ;;  %v1104_v63 = vadd.f32 %v1103_v10, %v2938_v29  ;;  %v2948_v16 = vpop.f32.mrb[28].mxu0 }
 0x12e   :  { %3351 = vst [vmem:[#allocation26_spill] sm:$0xff] %v2948_v16  ;;  %v2954_v12 = vpop.f32.mrb[28].mxu1  ;;  %v2956_v21 = vpop.f32.mrb[29].mxu0  ;;  %v854_v34 = vadd.f32 %v853_v30, %v839_v40  ;;  %v1141_v62 = vadd.f32 %v1140_v56, %v1126_v57 }
 0x12f   :  { %3352 = vst [vmem:[#allocation27_spill] sm:$0xff] %v2954_v12  ;;  %v818_v25 = vadd.f32 %v2906_v46, %v817_v15  ;;  %v1105_v51 = vadd.f32 %v2914_v60, %v1104_v63  ;;  %v2960_v47 = vpop.f32.mrb[29].mxu1  ;;  %v2962_v10 = vpop.f32.mrb[30].mxu0  ;;  %v842_v23 = vmul.f32 %v2956_v21, %v2956_v21 }
 0x130   :  { %3353 = vst [vmem:[#allocation28_spill] sm:$0xff] %v2960_v47  ;;  %v1129_v28 = vmul.f32 %v2960_v47, %v2960_v47  ;;  %v2972_v36 = vpop.f32.mrb[30].mxu1  ;;  %v2974_v40 = vpop.f32.mrb[31].mxu0  ;;  %v855_v57 = vadd.f32 %v854_v34, %v840_v39  ;;  %v1142_v30 = vadd.f32 %v1141_v62, %v1127_v19  ;;  %v1131_v62 = vmul.f32 %v2954_v12, %v2954_v12 }
 0x131   :  { %3354 = vst [vmem:[#allocation29_spill] sm:$0xff] %v2974_v40  ;;  %v819_v56 = vadd.f32 %v2922_v24, %v818_v25  ;;  %v1106_v15 = vadd.f32 %v2932_v44, %v1105_v51  ;;  %v2978_v63 = vpop.f32.mrb[31].mxu1  ;;  %v843_v60 = vmul.f32 %v2974_v40, %v2974_v40  ;;  %v844_v51 = vmul.f32 %v2948_v16, %v2948_v16 }
 0x132   :  { %3355 = vst [vmem:[#allocation30_spill] sm:$0xff] %v2978_v63  ;;  %v1130_v29 = vmul.f32 %v2978_v63, %v2978_v63  ;;  %v856_v46 = vadd.f32 %v855_v57, %v841_v45  ;;  %v1143_v9 = vadd.f32 %v1142_v30, %v1128_v52 }
 0x133   :  { %v820_v17 = vadd.f32 %v819_v56, %v2956_v21  ;;  %v1107_v53 = vadd.f32 %v1106_v15, %v2960_v47 }
 0x134   :  { %v857_v39 = vadd.f32 %v856_v46, %v842_v23  ;;  %v1144_v19 = vadd.f32 %v1143_v9, %v1129_v28  ;;  %v845_v46 = vmul.f32 %v2962_v10, %v2962_v10  ;;  %v1132_v9 = vmul.f32 %v2972_v36, %v2972_v36 }
 0x135   :  { %v821_v25 = vadd.f32 %v820_v17, %v2974_v40  ;;  %v1108_v34 = vadd.f32 %v1107_v53, %v2978_v63 }
 0x136   :  { %v858_v24 = vadd.f32 %v857_v39, %v843_v60  ;;  %v1145_v57 = vadd.f32 %v1144_v19, %v1130_v29 }
 0x137   :  { %v822_v44 = vadd.f32 %v2948_v16, %v821_v25  ;;  %v1109_v45 = vadd.f32 %v2954_v12, %v1108_v34 }
 0x138   :  { %v859_v53 = vadd.f32 %v858_v24, %v844_v51  ;;  %v1146_v23 = vadd.f32 %v1145_v57, %v1131_v62 }
 0x139   :  { %v823_v17 = vadd.f32 %v2962_v10, %v822_v44  ;;  %v1110_v52 = vadd.f32 %v2972_v36, %v1109_v45 }
 0x13a   :  { %v860_v30 = vadd.f32 %v859_v53, %v845_v46  ;;  %v1147_v15 = vadd.f32 %v1146_v23, %v1132_v9 }
 0x13b   :  { %v824_v28 = vrot.slane %v823_v17, 4  ;;  %v1111_v56 = vrot.slane %v1110_v52, 4 }
 0x13c   :  { %v861_v39 = vrot.slane %v860_v30, 4  ;;  %v1148_v29 = vrot.slane %v1147_v15, 4 }
 0x13d   :  { %v825_v60 = vadd.f32 %v824_v28, %v823_v17  ;;  %v1112_v25 = vadd.f32 %v1111_v56, %v1110_v52 }
 0x13e   :  { %v862_v34 = vadd.f32 %v861_v39, %v860_v30  ;;  %v1149_v63 = vadd.f32 %v1148_v29, %v1147_v15 }
 0x13f   :  { %v826_v19 = vrot.slane %v825_v60, 2  ;;  %v1113_v12 = vrot.slane %v1112_v25, 2 }
 0x140   :  { %v863_v16 = vrot.slane %v862_v34, 2  ;;  %v1150_v44 = vrot.slane %v1149_v63, 2 }
 0x141   :  { %v827_v47 = vadd.f32 %v826_v19, %v825_v60  ;;  %v1114_v40 = vadd.f32 %v1113_v12, %v1112_v25 }
 0x142   :  { %v864_v51 = vadd.f32 %v863_v16, %v862_v34  ;;  %v1151_v62 = vadd.f32 %v1150_v44, %v1149_v63 }
 0x143   :  { %v828_v24 = vrot.slane %v827_v47, 1  ;;  %v1115_v45 = vrot.slane %v1114_v40, 1 }
 0x144   :  { %v865_v46 = vrot.slane %v864_v51, 1  ;;  %v1152_v53 = vrot.slane %v1151_v62, 1 }
 0x145   :  { %v829_v57 = vadd.f32 %v828_v24, %v827_v47  ;;  %v1116_v52 = vadd.f32 %v1115_v45, %v1114_v40 }
 0x146   :  { %v866_v9 = vadd.f32 %v865_v46, %v864_v51  ;;  %v1153_v28 = vadd.f32 %v1152_v53, %v1151_v62 }
 0x147   :  { %v867_v17 = vadd.f32 %v829_v57, %v2898_v41 }
 0x148   :  { %v868_v23 = vadd.f32 %v866_v9, %v2908_v50 }
 0x149   :  { %v1154_v30 = vadd.f32 %v1116_v52, %v867_v17 }
 0x14a   :  { %v1155_v56 = vadd.f32 %v1153_v28, %v868_v23 }
 0x14b   :  { %v1156_v15 = vmul.f32 0.001953125, %v1154_v30 }
 0x14c   :  { %v1157_v60 = vmul.f32 0.001953125, %v1155_v56 }
 0x14d   :  { %v1158_v12 = vmul.f32 %v1156_v15, %v1156_v15  ;;  %v1163_v63 = vsub.f32 0.0, %v1156_v15 }
 0x14f   :  { %v1159_v39 = vsub.f32 %v1157_v60, %v1158_v12 }
 0x151   :  { %v1160_v25 = vmax.f32 %v1159_v39, 0.0 }
 0x153   :  { %v1161_v16 = vadd.f32 1e-05, %v1160_v25 }
 0x155   :  { %2467 = vrsqrt.f32 %v1161_v16 }
 0x15f   :  { %v3002_v47 = vpop.eup %2467 }
 0x160   :  { %v3005_v29 = vmul.f32 %v3002_v47, %v1163_v63  ;;  %v1165_v41 = vmul.f32 %v3002_v47, %v2680_v2  ;;  %v1166_v50 = vmul.f32 %v3002_v47, %v2690_v7  ;;  %v1167_v40 = vmul.f32 %v3002_v47, %v2676_v0 }
 0x161   :  { %v1168_v19 = vmul.f32 %v3002_v47, %v2684_v4  ;;  %v1169_v34 = vmul.f32 %v3002_v47, %v2719_v27  ;;  %v1170_v44 = vmul.f32 %v3002_v47, %v2734_v38  ;;  %v1171_v24 = vmul.f32 %v3002_v47, %v2712_v22 }
 0x162   :  { %v1172_v2 = vmul.f32 %v3002_v47, %v2727_v33  ;;  %v1173_v7 = vmul.f32 %v3002_v47, %v2759_v59  ;;  %v1174_v0 = vmul.f32 %v3002_v47, %v2774_v14  ;;  %v1175_v4 = vmul.f32 %v3002_v47, %v2752_v54 }
 0x163   :  { %v1176_v27 = vmul.f32 %v3002_v47, %v2767_v8  ;;  %v1177_v38 = vmul.f32 %v3002_v47, %v2799_v43  ;;  %v1178_v22 = vmul.f32 %v3002_v47, %v2814_v55  ;;  %v1179_v33 = vmul.f32 %v3002_v47, %v2792_v35 }
 0x164   :  { %v1180_v59 = vmul.f32 %v3002_v47, %v2807_v49  ;;  %v1181_v14 = vadd.f32 %v1165_v41, %v3005_v29  ;;  %v1182_v51 = vadd.f32 %v1166_v50, %v3005_v29  ;;  %v1183_v54 = vadd.f32 %v1167_v40, %v3005_v29 }
 0x165   :  { %v1184_v8 = vadd.f32 %v1168_v19, %v3005_v29  ;;  %v1185_v45 = vadd.f32 %v1169_v34, %v3005_v29  ;;  %v1186_v43 = vadd.f32 %v1170_v44, %v3005_v29  ;;  %v1187_v55 = vadd.f32 %v1171_v24, %v3005_v29 }
 0x166   :  { %v1188_v62 = vadd.f32 %v1172_v2, %v3005_v29  ;;  %v1189_v35 = vadd.f32 %v1173_v7, %v3005_v29  ;;  %v1190_v49 = vadd.f32 %v1174_v0, %v3005_v29  ;;  %v1191_v57 = vadd.f32 %v1175_v4, %v3005_v29 }
 0x167   :  { %v1192_v46 = vadd.f32 %v1176_v27, %v3005_v29  ;;  %v1193_v53 = vadd.f32 %v1177_v38, %v3005_v29  ;;  %v1194_v9 = vadd.f32 %v1178_v22, %v3005_v29  ;;  %v1195_v17 = vadd.f32 %v1179_v33, %v3005_v29 }
 0x168   :  { %v1196_v52 = vadd.f32 %v1180_v59, %v3005_v29  ;;  %v1197_v23 = vmax.f32 %v1181_v14, 0.0  ;;  %v1198_v28 = vmax.f32 %v1182_v51, 0.0  ;;  %v1199_v30 = vmax.f32 %v1183_v54, 0.0 }
 0x169   :  { %v1200_v56 = vmax.f32 %v1184_v8, 0.0  ;;  %v1201_v15 = vmax.f32 %v1185_v45, 0.0  ;;  %v1202_v60 = vmax.f32 %v1186_v43, 0.0  ;;  %v1203_v12 = vmax.f32 %v1187_v55, 0.0  ;;  %v3356_v45 = vld [vmem:[#allocation2_spill] sm:$0xff]  ;;  %v3357_v43 = vld [vmem:[#allocation3_spill] sm:$0xff] }
 0x16a   :  { %v1204_v39 = vmax.f32 %v1188_v62, 0.0  ;;  %v1205_v25 = vmax.f32 %v1189_v35, 0.0  ;;  %v1206_v16 = vmax.f32 %v1190_v49, 0.0  ;;  %v1207_v63 = vmax.f32 %v1191_v57, 0.0 }
 0x16b   :  { %v1208_v41 = vmax.f32 %v1192_v46, 0.0  ;;  %v1209_v50 = vmax.f32 %v1193_v53, 0.0  ;;  %v1210_v40 = vmax.f32 %v1194_v9, 0.0  ;;  %v1211_v19 = vmax.f32 %v1195_v17, 0.0 }
 0x16c   :  { %v1212_v34 = vmax.f32 %v1196_v52, 0.0  ;;  %v2023_v44 = vpack.c.bf16 %v1198_v28, %v1197_v23  ;;  %v2028_v24 = vpack.c.bf16 %v1200_v56, %v1199_v30  ;;  %v2033_v2 = vpack.c.bf16 %v1202_v60, %v1201_v15 }
 0x16d   :  { %v2038_v7 = vpack.c.bf16 %v1204_v39, %v1203_v12  ;;  %v2043_v0 = vpack.c.bf16 %v1206_v16, %v1205_v25  ;;  %v2048_v4 = vpack.c.bf16 %v1208_v41, %v1207_v63  ;;  %v2053_v27 = vpack.c.bf16 %v1210_v40, %v1209_v50 }
 0x16e   :  { %2024 = vst [vmem:[%s3297_s2] sm:$0xff] %v2023_v44   ;;  %2180 = vst [vmem:[%s3297_s2 + $0x8] sm:$0xff] %v2028_v24   ;;  %v2058_v38 = vpack.c.bf16 %v1212_v34, %v1211_v19  ;;  %v1293_v22 = vmul.f32 %v3002_v47, %v2682_v3  ;;  %v1294_v33 = vmul.f32 %v3002_v47, %v2698_v11 }
 0x16f   :  { %2181 = vst [vmem:[%s3297_s2 + $0x10] sm:$0xff] %v2033_v2   ;;  %v1295_v59 = vmul.f32 %v3002_v47, %v2678_v1  ;;  %2182 = vst [vmem:[%s3297_s2 + $0x18] sm:$0xff] %v2038_v7   ;;  %v1296_v3 = vmul.f32 %v3002_v47, %v2688_v6  ;;  %v1297_v1 = vmul.f32 %v3002_v47, %v2725_v32 }
 0x170   :  { %2183 = vst [vmem:[%s3297_s2 + $0x20] sm:$0xff] %v2043_v0   ;;  %2184 = vst [vmem:[%s3297_s2 + $0x28] sm:$0xff] %v2048_v4   ;;  %v1298_v11 = vmul.f32 %v3002_v47, %v2739_v42  ;;  %v1299_v14 = vmul.f32 %v3002_v47, %v2717_v26  ;;  %v1300_v51 = vmul.f32 %v3002_v47, %v2732_v37 }
 0x171   :  { %2185 = vst [vmem:[%s3297_s2 + $0x30] sm:$0xff] %v2053_v27   ;;  %2186 = vst [vmem:[%s3297_s2 + $0x38] sm:$0xff] %v2058_v38   ;;  %v1301_v54 = vmul.f32 %v3002_v47, %v2765_v5  ;;  %v1302_v6 = vmul.f32 %v3002_v47, %v2779_v18  ;;  %v1303_v32 = vmul.f32 %v3002_v47, %v2757_v58 }
 0x172   :  { %v1304_v42 = vmul.f32 %v3002_v47, %v2772_v13  ;;  %v1305_v26 = vmul.f32 %v3002_v47, %v2805_v48  ;;  %v1306_v8 = vmul.f32 %v3002_v47, %v2819_v61  ;;  %v1307_v37 = vmul.f32 %v3002_v47, %v3356_v45 }
 0x173   :  { %v1308_v5 = vmul.f32 %v3002_v47, %v3357_v43  ;;  %v1309_v18 = vadd.f32 %v1293_v22, %v3005_v29  ;;  %v1310_v55 = vadd.f32 %v1294_v33, %v3005_v29  ;;  %v1311_v58 = vadd.f32 %v1295_v59, %v3005_v29  ;;  %v3358_v33 = vld [vmem:[#allocation6_spill] sm:$0xff] }
 0x174   :  { %v1312_v13 = vadd.f32 %v1296_v3, %v3005_v29  ;;  %v1313_v62 = vadd.f32 %v1297_v1, %v3005_v29  ;;  %v1314_v48 = vadd.f32 %v1298_v11, %v3005_v29  ;;  %v1315_v61 = vadd.f32 %v1299_v14, %v3005_v29  ;;  %v3359_v3 = vld [vmem:[#allocation10_spill] sm:$0xff]  ;;  %v3360_v11 = vld [vmem:[#allocation4_spill] sm:$0xff] }
 0x175   :  { %v1316_v35 = vadd.f32 %v1300_v51, %v3005_v29  ;;  %v1317_v49 = vadd.f32 %v1301_v54, %v3005_v29  ;;  %v1318_v57 = vadd.f32 %v1302_v6, %v3005_v29  ;;  %v1319_v46 = vadd.f32 %v1303_v32, %v3005_v29  ;;  %v3361_v51 = vld [vmem:[#allocation8_spill] sm:$0xff]  ;;  %v3362_v6 = vld [vmem:[#allocation13_spill] sm:$0xff] }
 0x176   :  { %v1320_v53 = vadd.f32 %v1304_v42, %v3005_v29  ;;  %v1321_v9 = vadd.f32 %v1305_v26, %v3005_v29  ;;  %v1322_v17 = vadd.f32 %v1306_v8, %v3005_v29  ;;  %v1323_v52 = vadd.f32 %v1307_v37, %v3005_v29  ;;  %v3363_v8 = vld [vmem:[#allocation15_spill] sm:$0xff]  ;;  %v3364_v37 = vld [vmem:[#allocation20_spill] sm:$0xff] }
 0x177   :  { %v1324_v23 = vadd.f32 %v1308_v5, %v3005_v29  ;;  %v1325_v28 = vmax.f32 %v1309_v18, 0.0  ;;  %v1326_v30 = vmax.f32 %v1310_v55, 0.0  ;;  %v1327_v56 = vmax.f32 %v1311_v58, 0.0  ;;  %v3365_v5 = vld [vmem:[#allocation24_spill] sm:$0xff]  ;;  %v3366_v55 = vld [vmem:[#allocation18_spill] sm:$0xff] }
 0x178   :  { %v1328_v15 = vmax.f32 %v1312_v13, 0.0  ;;  %v1329_v60 = vmax.f32 %v1313_v62, 0.0  ;;  %v1330_v12 = vmax.f32 %v1314_v48, 0.0  ;;  %v1331_v39 = vmax.f32 %v1315_v61, 0.0  ;;  %v3368_v62 = vld [vmem:[#allocation29_spill] sm:$0xff]  ;;  %v3369_v61 = vld [vmem:[#allocation26_spill] sm:$0xff] }
 0x179   :  { %v1332_v25 = vmax.f32 %v1316_v35, 0.0  ;;  %v1333_v16 = vmax.f32 %v1317_v49, 0.0  ;;  %v1334_v63 = vmax.f32 %v1318_v57, 0.0  ;;  %v1335_v41 = vmax.f32 %v1319_v46, 0.0 }
 0x17a   :  { %v1336_v50 = vmax.f32 %v1320_v53, 0.0  ;;  %v1337_v40 = vmax.f32 %v1321_v9, 0.0  ;;  %v1338_v19 = vmax.f32 %v1322_v17, 0.0  ;;  %v1339_v34 = vmax.f32 %v1323_v52, 0.0 }
 0x17b   :  { %v1340_v44 = vmax.f32 %v1324_v23, 0.0  ;;  %v2063_v24 = vpack.c.bf16 %v1326_v30, %v1325_v28  ;;  %v2068_v2 = vpack.c.bf16 %v1328_v15, %v1327_v56  ;;  %v2073_v7 = vpack.c.bf16 %v1330_v12, %v1329_v60 }
 0x17c   :  { %v2078_v0 = vpack.c.bf16 %v1332_v25, %v1331_v39  ;;  %v2083_v4 = vpack.c.bf16 %v1334_v63, %v1333_v16  ;;  %v2088_v27 = vpack.c.bf16 %v1336_v50, %v1335_v41  ;;  %v2093_v38 = vpack.c.bf16 %v1338_v19, %v1337_v40 }
 0x17d   :  { %2187 = vst [vmem:[%s3297_s2 + $0x40] sm:$0xff] %v2063_v24   ;;  %2188 = vst [vmem:[%s3297_s2 + $0x48] sm:$0xff] %v2068_v2   ;;  %v2098_v22 = vpack.c.bf16 %v1340_v44, %v1339_v34  ;;  %v1422_v59 = vmul.f32 %v3002_v47, %v3358_v33  ;;  %v1423_v1 = vmul.f32 %v3002_v47, %v3359_v3 }
 0x17e   :  { %2189 = vst [vmem:[%s3297_s2 + $0x50] sm:$0xff] %v2073_v7   ;;  %v1424_v14 = vmul.f32 %v3002_v47, %v3360_v11  ;;  %2190 = vst [vmem:[%s3297_s2 + $0x58] sm:$0xff] %v2078_v0   ;;  %v1425_v54 = vmul.f32 %v3002_v47, %v3361_v51  ;;  %v1426_v32 = vmul.f32 %v3002_v47, %v3362_v6 }
 0x17f   :  { %2191 = vst [vmem:[%s3297_s2 + $0x60] sm:$0xff] %v2083_v4   ;;  %2192 = vst [vmem:[%s3297_s2 + $0x68] sm:$0xff] %v2088_v27   ;;  %v1427_v42 = vmul.f32 %v3002_v47, %v2890_v20  ;;  %v1428_v26 = vmul.f32 %v3002_v47, %v2870_v31  ;;  %v1429_v45 = vmul.f32 %v3002_v47, %v3363_v8  ;;  %v3367_v20 = vld [vmem:[#allocation22_spill] sm:$0xff] }
 0x180   :  { %2193 = vst [vmem:[%s3297_s2 + $0x70] sm:$0xff] %v2093_v38   ;;  %2194 = vst [vmem:[%s3297_s2 + $0x78] sm:$0xff] %v2098_v22   ;;  %v1430_v43 = vmul.f32 %v3002_v47, %v3364_v37  ;;  %v1431_v18 = vmul.f32 %v3002_v47, %v3365_v5  ;;  %v1432_v58 = vmul.f32 %v3002_v47, %v3366_v55 }
 0x181   :  { %v1433_v13 = vmul.f32 %v3002_v47, %v3367_v20  ;;  %v1434_v31 = vmul.f32 %v3002_v47, %v2956_v21  ;;  %v1435_v48 = vmul.f32 %v3002_v47, %v3368_v62  ;;  %v1436_v35 = vmul.f32 %v3002_v47, %v3369_v61  ;;  %v3378_v62 = vld [vmem:[#allocation21_spill] sm:$0xff] }
 0x182   :  { %v1437_v49 = vmul.f32 %v3002_v47, %v2962_v10  ;;  %v1438_v57 = vadd.f32 %v1422_v59, %v3005_v29  ;;  %v1439_v46 = vadd.f32 %v1423_v1, %v3005_v29  ;;  %v1440_v53 = vadd.f32 %v1424_v14, %v3005_v29  ;;  %v3379_v61 = vld [vmem:[#allocation25_spill] sm:$0xff] }
 0x183   :  { %v1441_v9 = vadd.f32 %v1425_v54, %v3005_v29  ;;  %v1442_v17 = vadd.f32 %v1426_v32, %v3005_v29  ;;  %v1443_v21 = vadd.f32 %v1427_v42, %v3005_v29  ;;  %v1444_v52 = vadd.f32 %v1428_v26, %v3005_v29  ;;  %v3370_v54 = vld [vmem:[#allocation7_spill] sm:$0xff]  ;;  %v3372_v26 = vld [vmem:[#allocation5_spill] sm:$0xff] }
 0x184   :  { %v1445_v23 = vadd.f32 %v1429_v45, %v3005_v29  ;;  %v1446_v28 = vadd.f32 %v1430_v43, %v3005_v29  ;;  %v1447_v10 = vadd.f32 %v1431_v18, %v3005_v29  ;;  %v1448_v30 = vadd.f32 %v1432_v58, %v3005_v29  ;;  %v3371_v32 = vld [vmem:[#allocation11_spill] sm:$0xff]  ;;  %v3373_v45 = vld [vmem:[#allocation9_spill] sm:$0xff]  ;;  %v3374_v43 = vld [vmem:[#allocation14_spill] sm:$0xff] }
 0x185   :  { %v1449_v56 = vadd.f32 %v1433_v13, %v3005_v29  ;;  %v1450_v15 = vadd.f32 %v1434_v31, %v3005_v29  ;;  %v1451_v60 = vadd.f32 %v1435_v48, %v3005_v29  ;;  %v1452_v12 = vadd.f32 %v1436_v35, %v3005_v29  ;;  %v3375_v18 = vld [vmem:[#allocation17_spill] sm:$0xff]  ;;  %v3376_v58 = vld [vmem:[#allocation12_spill] sm:$0xff] }
 0x186   :  { %v1453_v39 = vadd.f32 %v1437_v49, %v3005_v29  ;;  %v1454_v25 = vmax.f32 %v1438_v57, 0.0  ;;  %v1455_v16 = vmax.f32 %v1439_v46, 0.0  ;;  %v1456_v63 = vmax.f32 %v1440_v53, 0.0  ;;  %v3377_v13 = vld [vmem:[#allocation16_spill] sm:$0xff]  ;;  %v3380_v49 = vld [vmem:[#allocation19_spill] sm:$0xff] }
 0x187   :  { %v1457_v41 = vmax.f32 %v1441_v9, 0.0  ;;  %v1458_v50 = vmax.f32 %v1442_v17, 0.0  ;;  %v1459_v40 = vmax.f32 %v1443_v21, 0.0  ;;  %v1460_v19 = vmax.f32 %v1444_v52, 0.0  ;;  %v3381_v46 = vld [vmem:[#allocation23_spill] sm:$0xff]  ;;  %v3382_v9 = vld [vmem:[#allocation28_spill] sm:$0xff] }
 0x188   :  { %v1461_v34 = vmax.f32 %v1445_v23, 0.0  ;;  %v1462_v44 = vmax.f32 %v1446_v28, 0.0  ;;  %v1463_v24 = vmax.f32 %v1447_v10, 0.0  ;;  %v1464_v2 = vmax.f32 %v1448_v30, 0.0  ;;  %v3383_v21 = vld [vmem:[#allocation30_spill] sm:$0xff]  ;;  %v3384_v23 = vld [vmem:[#allocation27_spill] sm:$0xff] }
 0x189   :  { %v1465_v7 = vmax.f32 %v1449_v56, 0.0  ;;  %v1466_v0 = vmax.f32 %v1450_v15, 0.0  ;;  %v1467_v4 = vmax.f32 %v1451_v60, 0.0  ;;  %v1468_v27 = vmax.f32 %v1452_v12, 0.0 }
 0x18a   :  { %v1469_v38 = vmax.f32 %v1453_v39, 0.0  ;;  %v2103_v22 = vpack.c.bf16 %v1455_v16, %v1454_v25  ;;  %v2108_v33 = vpack.c.bf16 %v1457_v41, %v1456_v63  ;;  %v2113_v59 = vpack.c.bf16 %v1459_v40, %v1458_v50 }
 0x18b   :  { %v2118_v3 = vpack.c.bf16 %v1461_v34, %v1460_v19  ;;  %v2123_v1 = vpack.c.bf16 %v1463_v24, %v1462_v44  ;;  %v2128_v11 = vpack.c.bf16 %v1465_v7, %v1464_v2  ;;  %v2133_v14 = vpack.c.bf16 %v1467_v4, %v1466_v0 }
 0x18c   :  { %2195 = vst [vmem:[%s3297_s2 + $0x80] sm:$0xff] %v2103_v22   ;;  %2196 = vst [vmem:[%s3297_s2 + $0x88] sm:$0xff] %v2108_v33   ;;  %v2138_v51 = vpack.c.bf16 %v1469_v38, %v1468_v27  ;;  %v1551_v6 = vmul.f32 %v3002_v47, %v3370_v54  ;;  %v1552_v42 = vmul.f32 %v3002_v47, %v3371_v32 }
 0x18d   :  { %2197 = vst [vmem:[%s3297_s2 + $0x90] sm:$0xff] %v2113_v59   ;;  %v1553_v8 = vmul.f32 %v3002_v47, %v3372_v26  ;;  %2198 = vst [vmem:[%s3297_s2 + $0x98] sm:$0xff] %v2118_v3   ;;  %v1554_v37 = vmul.f32 %v3002_v47, %v3373_v45  ;;  %v1555_v5 = vmul.f32 %v3002_v47, %v3374_v43 }
 0x18e   :  { %2199 = vst [vmem:[%s3297_s2 + $0xa0] sm:$0xff] %v2123_v1   ;;  %2200 = vst [vmem:[%s3297_s2 + $0xa8] sm:$0xff] %v2128_v11   ;;  %v1556_v55 = vmul.f32 %v3002_v47, %v3375_v18  ;;  %v1557_v20 = vmul.f32 %v3002_v47, %v3376_v58  ;;  %v1558_v31 = vmul.f32 %v3002_v47, %v3377_v13 }
 0x18f   :  { %2201 = vst [vmem:[%s3297_s2 + $0xb0] sm:$0xff] %v2133_v14   ;;  %2202 = vst [vmem:[%s3297_s2 + $0xb8] sm:$0xff] %v2138_v51   ;;  %v1559_v48 = vmul.f32 %v3002_v47, %v3378_v62  ;;  %v1560_v35 = vmul.f32 %v3002_v47, %v3379_v61  ;;  %v1561_v57 = vmul.f32 %v3002_v47, %v3380_v49 }
 0x190   :  { %v1562_v53 = vmul.f32 %v3002_v47, %v3381_v46  ;;  %v1563_v17 = vmul.f32 %v3002_v47, %v3382_v9  ;;  %v1564_v52 = vmul.f32 %v3002_v47, %v3383_v21  ;;  %v1565_v28 = vmul.f32 %v3002_v47, %v3384_v23 }
 0x191   :  { %v1566_v10 = vmul.f32 %v3002_v47, %v2972_v36  ;;  %v1567_v30 = vadd.f32 %v1551_v6, %v3005_v29  ;;  %v1568_v56 = vadd.f32 %v1552_v42, %v3005_v29  ;;  %v1569_v15 = vadd.f32 %v1553_v8, %v3005_v29 }
 0x192   :  { %v1570_v60 = vadd.f32 %v1554_v37, %v3005_v29  ;;  %v1571_v12 = vadd.f32 %v1555_v5, %v3005_v29  ;;  %v1572_v39 = vadd.f32 %v1556_v55, %v3005_v29  ;;  %v1573_v25 = vadd.f32 %v1557_v20, %v3005_v29 }
 0x193   :  { %v1574_v16 = vadd.f32 %v1558_v31, %v3005_v29  ;;  %v1575_v63 = vadd.f32 %v1559_v48, %v3005_v29  ;;  %v1576_v36 = vadd.f32 %v1560_v35, %v3005_v29  ;;  %v1577_v47 = vadd.f32 %v1561_v57, %v3005_v29 }
 0x194   :  { %v1578_v41 = vadd.f32 %v1562_v53, %v3005_v29  ;;  %v1579_v50 = vadd.f32 %v1563_v17, %v3005_v29  ;;  %v1580_v40 = vadd.f32 %v1564_v52, %v3005_v29  ;;  %v1581_v19 = vadd.f32 %v1565_v28, %v3005_v29 }
 0x195   :  { %v1582_v34 = vadd.f32 %v1566_v10, %v3005_v29  ;;  %v1583_v44 = vmax.f32 %v1567_v30, 0.0  ;;  %v1584_v24 = vmax.f32 %v1568_v56, 0.0  ;;  %v1585_v2 = vmax.f32 %v1569_v15, 0.0 }
 0x196   :  { %v1586_v7 = vmax.f32 %v1570_v60, 0.0  ;;  %v1587_v0 = vmax.f32 %v1571_v12, 0.0  ;;  %v1588_v4 = vmax.f32 %v1572_v39, 0.0  ;;  %v1589_v27 = vmax.f32 %v1573_v25, 0.0 }
 0x197   :  { %v1590_v38 = vmax.f32 %v1574_v16, 0.0  ;;  %v1591_v22 = vmax.f32 %v1575_v63, 0.0  ;;  %v1592_v33 = vmax.f32 %v1576_v36, 0.0  ;;  %v1593_v59 = vmax.f32 %v1577_v47, 0.0 }
 0x198   :  { %v1594_v3 = vmax.f32 %v1578_v41, 0.0  ;;  %v1595_v1 = vmax.f32 %v1579_v50, 0.0  ;;  %v1596_v11 = vmax.f32 %v1580_v40, 0.0  ;;  %v1597_v14 = vmax.f32 %v1581_v19, 0.0 }
 0x199   :  { %v1598_v51 = vmax.f32 %v1582_v34, 0.0  ;;  %v2143_v54 = vpack.c.bf16 %v1584_v24, %v1583_v44  ;;  %v2148_v6 = vpack.c.bf16 %v1586_v7, %v1585_v2  ;;  %v2153_v32 = vpack.c.bf16 %v1588_v4, %v1587_v0 }
 0x19a   :  { %v2158_v29 = vpack.c.bf16 %v1590_v38, %v1589_v27  ;;  %v2163_v42 = vpack.c.bf16 %v1592_v33, %v1591_v22  ;;  %v2168_v26 = vpack.c.bf16 %v1594_v3, %v1593_v59  ;;  %v2173_v8 = vpack.c.bf16 %v1596_v11, %v1595_v1 }
 0x19b   :  { %2203 = vst [vmem:[%s3297_s2 + $0xc0] sm:$0xff] %v2143_v54   ;;  %2204 = vst [vmem:[%s3297_s2 + $0xc8] sm:$0xff] %v2148_v6   ;;  %v2178_v45 = vpack.c.bf16 %v1598_v51, %v1597_v14 }
 0x19c   :  { %2205 = vst [vmem:[%s3297_s2 + $0xd0] sm:$0xff] %v2153_v32   ;;  %2206 = vst [vmem:[%s3297_s2 + $0xd8] sm:$0xff] %v2158_v29  }
 0x19d   :  { %2207 = vst [vmem:[%s3297_s2 + $0xe0] sm:$0xff] %v2163_v42   ;;  %2208 = vst [vmem:[%s3297_s2 + $0xe8] sm:$0xff] %v2168_v26  }
 0x19e   :  { %2209 = vst [vmem:[%s3297_s2 + $0xf0] sm:$0xff] %v2173_v8   ;;  %2210 = vst [vmem:[%s3297_s2 + $0xf8] sm:$0xff] %v2178_v45  }

// kernel: forward.7
= control target key start
LH: loop header
LB: loop body
LE: loop exit
PB: predicated region body
PF: predicated region fallthrough
CT: control target
= control target key end

     0   :  { %s1463_s9 = smov 0   ;;  %s1465_s10 = smov 0   ;;  %s1614_s0 = inlined_call_operand.vmem [shape: bf16[4,512,128], index: 0, kind: input, shape index: {}]   ;;  %s1615_s1 = inlined_call_operand.vmem [shape: bf16[4,128,128], index: 1, kind: input, shape index: {}]   ;;  %s1616_s2 = inlined_call_operand.vmem [shape: f32[4,512,128], index: 2, kind: output, shape index: {}]  }
   0x1   :  { %s1467_s11 = smov 0  }
   0x2 LB: > { %s24_s12 = sadd.s32 1, %s1442_s10  ;;  %p1044_p0 = scmp.ge.s32.totalorder %s1446_s11, 1  ;;  %s1446_s11 = sphi %s1467_s11, %s12_s11   ;;  %s1442_s10 = sphi %s1465_s10, %s1618_s10   ;;  %s1438_s9 = sphi %s1463_s9, %s1617_s9  }
   0x3   : > { %p26_p1 = scmp.ge.s32.totalorder %s24_s12, 4  ;;  %p143_p2 = scmp.lt.s32.totalorder %s1446_s11, 5 }
   0x5   : > { %s1620_s12 = smov (%p26_p1, %s24_s12), 0  ;;  %p144_p3 = pnand %p1044_p0, %p143_p2 }
   0x6   : > { %p179_p4 = scmp.lt.s32.totalorder (!%p144_p3), %s1438_s9, 3 }
   0x7   : > { %147 = sbr.rel (%p144_p3) target bundleno = 340 (0x154), region = 28 }
   0xe   : > { %s1622_s9 = smov (!%p179_p4, %s1438_s9), 3 }
   0xf   : > { %s1094_s13 = sshll.u32 %s1622_s9, 6  ;;  %s1093_s17 = sshll.u32 %s1622_s9, 8 }
  0x10   : > { %s1487_s16 = scalar_lea.vmem %s1615_s1, %s1094_s13  ;;  %s1496_s20 = scalar_lea.vmem %s1614_s0, %s1093_s17 }
  0x11   : > { %v1256_v0 = vld [vmem:[%s1487_s16] sm:$0xff]   ;;  %v1257_v1 = vld [vmem:[%s1487_s16 + $0x8] sm:$0xff]   ;;  %v1258_v2 = vld [vmem:[%s1487_s16 + $0x10] sm:$0xff]   ;;  %s1095_s21 = sshll.u32 %s1622_s9, 9 }
  0x12   : > { %1136 = vmatprep.subr.bf16.mxu0 %v1256_v0  ;;  %1216 = vmatprep.subr.bf16.mxu1 %v1256_v0  ;;  %v1259_v3 = vld [vmem:[%s1487_s16 + $0x18] sm:$0xff]   ;;  %v1264_v4 = vld [vmem:[%s1496_s20] sm:$0xff]   ;;  %v1261_v7 = vld [vmem:[%s1487_s16 + $0x28] sm:$0xff]   ;;  %s1539_s24 = scalar_lea.vmem %s1616_s2, %s1095_s21 }
  0x13   : > { %1137 = vmatpush3.bf16.msra.mxu0 %v1256_v0  ;;  %1224 = vmatpush3.bf16.msra.mxu1 %v1256_v0  ;;  %v1265_v5 = vld [vmem:[%s1496_s20 + $0x80] sm:$0xff]   ;;  %v1262_v8 = vld [vmem:[%s1487_s16 + $0x30] sm:$0xff]   ;;  %v1263_v9 = vld [vmem:[%s1487_s16 + $0x38] sm:$0xff]  }
  0x14   : > { %1138 = vmatprep.subr.bf16.mxu0 %v1257_v1  ;;  %1217 = vmatprep.subr.bf16.mxu1 %v1257_v1  ;;  %v1260_v6 = vld [vmem:[%s1487_s16 + $0x20] sm:$0xff]   ;;  %v1266_v10 = vld [vmem:[%s1496_s20 + $0x8] sm:$0xff]   ;;  %v1268_v12 = vld [vmem:[%s1496_s20 + $0x10] sm:$0xff]  }
  0x15   : > { %1152 = vmatprep.mubr.bf16.mxu0 %v1264_v4  ;;  %1184 = vmatprep.mubr.bf16.mxu1 %v1265_v5  ;;  %v1267_v11 = vld [vmem:[%s1496_s20 + $0x88] sm:$0xff]   ;;  %v1269_v13 = vld [vmem:[%s1496_s20 + $0x90] sm:$0xff]   ;;  %v1270_v14 = vld [vmem:[%s1496_s20 + $0x18] sm:$0xff]  }
  0x16   : > { %v1271_v15 = vld [vmem:[%s1496_s20 + $0x98] sm:$0xff]   ;;  %v1272_v16 = vld [vmem:[%s1496_s20 + $0x20] sm:$0xff]   ;;  %v1274_v18 = vld [vmem:[%s1496_s20 + $0x28] sm:$0xff]  }
  0x17   : > { %1139 = vmatpush3.bf16.msra.mxu0 %v1257_v1  ;;  %1225 = vmatpush3.bf16.msra.mxu1 %v1257_v1  ;;  %v1273_v17 = vld [vmem:[%s1496_s20 + $0xa0] sm:$0xff]   ;;  %v1275_v19 = vld [vmem:[%s1496_s20 + $0xa8] sm:$0xff]   ;;  %v1276_v20 = vld [vmem:[%s1496_s20 + $0x30] sm:$0xff]  }
  0x18   : > { %1140 = vmatprep.subr.bf16.mxu0 %v1258_v2  ;;  %1218 = vmatprep.subr.bf16.mxu1 %v1258_v2  ;;  %v1277_v21 = vld [vmem:[%s1496_s20 + $0xb0] sm:$0xff]   ;;  %v1278_v22 = vld [vmem:[%s1496_s20 + $0x38] sm:$0xff]   ;;  %v1280_v24 = vld [vmem:[%s1496_s20 + $0x40] sm:$0xff]  }
  0x19   : > { %v1279_v23 = vld [vmem:[%s1496_s20 + $0xb8] sm:$0xff]   ;;  %v1281_v25 = vld [vmem:[%s1496_s20 + $0xc0] sm:$0xff]   ;;  %v1282_v26 = vld [vmem:[%s1496_s20 + $0x48] sm:$0xff]  }
  0x1a   : > { %v1283_v27 = vld [vmem:[%s1496_s20 + $0xc8] sm:$0xff]   ;;  %v1284_v28 = vld [vmem:[%s1496_s20 + $0x50] sm:$0xff]   ;;  %v1286_v30 = vld [vmem:[%s1496_s20 + $0x58] sm:$0xff]  }
  0x1b   : > { %1141 = vmatpush3.bf16.msra.mxu0 %v1258_v2  ;;  %1226 = vmatpush3.bf16.msra.mxu1 %v1258_v2  ;;  %v1285_v29 = vld [vmem:[%s1496_s20 + $0xd0] sm:$0xff]   ;;  %v1287_v31 = vld [vmem:[%s1496_s20 + $0xd8] sm:$0xff]   ;;  %v1288_v32 = vld [vmem:[%s1496_s20 + $0x60] sm:$0xff]  }
  0x1c   : > { %1142 = vmatprep.subr.bf16.mxu0 %v1259_v3  ;;  %1219 = vmatprep.subr.bf16.mxu1 %v1259_v3  ;;  %v1289_v33 = vld [vmem:[%s1496_s20 + $0xe0] sm:$0xff]   ;;  %v1290_v34 = vld [vmem:[%s1496_s20 + $0x68] sm:$0xff]   ;;  %v1292_v36 = vld [vmem:[%s1496_s20 + $0x70] sm:$0xff]  }
  0x1d   : > { %v1291_v35 = vld [vmem:[%s1496_s20 + $0xe8] sm:$0xff]   ;;  %v1293_v37 = vld [vmem:[%s1496_s20 + $0xf0] sm:$0xff]   ;;  %v1294_v38 = vld [vmem:[%s1496_s20 + $0x78] sm:$0xff]  }
  0x1e   : > { %v1295_v39 = vld [vmem:[%s1496_s20 + $0xf8] sm:$0xff]  }
  0x1f   : > { %1143 = vmatpush3.bf16.msra.mxu0 %v1259_v3  ;;  %1227 = vmatpush3.bf16.msra.mxu1 %v1259_v3 }
  0x20   : > { %1144 = vmatprep.subr.bf16.mxu0 %v1260_v6  ;;  %1220 = vmatprep.subr.bf16.mxu1 %v1260_v6 }
  0x23   : > { %1145 = vmatpush3.bf16.msra.mxu0 %v1260_v6  ;;  %1228 = vmatpush3.bf16.msra.mxu1 %v1260_v6 }
  0x24   : > { %1146 = vmatprep.subr.bf16.mxu0 %v1261_v7  ;;  %1221 = vmatprep.subr.bf16.mxu1 %v1261_v7 }
  0x27   : > { %1147 = vmatpush3.bf16.msra.mxu0 %v1261_v7  ;;  %1229 = vmatpush3.bf16.msra.mxu1 %v1261_v7 }
  0x28   : > { %1148 = vmatprep.subr.bf16.mxu0 %v1262_v8  ;;  %1222 = vmatprep.subr.bf16.mxu1 %v1262_v8 }
  0x2b   : > { %1149 = vmatpush3.bf16.msra.mxu0 %v1262_v8  ;;  %1230 = vmatpush3.bf16.msra.mxu1 %v1262_v8 }
  0x2c   : > { %1150 = vmatprep.subr.bf16.mxu0 %v1263_v9  ;;  %1223 = vmatprep.subr.bf16.mxu1 %v1263_v9 }
  0x2f   : > { %1151 = vmatpush3.bf16.msra.mxu0 %v1263_v9  ;;  %1231 = vmatpush3.bf16.msra.mxu1 %v1263_v9 }
  0x32   : > { %1153 = vmatmul.mubr.bf16.vlgmr.msra.gmra.mrb[0].mxu0 %v1266_v10  ;;  %1185 = vmatmul.mubr.bf16.vlgmr.msra.gmra.mrb[0].mxu1 %v1267_v11 }
  0x33   : > { %1156 = vmatprep.mubr.bf16.mxu0 %v1268_v12  ;;  %1188 = vmatprep.mubr.bf16.mxu1 %v1269_v13 }
  0x3a   : > { %1157 = vmatmul.mubr.bf16.gmra.mrb[4].mxu0 %v1270_v14  ;;  %1189 = vmatmul.mubr.bf16.gmra.mrb[4].mxu1 %v1271_v15 }
  0x3b   : > { %1160 = vmatprep.mubr.bf16.mxu0 %v1272_v16  ;;  %1192 = vmatprep.mubr.bf16.mxu1 %v1273_v17 }
  0x42   : > { %1161 = vmatmul.mubr.bf16.gmra.mrb[8].mxu0 %v1274_v18  ;;  %1193 = vmatmul.mubr.bf16.gmra.mrb[8].mxu1 %v1275_v19 }
  0x43   : > { %1164 = vmatprep.mubr.bf16.mxu0 %v1276_v20  ;;  %1196 = vmatprep.mubr.bf16.mxu1 %v1277_v21 }
  0x4a   : > { %1165 = vmatmul.mubr.bf16.gmra.mrb[12].mxu0 %v1278_v22  ;;  %1197 = vmatmul.mubr.bf16.gmra.mrb[12].mxu1 %v1279_v23 }
  0x4b   : > { %1168 = vmatprep.mubr.bf16.mxu0 %v1280_v24  ;;  %1200 = vmatprep.mubr.bf16.mxu1 %v1281_v25 }
  0x52   : > { %1169 = vmatmul.mubr.bf16.gmra.mrb[16].mxu0 %v1282_v26  ;;  %1201 = vmatmul.mubr.bf16.gmra.mrb[16].mxu1 %v1283_v27 }
  0x53   : > { %1172 = vmatprep.mubr.bf16.mxu0 %v1284_v28  ;;  %1204 = vmatprep.mubr.bf16.mxu1 %v1285_v29 }
  0x5a   : > { %1173 = vmatmul.mubr.bf16.gmra.mrb[20].mxu0 %v1286_v30  ;;  %1205 = vmatmul.mubr.bf16.gmra.mrb[20].mxu1 %v1287_v31 }
  0x5b   : > { %1176 = vmatprep.mubr.bf16.mxu0 %v1288_v32  ;;  %1208 = vmatprep.mubr.bf16.mxu1 %v1289_v33 }
  0x62   : > { %1177 = vmatmul.mubr.bf16.gmra.mrb[24].mxu0 %v1290_v34  ;;  %1209 = vmatmul.mubr.bf16.gmra.mrb[24].mxu1 %v1291_v35 }
  0x63   : > { %1180 = vmatprep.mubr.bf16.mxu0 %v1292_v36  ;;  %1212 = vmatprep.mubr.bf16.mxu1 %v1293_v37 }
  0x6a   : > { %1181 = vmatmul.mubr.bf16.gmra.mrb[28].mxu0 %v1294_v38  ;;  %1213 = vmatmul.mubr.bf16.gmra.mrb[28].mxu1 %v1295_v39 }
 0x105   : > { %v1154_v40 = vpop.f32.mrb[0].mxu0  ;;  %v1186_v41 = vpop.f32.mrb[0].mxu1 }
 0x106   : > { %1296 = vtanh.f32 %v1154_v40  ;;  %v558_v42 = vpop.f32.mrb[1].mxu0  ;;  %v686_v43 = vpop.f32.mrb[1].mxu1 }
 0x107   : > { %1298 = vtanh.f32 %v1186_v41  ;;  %v1155_v44 = vpop.f32.mrb[2].mxu0  ;;  %v1187_v45 = vpop.f32.mrb[2].mxu1 }
 0x108   : > { %1300 = vtanh.f32 %v558_v42  ;;  %v561_v46 = vpop.f32.mrb[3].mxu0  ;;  %v689_v47 = vpop.f32.mrb[3].mxu1 }
 0x109   : > { %1302 = vtanh.f32 %v686_v43 }
 0x10a   : > { %1304 = vtanh.f32 %v1155_v44 }
 0x10b   : > { %1306 = vtanh.f32 %v1187_v45 }
 0x10c   : > { %1308 = vtanh.f32 %v561_v46 }
 0x10d   : > { %1310 = vtanh.f32 %v689_v47  ;;  %v1158_v48 = vpop.f32.mrb[4].mxu0  ;;  %v1190_v49 = vpop.f32.mrb[4].mxu1 }
 0x10e   : > { %1312 = vtanh.f32 %v1158_v48  ;;  %v574_v50 = vpop.f32.mrb[5].mxu0  ;;  %v702_v51 = vpop.f32.mrb[5].mxu1 }
 0x10f   : > { %1314 = vtanh.f32 %v1190_v49  ;;  %v1159_v52 = vpop.f32.mrb[6].mxu0  ;;  %v1191_v53 = vpop.f32.mrb[6].mxu1 }
 0x110   : > { %v1297_v54 = vpop.eup %1296  ;;  %1316 = vtanh.f32 %v574_v50  ;;  %v577_v55 = vpop.f32.mrb[7].mxu0 }
 0x111   : > { %v705_v56 = vpop.f32.mrb[7].mxu1  ;;  %v1299_v57 = vpop.eup %1298  ;;  %879 = vst [vmem:[%s1539_s24 + $0x10] sm:$0xff] %v1297_v54  ;;  %1318 = vtanh.f32 %v702_v51 }
 0x112   : > { %v1301_v58 = vpop.eup %1300  ;;  %911 = vst [vmem:[%s1539_s24 + $0x110] sm:$0xff] %v1299_v57  ;;  %1320 = vtanh.f32 %v1159_v52 }
 0x113   : > { %v1303_v59 = vpop.eup %1302  ;;  %877 = vst [vmem:[%s1539_s24] sm:$0xff] %v1301_v58  ;;  %1322 = vtanh.f32 %v1191_v53 }
 0x114   : > { %v1305_v60 = vpop.eup %1304  ;;  %909 = vst [vmem:[%s1539_s24 + $0x100] sm:$0xff] %v1303_v59  ;;  %1324 = vtanh.f32 %v577_v55 }
 0x115   : > { %v1307_v61 = vpop.eup %1306  ;;  %880 = vst [vmem:[%s1539_s24 + $0x18] sm:$0xff] %v1305_v60  ;;  %1326 = vtanh.f32 %v705_v56  ;;  %v1162_v62 = vpop.f32.mrb[8].mxu0 }
 0x116   : > { %v1194_v63 = vpop.f32.mrb[8].mxu1  ;;  %v1309_v0 = vpop.eup %1308  ;;  %912 = vst [vmem:[%s1539_s24 + $0x118] sm:$0xff] %v1307_v61  ;;  %1328 = vtanh.f32 %v1162_v62 }
 0x117   : > { %v590_v1 = vpop.f32.mrb[9].mxu0  ;;  %v718_v2 = vpop.f32.mrb[9].mxu1  ;;  %878 = vst [vmem:[%s1539_s24 + $0x8] sm:$0xff] %v1309_v0  ;;  %1330 = vtanh.f32 %v1194_v63 }
 0x118   : > { %v1311_v3 = vpop.eup %1310  ;;  %v1163_v4 = vpop.f32.mrb[10].mxu0  ;;  %1332 = vtanh.f32 %v590_v1 }
 0x119   : > { %v1195_v5 = vpop.f32.mrb[10].mxu1  ;;  %v1313_v6 = vpop.eup %1312  ;;  %910 = vst [vmem:[%s1539_s24 + $0x108] sm:$0xff] %v1311_v3  ;;  %1334 = vtanh.f32 %v718_v2 }
 0x11a   : > { %v593_v7 = vpop.f32.mrb[11].mxu0  ;;  %v721_v8 = vpop.f32.mrb[11].mxu1  ;;  %883 = vst [vmem:[%s1539_s24 + $0x30] sm:$0xff] %v1313_v6  ;;  %1336 = vtanh.f32 %v1163_v4 }
 0x11b   : > { %v1315_v9 = vpop.eup %1314  ;;  %1338 = vtanh.f32 %v1195_v5 }
 0x11c   : > { %v1317_v10 = vpop.eup %1316  ;;  %915 = vst [vmem:[%s1539_s24 + $0x130] sm:$0xff] %v1315_v9  ;;  %1340 = vtanh.f32 %v593_v7 }
 0x11d   : > { %v1319_v11 = vpop.eup %1318  ;;  %881 = vst [vmem:[%s1539_s24 + $0x20] sm:$0xff] %v1317_v10  ;;  %1342 = vtanh.f32 %v721_v8  ;;  %v1166_v14 = vpop.f32.mrb[12].mxu0 }
 0x11e   : > { %v1321_v12 = vpop.eup %1320  ;;  %913 = vst [vmem:[%s1539_s24 + $0x120] sm:$0xff] %v1319_v11  ;;  %v1198_v15 = vpop.f32.mrb[12].mxu1  ;;  %1344 = vtanh.f32 %v1166_v14 }
 0x11f   : > { %v1323_v13 = vpop.eup %1322  ;;  %884 = vst [vmem:[%s1539_s24 + $0x38] sm:$0xff] %v1321_v12  ;;  %v606_v17 = vpop.f32.mrb[13].mxu0  ;;  %1346 = vtanh.f32 %v1198_v15 }
 0x120   : > { %v1325_v16 = vpop.eup %1324  ;;  %916 = vst [vmem:[%s1539_s24 + $0x138] sm:$0xff] %v1323_v13  ;;  %v734_v18 = vpop.f32.mrb[13].mxu1  ;;  %1348 = vtanh.f32 %v606_v17 }
 0x121   : > { %v1327_v19 = vpop.eup %1326  ;;  %882 = vst [vmem:[%s1539_s24 + $0x28] sm:$0xff] %v1325_v16  ;;  %v1167_v20 = vpop.f32.mrb[14].mxu0  ;;  %1350 = vtanh.f32 %v734_v18 }
 0x122   : > { %v1199_v21 = vpop.f32.mrb[14].mxu1  ;;  %v1329_v22 = vpop.eup %1328  ;;  %914 = vst [vmem:[%s1539_s24 + $0x128] sm:$0xff] %v1327_v19  ;;  %1352 = vtanh.f32 %v1167_v20 }
 0x123   : > { %v609_v23 = vpop.f32.mrb[15].mxu0  ;;  %v737_v24 = vpop.f32.mrb[15].mxu1  ;;  %887 = vst [vmem:[%s1539_s24 + $0x50] sm:$0xff] %v1329_v22  ;;  %1354 = vtanh.f32 %v1199_v21 }
 0x124   : > { %v1331_v25 = vpop.eup %1330  ;;  %1356 = vtanh.f32 %v609_v23 }
 0x125   : > { %v1333_v26 = vpop.eup %1332  ;;  %919 = vst [vmem:[%s1539_s24 + $0x150] sm:$0xff] %v1331_v25  ;;  %1358 = vtanh.f32 %v737_v24  ;;  %v1170_v30 = vpop.f32.mrb[16].mxu0 }
 0x126   : > { %v1335_v27 = vpop.eup %1334  ;;  %885 = vst [vmem:[%s1539_s24 + $0x40] sm:$0xff] %v1333_v26  ;;  %v1202_v31 = vpop.f32.mrb[16].mxu1  ;;  %1360 = vtanh.f32 %v1170_v30 }
 0x127   : > { %v1337_v28 = vpop.eup %1336  ;;  %917 = vst [vmem:[%s1539_s24 + $0x140] sm:$0xff] %v1335_v27  ;;  %v622_v33 = vpop.f32.mrb[17].mxu0  ;;  %1362 = vtanh.f32 %v1202_v31 }
 0x128   : > { %v1339_v29 = vpop.eup %1338  ;;  %888 = vst [vmem:[%s1539_s24 + $0x58] sm:$0xff] %v1337_v28  ;;  %v750_v34 = vpop.f32.mrb[17].mxu1  ;;  %1364 = vtanh.f32 %v622_v33 }
 0x129   : > { %v1341_v32 = vpop.eup %1340  ;;  %920 = vst [vmem:[%s1539_s24 + $0x158] sm:$0xff] %v1339_v29  ;;  %v1171_v36 = vpop.f32.mrb[18].mxu0  ;;  %1366 = vtanh.f32 %v750_v34 }
 0x12a   : > { %v1343_v35 = vpop.eup %1342  ;;  %886 = vst [vmem:[%s1539_s24 + $0x48] sm:$0xff] %v1341_v32  ;;  %v1203_v37 = vpop.f32.mrb[18].mxu1  ;;  %1368 = vtanh.f32 %v1171_v36 }
 0x12b   : > { %v1345_v38 = vpop.eup %1344  ;;  %918 = vst [vmem:[%s1539_s24 + $0x148] sm:$0xff] %v1343_v35  ;;  %v625_v39 = vpop.f32.mrb[19].mxu0  ;;  %1370 = vtanh.f32 %v1203_v37 }
 0x12c   : > { %v753_v40 = vpop.f32.mrb[19].mxu1  ;;  %v1347_v41 = vpop.eup %1346  ;;  %891 = vst [vmem:[%s1539_s24 + $0x70] sm:$0xff] %v1345_v38  ;;  %1372 = vtanh.f32 %v625_v39 }
 0x12d   : > { %v1349_v42 = vpop.eup %1348  ;;  %923 = vst [vmem:[%s1539_s24 + $0x170] sm:$0xff] %v1347_v41  ;;  %1374 = vtanh.f32 %v753_v40  ;;  %v1174_v46 = vpop.f32.mrb[20].mxu0 }
 0x12e   : > { %v1351_v43 = vpop.eup %1350  ;;  %889 = vst [vmem:[%s1539_s24 + $0x60] sm:$0xff] %v1349_v42  ;;  %v1206_v47 = vpop.f32.mrb[20].mxu1  ;;  %1376 = vtanh.f32 %v1174_v46 }
 0x12f   : > { %v1353_v44 = vpop.eup %1352  ;;  %921 = vst [vmem:[%s1539_s24 + $0x160] sm:$0xff] %v1351_v43  ;;  %v638_v49 = vpop.f32.mrb[21].mxu0  ;;  %1378 = vtanh.f32 %v1206_v47 }
 0x130   : > { %v1355_v45 = vpop.eup %1354  ;;  %892 = vst [vmem:[%s1539_s24 + $0x78] sm:$0xff] %v1353_v44  ;;  %v766_v50 = vpop.f32.mrb[21].mxu1  ;;  %1380 = vtanh.f32 %v638_v49 }
 0x131   : > { %v1357_v48 = vpop.eup %1356  ;;  %924 = vst [vmem:[%s1539_s24 + $0x178] sm:$0xff] %v1355_v45  ;;  %v1175_v52 = vpop.f32.mrb[22].mxu0  ;;  %1382 = vtanh.f32 %v766_v50 }
 0x132   : > { %v1359_v51 = vpop.eup %1358  ;;  %890 = vst [vmem:[%s1539_s24 + $0x68] sm:$0xff] %v1357_v48  ;;  %v1207_v53 = vpop.f32.mrb[22].mxu1  ;;  %1384 = vtanh.f32 %v1175_v52 }
 0x133   : > { %v1361_v54 = vpop.eup %1360  ;;  %922 = vst [vmem:[%s1539_s24 + $0x168] sm:$0xff] %v1359_v51  ;;  %v641_v55 = vpop.f32.mrb[23].mxu0  ;;  %1386 = vtanh.f32 %v1207_v53 }
 0x134   : > { %v769_v56 = vpop.f32.mrb[23].mxu1  ;;  %v1363_v57 = vpop.eup %1362  ;;  %895 = vst [vmem:[%s1539_s24 + $0x90] sm:$0xff] %v1361_v54  ;;  %1388 = vtanh.f32 %v641_v55 }
 0x135   : > { %v1365_v58 = vpop.eup %1364  ;;  %927 = vst [vmem:[%s1539_s24 + $0x190] sm:$0xff] %v1363_v57  ;;  %1390 = vtanh.f32 %v769_v56  ;;  %v1178_v62 = vpop.f32.mrb[24].mxu0 }
 0x136   : > { %v1367_v59 = vpop.eup %1366  ;;  %893 = vst [vmem:[%s1539_s24 + $0x80] sm:$0xff] %v1365_v58  ;;  %v1210_v63 = vpop.f32.mrb[24].mxu1  ;;  %1392 = vtanh.f32 %v1178_v62 }
 0x137   : > { %v1369_v60 = vpop.eup %1368  ;;  %925 = vst [vmem:[%s1539_s24 + $0x180] sm:$0xff] %v1367_v59  ;;  %v654_v1 = vpop.f32.mrb[25].mxu0  ;;  %1394 = vtanh.f32 %v1210_v63 }
 0x138   : > { %v1371_v61 = vpop.eup %1370  ;;  %896 = vst [vmem:[%s1539_s24 + $0x98] sm:$0xff] %v1369_v60  ;;  %v782_v2 = vpop.f32.mrb[25].mxu1  ;;  %1396 = vtanh.f32 %v654_v1 }
 0x139   : > { %v1373_v0 = vpop.eup %1372  ;;  %928 = vst [vmem:[%s1539_s24 + $0x198] sm:$0xff] %v1371_v61  ;;  %v1179_v4 = vpop.f32.mrb[26].mxu0  ;;  %1398 = vtanh.f32 %v782_v2 }
 0x13a   : > { %v1375_v3 = vpop.eup %1374  ;;  %894 = vst [vmem:[%s1539_s24 + $0x88] sm:$0xff] %v1373_v0  ;;  %v1211_v5 = vpop.f32.mrb[26].mxu1  ;;  %1400 = vtanh.f32 %v1179_v4 }
 0x13b   : > { %v1377_v6 = vpop.eup %1376  ;;  %926 = vst [vmem:[%s1539_s24 + $0x188] sm:$0xff] %v1375_v3  ;;  %v657_v7 = vpop.f32.mrb[27].mxu0  ;;  %1402 = vtanh.f32 %v1211_v5 }
 0x13c   : > { %v785_v8 = vpop.f32.mrb[27].mxu1  ;;  %v1379_v9 = vpop.eup %1378  ;;  %899 = vst [vmem:[%s1539_s24 + $0xb0] sm:$0xff] %v1377_v6  ;;  %1404 = vtanh.f32 %v657_v7 }
 0x13d   : > { %v1381_v10 = vpop.eup %1380  ;;  %931 = vst [vmem:[%s1539_s24 + $0x1b0] sm:$0xff] %v1379_v9  ;;  %1406 = vtanh.f32 %v785_v8  ;;  %v1182_v14 = vpop.f32.mrb[28].mxu0 }
 0x13e   : > { %v1383_v11 = vpop.eup %1382  ;;  %897 = vst [vmem:[%s1539_s24 + $0xa0] sm:$0xff] %v1381_v10  ;;  %v1214_v15 = vpop.f32.mrb[28].mxu1  ;;  %1408 = vtanh.f32 %v1182_v14 }
 0x13f   : > { %v1385_v12 = vpop.eup %1384  ;;  %929 = vst [vmem:[%s1539_s24 + $0x1a0] sm:$0xff] %v1383_v11  ;;  %v670_v17 = vpop.f32.mrb[29].mxu0  ;;  %1410 = vtanh.f32 %v1214_v15 }
 0x140   : > { %v1387_v13 = vpop.eup %1386  ;;  %900 = vst [vmem:[%s1539_s24 + $0xb8] sm:$0xff] %v1385_v12  ;;  %v798_v18 = vpop.f32.mrb[29].mxu1  ;;  %1412 = vtanh.f32 %v670_v17 }
 0x141   : > { %v1389_v16 = vpop.eup %1388  ;;  %932 = vst [vmem:[%s1539_s24 + $0x1b8] sm:$0xff] %v1387_v13  ;;  %v1183_v20 = vpop.f32.mrb[30].mxu0  ;;  %1414 = vtanh.f32 %v798_v18 }
 0x142   : > { %v1391_v19 = vpop.eup %1390  ;;  %898 = vst [vmem:[%s1539_s24 + $0xa8] sm:$0xff] %v1389_v16  ;;  %v1215_v21 = vpop.f32.mrb[30].mxu1  ;;  %1416 = vtanh.f32 %v1183_v20 }
 0x143   : > { %v1393_v22 = vpop.eup %1392  ;;  %930 = vst [vmem:[%s1539_s24 + $0x1a8] sm:$0xff] %v1391_v19  ;;  %v673_v23 = vpop.f32.mrb[31].mxu0  ;;  %1418 = vtanh.f32 %v1215_v21 }
 0x144   : > { %v801_v24 = vpop.f32.mrb[31].mxu1  ;;  %v1395_v25 = vpop.eup %1394  ;;  %903 = vst [vmem:[%s1539_s24 + $0xd0] sm:$0xff] %v1393_v22  ;;  %1420 = vtanh.f32 %v673_v23 }
 0x145   : > { %v1397_v26 = vpop.eup %1396  ;;  %935 = vst [vmem:[%s1539_s24 + $0x1d0] sm:$0xff] %v1395_v25  ;;  %1422 = vtanh.f32 %v801_v24 }
 0x146   : > { %v1399_v27 = vpop.eup %1398  ;;  %901 = vst [vmem:[%s1539_s24 + $0xc0] sm:$0xff] %v1397_v26 }
 0x147   : > { %v1401_v28 = vpop.eup %1400  ;;  %933 = vst [vmem:[%s1539_s24 + $0x1c0] sm:$0xff] %v1399_v27 }
 0x148   : > { %v1403_v29 = vpop.eup %1402  ;;  %904 = vst [vmem:[%s1539_s24 + $0xd8] sm:$0xff] %v1401_v28 }
 0x149   : > { %v1405_v30 = vpop.eup %1404  ;;  %936 = vst [vmem:[%s1539_s24 + $0x1d8] sm:$0xff] %v1403_v29 }
 0x14a   : > { %v1407_v31 = vpop.eup %1406  ;;  %902 = vst [vmem:[%s1539_s24 + $0xc8] sm:$0xff] %v1405_v30 }
 0x14b   : > { %v1409_v32 = vpop.eup %1408  ;;  %934 = vst [vmem:[%s1539_s24 + $0x1c8] sm:$0xff] %v1407_v31 }
 0x14c   : > { %v1411_v33 = vpop.eup %1410  ;;  %907 = vst [vmem:[%s1539_s24 + $0xf0] sm:$0xff] %v1409_v32 }
 0x14d   : > { %v1413_v34 = vpop.eup %1412  ;;  %939 = vst [vmem:[%s1539_s24 + $0x1f0] sm:$0xff] %v1411_v33 }
 0x14e   : > { %v1415_v35 = vpop.eup %1414  ;;  %905 = vst [vmem:[%s1539_s24 + $0xe0] sm:$0xff] %v1413_v34 }
 0x14f   : > { %v1417_v36 = vpop.eup %1416  ;;  %937 = vst [vmem:[%s1539_s24 + $0x1e0] sm:$0xff] %v1415_v35 }
 0x150   : > { %v1419_v37 = vpop.eup %1418  ;;  %908 = vst [vmem:[%s1539_s24 + $0xf8] sm:$0xff] %v1417_v36 }
 0x151   : > { %v1421_v38 = vpop.eup %1420  ;;  %940 = vst [vmem:[%s1539_s24 + $0x1f8] sm:$0xff] %v1419_v37 }
 0x152   : > { %v1423_v39 = vpop.eup %1422  ;;  %906 = vst [vmem:[%s1539_s24 + $0xe8] sm:$0xff] %v1421_v38 }
 0x153   : > { %938 = vst [vmem:[%s1539_s24 + $0x1e8] sm:$0xff] %v1423_v39 }
 0x154 PF: > { %s12_s11 = sadd.s32 1, %s1446_s11   ;;  %s1617_s9 = smov %s1442_s10 }
 0x155   : > { %p9_p5 = scmp.ge.s32.totalorder %s12_s11, 6   ;;  %s1618_s10 = smov %s1620_s12 }
 0x157   :  { %11 = sbr.rel (!%p9_p5) target bundleno = 2 (0x2), region = 61 }

</bundles_post_ra>
